<compile_context>
chip_gen: v6e
topology: v6e:2x2x1
jax: 0.10.0
libtpu: 0.0.40
codegen_flags: <defaults>
</compile_context>

<pallas_src>
import math
import functools

import jax
import jax.numpy as jnp
from jax.experimental import pallas as pl
from jax.experimental.pallas import tpu as pltpu


def _layernorm(x, g, b, eps=1e-5):
    mu = jnp.mean(x, axis=-1, keepdims=True)
    var = jnp.mean((x - mu) ** 2, axis=-1, keepdims=True)
    return (x - mu) * jax.lax.rsqrt(var + eps) * g + b


def _gelu(x):
    # tanh-form GELU: keeps transcendental work on the EUP slot.
    # |err| vs torch.nn.GELU() (exact erf) <= ~1e-3.
    # TODO(synk): switch to exact-erf GELU if bit-parity with PyTorch is required.
    c = math.sqrt(2.0 / math.pi)
    return 0.5 * x * (1.0 + jnp.tanh(c * (x + 0.044715 * (x * x * x))))


def vit_kernel(num_heads, seq_len,
               x_ref, we_ref, be_ref, pos_ref,
               g1_ref, bt1_ref, wqkv_ref, wo_ref,
               g2_ref, bt2_ref, w1_ref, bb1_ref, w2_ref, bb2_ref,
               w3_ref, bb3_ref, wu_ref, bu_ref,
               o_ref):
    x = x_ref[...]                                  # (M, Fin), M = B_tile * S
    M = x.shape[0]
    S = seq_len
    Bt = M // S
    E = we_ref.shape[1]
    H = num_heads
    dh = E // H
    scale = 1.0 / math.sqrt(dh)

    # --- patch embedding + learnable positional encoding (pre-tiled to (M,E)) ---
    z = jnp.dot(x, we_ref[...], preferred_element_type=jnp.float32) + be_ref[...]
    z = z + pos_ref[...]                            # (M, E)

    # --- SelfTransformerBlock: pre-LN multi-head self-attention ---
    zn = _layernorm(z, g1_ref[...], bt1_ref[...])
    qkv = jnp.dot(zn, wqkv_ref[...], preferred_element_type=jnp.float32)   # (M, 3E)

    def to_heads(t2d):                              # (M, E) -> (H*Bt, S, dh)
        t3 = t2d.reshape(Bt, S, E)
        return jnp.concatenate(
            [t3[:, :, h * dh:(h + 1) * dh] for h in range(H)], axis=0)

    qh = to_heads(qkv[:, 0:E])
    kh = to_heads(qkv[:, E:2 * E])
    vh = to_heads(qkv[:, 2 * E:3 * E])

    # heads (and batch) as the leading einsum batch dim
    s = jnp.einsum('bqd,bkd->bqk', qh, kh,
                   preferred_element_type=jnp.float32) * scale             # (H*Bt,S,S)
    s = s - jnp.max(s, axis=-1, keepdims=True)
    p = jnp.exp(s)
    p = p * pl.reciprocal(jnp.sum(p, axis=-1, keepdims=True), approx=True)
    oh = jnp.einsum('bqk,bkd->bqd', p, vh,
                    preferred_element_type=jnp.float32)                    # (H*Bt,S,dh)

    # concat heads (head-major columns) then ONE full-K output projection
    att = jnp.concatenate([oh[h * Bt:(h + 1) * Bt] for h in range(H)], axis=-1)
    att = att.reshape(M, E)
    att = jnp.dot(att, wo_ref[...], preferred_element_type=jnp.float32)
    z = z + att                                     # residual

    # --- MLP branch: Linear-GELU-Linear-GELU-Linear (dropout == identity) ---
    zn = _layernorm(z, g2_ref[...], bt2_ref[...])
    h1 = _gelu(jnp.dot(zn, w1_ref[...], preferred_element_type=jnp.float32) + bb1_ref[...])
    h2 = _gelu(jnp.dot(h1, w2_ref[...], preferred_element_type=jnp.float32) + bb2_ref[...])
    h3 = jnp.dot(h2, w3_ref[...], preferred_element_type=jnp.float32) + bb3_ref[...]
    z = z + h3                                      # residual

    # --- un-embed: weight is lane-padded to a 128-multiple -> unmasked stores ---
    o_ref[...] = jnp.dot(z, wu_ref[...], preferred_element_type=jnp.float32) + bu_ref[...]


def init_params(key, in_channels, patch, seq_len, embed_dim):
    fin = in_channels * patch * patch
    pp = patch * patch
    ks = jax.random.split(key, 10)
    rnd = lambda k, shape: 0.05 * jax.random.normal(k, shape, jnp.float32)
    zeros = lambda shape: jnp.zeros(shape, jnp.float32)
    ones = lambda shape: jnp.ones(shape, jnp.float32)
    return dict(
        we=rnd(ks[0], (fin, embed_dim)), be=zeros((1, embed_dim)),
        pos=rnd(ks[1], (seq_len, embed_dim)),
        g1=ones((1, embed_dim)), bt1=zeros((1, embed_dim)),
        wq=rnd(ks[2], (embed_dim, embed_dim)),
        wk=rnd(ks[3], (embed_dim, embed_dim)),
        wv=rnd(ks[4], (embed_dim, embed_dim)),
        wo=rnd(ks[5], (embed_dim, embed_dim)),
        g2=ones((1, embed_dim)), bt2=zeros((1, embed_dim)),
        w1=rnd(ks[6], (embed_dim, embed_dim)), bb1=zeros((1, embed_dim)),
        w2=rnd(ks[7], (embed_dim, embed_dim)), bb2=zeros((1, embed_dim)),
        w3=rnd(ks[8], (embed_dim, embed_dim)), bb3=zeros((1, embed_dim)),
        wu=rnd(ks[9], (embed_dim, pp)), bu=zeros((1, pp)),
    )


def _pick_batch_tile(B, S):
    divisors = [d for d in range(1, B + 1) if B % d == 0]
    # smallest tile that fills >=256 MXU rows; else the largest tile that still
    # leaves >=2 grid steps (v7x megacore), else everything in one step.
    big = [d for d in divisors if d * S >= 256]
    if big:
        return big[0]
    two_step = [d for d in divisors if B // d >= 2]
    return max(two_step) if two_step else B


def self_vit2d_forward(x, params, patch_size, num_heads, batch_tile=None):
    B, C, H, W = x.shape
    P = patch_size
    p1, p2 = H // P, W // P
    S = p1 * p2
    Fin = C * P * P
    PP = P * P
    E = params["we"].shape[1]
    NU = ((PP + 127) // 128) * 128          # lane-dense un-embed width

    if batch_tile is None:
        batch_tile = _pick_batch_tile(B, S)
    assert B % batch_tile == 0
    M = batch_tile * S

    # patchify: 'b c (p1 h) (p2 w) -> b (p1 p2) (c h w)', flattened to (B*S, Fin)
    tokens = x.astype(jnp.float32).reshape(B, C, p1, P, p2, P)
    tokens = tokens.transpose(0, 2, 4, 1, 3, 5).reshape(B * S, Fin)

    # wrapper-side layout plumbing (one-off XLA ops, not hot-path compute)
    wqkv = jnp.concatenate([params["wq"], params["wk"], params["wv"]], axis=1)  # (E,3E)
    pos_tiled = jnp.tile(params["pos"], (batch_tile, 1))                        # (M,E)
    wu_pad = jnp.zeros((E, NU), jnp.float32).at[:, :PP].set(params["wu"])
    bu_pad = jnp.zeros((1, NU), jnp.float32).at[:, :PP].set(params["bu"])

    plist = [params["we"], params["be"], pos_tiled,
             params["g1"], params["bt1"], wqkv, params["wo"],
             params["g2"], params["bt2"],
             params["w1"], params["bb1"], params["w2"], params["bb2"],
             params["w3"], params["bb3"], wu_pad, bu_pad]

    in_specs = [pl.BlockSpec((M, Fin), lambda b: (b, 0))]
    in_specs += [pl.BlockSpec(a.shape, lambda b: (0, 0)) for a in plist]

    # advisory cost estimate for the XLA scheduler
    dh = E // num_heads
    n_weight_elems = sum(int(a.size) for a in plist)
    flops = (2 * B * S * (Fin * E + 3 * E * E + E * E + 3 * E * E + E * NU)
             + 4 * B * num_heads * S * S * dh)
    transcendentals = B * num_heads * S * S + 2 * B * S * E + B * num_heads * S
    bytes_accessed = 4 * (B * S * (Fin + NU)
                          + n_weight_elems * (B // batch_tile))

    unembedded = pl.pallas_call(
        functools.partial(vit_kernel, num_heads, S),
        out_shape=jax.ShapeDtypeStruct((B * S, NU), jnp.float32),
        grid=(B // batch_tile,),
        in_specs=in_specs,
        out_specs=pl.BlockSpec((M, NU), lambda b: (b, 0)),
        compiler_params=pltpu.CompilerParams(
            dimension_semantics=("parallel",),
            vmem_limit_bytes=32 * 1024 * 1024),
        cost_estimate=pl.CostEstimate(flops=int(flops),
                                      transcendentals=int(transcendentals),
                                      bytes_accessed=int(bytes_accessed)),
    )(tokens, *plist)

    # drop lane padding, un-patchify: '(p1 p2) (h w c) -> c (p1 h) (p2 w)', c=1
    u = unembedded.reshape(B, S, NU)[:, :, :PP]
    un = u.reshape(B, p1, p2, P, P, 1).transpose(0, 5, 1, 3, 2, 4).reshape(B, 1, H, W)

    # residual add; (B,1,H,W) broadcasts over channels exactly like PyTorch.
    return x + un


if __name__ == "__main__":
    B, C, H, W = 4, 4, 16, 16          # input image: NCHW
    patch_size = 4
    embed_dim = 256                    # heads*dh = 2*128 -> all slices lane-aligned
    num_heads = 2
    p1, p2 = H // patch_size, W // patch_size
    seq_len = p1 * p2

    key = jax.random.PRNGKey(0)
    kx, kp = jax.random.split(key)
    x = jax.random.normal(kx, (B, C, H, W), jnp.float32)
    params = init_params(kp, C, patch_size, seq_len, embed_dim)

    out = self_vit2d_forward(x, params, patch_size, num_heads)
    out = jax.block_until_ready(out)
    assert out.shape == (B, C, H, W)
    assert out.dtype == jnp.float32
    print("KERNEL_OK")
</pallas_src>

<mosaic_0001>
module attributes {stable_mosaic.version = 11 : i64} {
  func.func @vit_kernel(%arg0: i32, %arg1: memref<32x64xf32, #tpu.memory_space<vmem>>, %arg2: memref<64x256xf32, #tpu.memory_space<vmem>>, %arg3: memref<1x256xf32, #tpu.memory_space<vmem>>, %arg4: memref<32x256xf32, #tpu.memory_space<vmem>>, %arg5: memref<1x256xf32, #tpu.memory_space<vmem>>, %arg6: memref<1x256xf32, #tpu.memory_space<vmem>>, %arg7: memref<256x768xf32, #tpu.memory_space<vmem>>, %arg8: memref<256x256xf32, #tpu.memory_space<vmem>>, %arg9: memref<1x256xf32, #tpu.memory_space<vmem>>, %arg10: memref<1x256xf32, #tpu.memory_space<vmem>>, %arg11: memref<256x256xf32, #tpu.memory_space<vmem>>, %arg12: memref<1x256xf32, #tpu.memory_space<vmem>>, %arg13: memref<256x256xf32, #tpu.memory_space<vmem>>, %arg14: memref<1x256xf32, #tpu.memory_space<vmem>>, %arg15: memref<256x256xf32, #tpu.memory_space<vmem>>, %arg16: memref<1x256xf32, #tpu.memory_space<vmem>>, %arg17: memref<256x128xf32, #tpu.memory_space<vmem>>, %arg18: memref<1x128xf32, #tpu.memory_space<vmem>>, %arg19: memref<32x128xf32, #tpu.memory_space<vmem>>) attributes {dimension_semantics = [#tpu.dimension_semantics<parallel>], iteration_bounds = array<i64: 2>, scalar_prefetch = 0 : i64, scratch_operands = 0 : i64, tpu.core_type = #tpu.core_type<tc>, window_params = [{transform_indices = @transform_0, window_bounds = array<i64: 32, 64>}, {pipeline_mode = #tpu.pipeline_mode<synchronous>, transform_indices = @transform_1, window_bounds = array<i64: 64, 256>}, {pipeline_mode = #tpu.pipeline_mode<synchronous>, transform_indices = @transform_2, window_bounds = array<i64: 1, 256>}, {pipeline_mode = #tpu.pipeline_mode<synchronous>, transform_indices = @transform_3, window_bounds = array<i64: 32, 256>}, {pipeline_mode = #tpu.pipeline_mode<synchronous>, transform_indices = @transform_4, window_bounds = array<i64: 1, 256>}, {pipeline_mode = #tpu.pipeline_mode<synchronous>, transform_indices = @transform_5, window_bounds = array<i64: 1, 256>}, {pipeline_mode = #tpu.pipeline_mode<synchronous>, transform_indices = @transform_6, window_bounds = array<i64: 256, 768>}, {pipeline_mode = #tpu.pipeline_mode<synchronous>, transform_indices = @transform_7, window_bounds = array<i64: 256, 256>}, {pipeline_mode = #tpu.pipeline_mode<synchronous>, transform_indices = @transform_8, window_bounds = array<i64: 1, 256>}, {pipeline_mode = #tpu.pipeline_mode<synchronous>, transform_indices = @transform_9, window_bounds = array<i64: 1, 256>}, {pipeline_mode = #tpu.pipeline_mode<synchronous>, transform_indices = @transform_10, window_bounds = array<i64: 256, 256>}, {pipeline_mode = #tpu.pipeline_mode<synchronous>, transform_indices = @transform_11, window_bounds = array<i64: 1, 256>}, {pipeline_mode = #tpu.pipeline_mode<synchronous>, transform_indices = @transform_12, window_bounds = array<i64: 256, 256>}, {pipeline_mode = #tpu.pipeline_mode<synchronous>, transform_indices = @transform_13, window_bounds = array<i64: 1, 256>}, {pipeline_mode = #tpu.pipeline_mode<synchronous>, transform_indices = @transform_14, window_bounds = array<i64: 256, 256>}, {pipeline_mode = #tpu.pipeline_mode<synchronous>, transform_indices = @transform_15, window_bounds = array<i64: 1, 256>}, {pipeline_mode = #tpu.pipeline_mode<synchronous>, transform_indices = @transform_16, window_bounds = array<i64: 256, 128>}, {pipeline_mode = #tpu.pipeline_mode<synchronous>, transform_indices = @transform_17, window_bounds = array<i64: 1, 128>}, {transform_indices = @transform_18, window_bounds = array<i64: 32, 128>}]} {
    %c0 = arith.constant 0 : index
    %c0_0 = arith.constant 0 : index
    %0 = vector.load %arg1[%c0, %c0_0] : memref<32x64xf32, #tpu.memory_space<vmem>>, vector<32x64xf32>
    %c0_1 = arith.constant 0 : index
    %c0_2 = arith.constant 0 : index
    %1 = vector.load %arg2[%c0_1, %c0_2] : memref<64x256xf32, #tpu.memory_space<vmem>>, vector<64x256xf32>
    %cst = arith.constant dense<0.000000e+00> : vector<32x256xf32>
    %2 = tpu.matmul %0, %1, %cst {dimension_numbers = #tpu.dot_dimension_numbers<[1], [0], [0], [1], [0, 0, 1, 1], [], []>} : vector<32x64xf32>, vector<64x256xf32>, vector<32x256xf32> -> vector<32x256xf32>
    %c0_3 = arith.constant 0 : index
    %c0_4 = arith.constant 0 : index
    %3 = vector.load %arg3[%c0_3, %c0_4] : memref<1x256xf32, #tpu.memory_space<vmem>>, vector<1x256xf32>
    %4 = vector.broadcast %3 : vector<1x256xf32> to vector<32x256xf32>
    %5 = arith.addf %2, %4 : vector<32x256xf32>
    %c0_5 = arith.constant 0 : index
    %c0_6 = arith.constant 0 : index
    %6 = vector.load %arg4[%c0_5, %c0_6] : memref<32x256xf32, #tpu.memory_space<vmem>>, vector<32x256xf32>
    %7 = arith.addf %5, %6 : vector<32x256xf32>
    %c0_7 = arith.constant 0 : index
    %c0_8 = arith.constant 0 : index
    %8 = vector.load %arg5[%c0_7, %c0_8] : memref<1x256xf32, #tpu.memory_space<vmem>>, vector<1x256xf32>
    %c0_9 = arith.constant 0 : index
    %c0_10 = arith.constant 0 : index
    %9 = vector.load %arg6[%c0_9, %c0_10] : memref<1x256xf32, #tpu.memory_space<vmem>>, vector<1x256xf32>
    %cst_11 = arith.constant dense<0.000000e+00> : vector<32xf32>
    %10 = vector.multi_reduction <add>, %7, %cst_11 [1] : vector<32x256xf32> to vector<32xf32>
    %11 = vector.shape_cast %10 : vector<32xf32> to vector<32x1xf32>
    %cst_12 = arith.constant 2.560000e+02 : f32
    %12 = vector.broadcast %cst_12 : f32 to vector<32x1xf32>
    %13 = arith.divf %11, %12 : vector<32x1xf32>
    %14 = vector.broadcast %13 : vector<32x1xf32> to vector<32x256xf32>
    %15 = arith.subf %7, %14 : vector<32x256xf32>
    %16 = arith.mulf %15, %15 : vector<32x256xf32>
    %cst_13 = arith.constant dense<0.000000e+00> : vector<32xf32>
    %17 = vector.multi_reduction <add>, %16, %cst_13 [1] : vector<32x256xf32> to vector<32xf32>
    %18 = vector.shape_cast %17 : vector<32xf32> to vector<32x1xf32>
    %cst_14 = arith.constant 2.560000e+02 : f32
    %19 = vector.broadcast %cst_14 : f32 to vector<32x1xf32>
    %20 = arith.divf %18, %19 : vector<32x1xf32>
    %21 = vector.broadcast %13 : vector<32x1xf32> to vector<32x256xf32>
    %22 = arith.subf %7, %21 : vector<32x256xf32>
    %cst_15 = arith.constant 9.99999974E-6 : f32
    %23 = vector.broadcast %cst_15 : f32 to vector<32x1xf32>
    %24 = arith.addf %20, %23 : vector<32x1xf32>
    %25 = math.rsqrt %24 : vector<32x1xf32>
    %26 = vector.broadcast %25 : vector<32x1xf32> to vector<32x256xf32>
    %27 = arith.mulf %22, %26 : vector<32x256xf32>
    %28 = vector.broadcast %8 : vector<1x256xf32> to vector<32x256xf32>
    %29 = arith.mulf %27, %28 : vector<32x256xf32>
    %30 = vector.broadcast %9 : vector<1x256xf32> to vector<32x256xf32>
    %31 = arith.addf %29, %30 : vector<32x256xf32>
    %c0_16 = arith.constant 0 : index
    %c0_17 = arith.constant 0 : index
    %32 = vector.load %arg7[%c0_16, %c0_17] : memref<256x768xf32, #tpu.memory_space<vmem>>, vector<256x768xf32>
    %cst_18 = arith.constant dense<0.000000e+00> : vector<32x768xf32>
    %33 = tpu.matmul %31, %32, %cst_18 {dimension_numbers = #tpu.dot_dimension_numbers<[1], [0], [0], [1], [0, 0, 1, 1], [], []>} : vector<32x256xf32>, vector<256x768xf32>, vector<32x768xf32> -> vector<32x768xf32>
    %34 = vector.extract_strided_slice %33 {offsets = [0, 0], sizes = [32, 256], strides = [1, 1]} : vector<32x768xf32> to vector<32x256xf32>
    %35 = vector.shape_cast %34 : vector<32x256xf32> to vector<2x16x256xf32>
    %36 = vector.extract_strided_slice %35 {offsets = [0, 0, 0], sizes = [2, 16, 128], strides = [1, 1, 1]} : vector<2x16x256xf32> to vector<2x16x128xf32>
    %37 = vector.extract_strided_slice %35 {offsets = [0, 0, 128], sizes = [2, 16, 128], strides = [1, 1, 1]} : vector<2x16x256xf32> to vector<2x16x128xf32>
    %38 = tpu.concatenate %36, %37 in 0 : vector<2x16x128xf32>, vector<2x16x128xf32> -> vector<4x16x128xf32>
    %39 = vector.extract_strided_slice %33 {offsets = [0, 256], sizes = [32, 256], strides = [1, 1]} : vector<32x768xf32> to vector<32x256xf32>
    %40 = vector.shape_cast %39 : vector<32x256xf32> to vector<2x16x256xf32>
    %41 = vector.extract_strided_slice %40 {offsets = [0, 0, 0], sizes = [2, 16, 128], strides = [1, 1, 1]} : vector<2x16x256xf32> to vector<2x16x128xf32>
    %42 = vector.extract_strided_slice %40 {offsets = [0, 0, 128], sizes = [2, 16, 128], strides = [1, 1, 1]} : vector<2x16x256xf32> to vector<2x16x128xf32>
    %43 = tpu.concatenate %41, %42 in 0 : vector<2x16x128xf32>, vector<2x16x128xf32> -> vector<4x16x128xf32>
    %44 = vector.extract_strided_slice %33 {offsets = [0, 512], sizes = [32, 256], strides = [1, 1]} : vector<32x768xf32> to vector<32x256xf32>
    %45 = vector.shape_cast %44 : vector<32x256xf32> to vector<2x16x256xf32>
    %46 = vector.extract_strided_slice %45 {offsets = [0, 0, 0], sizes = [2, 16, 128], strides = [1, 1, 1]} : vector<2x16x256xf32> to vector<2x16x128xf32>
    %47 = vector.extract_strided_slice %45 {offsets = [0, 0, 128], sizes = [2, 16, 128], strides = [1, 1, 1]} : vector<2x16x256xf32> to vector<2x16x128xf32>
    %48 = tpu.concatenate %46, %47 in 0 : vector<2x16x128xf32>, vector<2x16x128xf32> -> vector<4x16x128xf32>
    "tpu.trace_start"() <{level = 10 : i32, message = "bqd,bkd->bqk"}> : () -> ()
    %cst_19 = arith.constant dense<0.000000e+00> : vector<4x16x16xf32>
    %49 = tpu.matmul %38, %43, %cst_19 {dimension_numbers = #tpu.dot_dimension_numbers<[2], [2], [1], [1], [0, 0, 0, 1, 1, 1], [0], [0]>} : vector<4x16x128xf32>, vector<4x16x128xf32>, vector<4x16x16xf32> -> vector<4x16x16xf32>
    "tpu.trace_stop"() : () -> ()
    %cst_20 = arith.constant 0.0883883461 : f32
    %50 = vector.broadcast %cst_20 : f32 to vector<4x16x16xf32>
    %51 = arith.mulf %49, %50 : vector<4x16x16xf32>
    %cst_21 = arith.constant dense<0xFF800000> : vector<4x16xf32>
    %52 = vector.multi_reduction <maximumf>, %51, %cst_21 [2] : vector<4x16x16xf32> to vector<4x16xf32>
    %53 = vector.shape_cast %52 : vector<4x16xf32> to vector<4x16x1xf32>
    %54 = vector.broadcast %53 : vector<4x16x1xf32> to vector<4x16x16xf32>
    %55 = arith.subf %51, %54 : vector<4x16x16xf32>
    %56 = math.exp %55 : vector<4x16x16xf32>
    %cst_22 = arith.constant dense<0.000000e+00> : vector<4x16xf32>
    %57 = vector.multi_reduction <add>, %56, %cst_22 [2] : vector<4x16x16xf32> to vector<4x16xf32>
    %58 = vector.shape_cast %57 : vector<4x16xf32> to vector<4x16x1xf32>
    %59 = tpu.reciprocal %58 {approx = true} : vector<4x16x1xf32> -> vector<4x16x1xf32>
    %60 = vector.broadcast %59 : vector<4x16x1xf32> to vector<4x16x16xf32>
    %61 = arith.mulf %56, %60 : vector<4x16x16xf32>
    "tpu.trace_start"() <{level = 10 : i32, message = "bqk,bkd->bqd"}> : () -> ()
    %cst_23 = arith.constant dense<0.000000e+00> : vector<4x16x128xf32>
    %62 = tpu.matmul %61, %48, %cst_23 {dimension_numbers = #tpu.dot_dimension_numbers<[2], [1], [1], [2], [0, 0, 0, 1, 1, 2], [0], [0]>} : vector<4x16x16xf32>, vector<4x16x128xf32>, vector<4x16x128xf32> -> vector<4x16x128xf32>
    "tpu.trace_stop"() : () -> ()
    %63 = vector.extract_strided_slice %62 {offsets = [0, 0, 0], sizes = [2, 16, 128], strides = [1, 1, 1]} : vector<4x16x128xf32> to vector<2x16x128xf32>
    %64 = vector.extract_strided_slice %62 {offsets = [2, 0, 0], sizes = [2, 16, 128], strides = [1, 1, 1]} : vector<4x16x128xf32> to vector<2x16x128xf32>
    %65 = tpu.concatenate %63, %64 in 2 : vector<2x16x128xf32>, vector<2x16x128xf32> -> vector<2x16x256xf32>
    %66 = vector.shape_cast %65 : vector<2x16x256xf32> to vector<32x256xf32>
    %c0_24 = arith.constant 0 : index
    %c0_25 = arith.constant 0 : index
    %67 = vector.load %arg8[%c0_24, %c0_25] : memref<256x256xf32, #tpu.memory_space<vmem>>, vector<256x256xf32>
    %cst_26 = arith.constant dense<0.000000e+00> : vector<32x256xf32>
    %68 = tpu.matmul %66, %67, %cst_26 {dimension_numbers = #tpu.dot_dimension_numbers<[1], [0], [0], [1], [0, 0, 1, 1], [], []>} : vector<32x256xf32>, vector<256x256xf32>, vector<32x256xf32> -> vector<32x256xf32>
    %69 = arith.addf %7, %68 : vector<32x256xf32>
    %c0_27 = arith.constant 0 : index
    %c0_28 = arith.constant 0 : index
    %70 = vector.load %arg9[%c0_27, %c0_28] : memref<1x256xf32, #tpu.memory_space<vmem>>, vector<1x256xf32>
    %c0_29 = arith.constant 0 : index
    %c0_30 = arith.constant 0 : index
    %71 = vector.load %arg10[%c0_29, %c0_30] : memref<1x256xf32, #tpu.memory_space<vmem>>, vector<1x256xf32>
    %cst_31 = arith.constant dense<0.000000e+00> : vector<32xf32>
    %72 = vector.multi_reduction <add>, %69, %cst_31 [1] : vector<32x256xf32> to vector<32xf32>
    %73 = vector.shape_cast %72 : vector<32xf32> to vector<32x1xf32>
    %cst_32 = arith.constant 2.560000e+02 : f32
    %74 = vector.broadcast %cst_32 : f32 to vector<32x1xf32>
    %75 = arith.divf %73, %74 : vector<32x1xf32>
    %76 = vector.broadcast %75 : vector<32x1xf32> to vector<32x256xf32>
    %77 = arith.subf %69, %76 : vector<32x256xf32>
    %78 = arith.mulf %77, %77 : vector<32x256xf32>
    %cst_33 = arith.constant dense<0.000000e+00> : vector<32xf32>
    %79 = vector.multi_reduction <add>, %78, %cst_33 [1] : vector<32x256xf32> to vector<32xf32>
    %80 = vector.shape_cast %79 : vector<32xf32> to vector<32x1xf32>
    %cst_34 = arith.constant 2.560000e+02 : f32
    %81 = vector.broadcast %cst_34 : f32 to vector<32x1xf32>
    %82 = arith.divf %80, %81 : vector<32x1xf32>
    %83 = vector.broadcast %75 : vector<32x1xf32> to vector<32x256xf32>
    %84 = arith.subf %69, %83 : vector<32x256xf32>
    %cst_35 = arith.constant 9.99999974E-6 : f32
    %85 = vector.broadcast %cst_35 : f32 to vector<32x1xf32>
    %86 = arith.addf %82, %85 : vector<32x1xf32>
    %87 = math.rsqrt %86 : vector<32x1xf32>
    %88 = vector.broadcast %87 : vector<32x1xf32> to vector<32x256xf32>
    %89 = arith.mulf %84, %88 : vector<32x256xf32>
    %90 = vector.broadcast %70 : vector<1x256xf32> to vector<32x256xf32>
    %91 = arith.mulf %89, %90 : vector<32x256xf32>
    %92 = vector.broadcast %71 : vector<1x256xf32> to vector<32x256xf32>
    %93 = arith.addf %91, %92 : vector<32x256xf32>
    %c0_36 = arith.constant 0 : index
    %c0_37 = arith.constant 0 : index
    %94 = vector.load %arg11[%c0_36, %c0_37] : memref<256x256xf32, #tpu.memory_space<vmem>>, vector<256x256xf32>
    %cst_38 = arith.constant dense<0.000000e+00> : vector<32x256xf32>
    %95 = tpu.matmul %93, %94, %cst_38 {dimension_numbers = #tpu.dot_dimension_numbers<[1], [0], [0], [1], [0, 0, 1, 1], [], []>} : vector<32x256xf32>, vector<256x256xf32>, vector<32x256xf32> -> vector<32x256xf32>
    %c0_39 = arith.constant 0 : index
    %c0_40 = arith.constant 0 : index
    %96 = vector.load %arg12[%c0_39, %c0_40] : memref<1x256xf32, #tpu.memory_space<vmem>>, vector<1x256xf32>
    %97 = vector.broadcast %96 : vector<1x256xf32> to vector<32x256xf32>
    %98 = arith.addf %95, %97 : vector<32x256xf32>
    %cst_41 = arith.constant 5.000000e-01 : f32
    %99 = vector.broadcast %cst_41 : f32 to vector<32x256xf32>
    %100 = arith.mulf %99, %98 : vector<32x256xf32>
    %101 = arith.mulf %98, %98 : vector<32x256xf32>
    %102 = arith.mulf %101, %98 : vector<32x256xf32>
    %cst_42 = arith.constant 4.471500e-02 : f32
    %103 = vector.broadcast %cst_42 : f32 to vector<32x256xf32>
    %104 = arith.mulf %103, %102 : vector<32x256xf32>
    %105 = arith.addf %98, %104 : vector<32x256xf32>
    %cst_43 = arith.constant 0.797884583 : f32
    %106 = vector.broadcast %cst_43 : f32 to vector<32x256xf32>
    %107 = arith.mulf %106, %105 : vector<32x256xf32>
    %108 = math.tanh %107 : vector<32x256xf32>
    %cst_44 = arith.constant 1.000000e+00 : f32
    %109 = vector.broadcast %cst_44 : f32 to vector<32x256xf32>
    %110 = arith.addf %109, %108 : vector<32x256xf32>
    %111 = arith.mulf %100, %110 : vector<32x256xf32>
    %c0_45 = arith.constant 0 : index
    %c0_46 = arith.constant 0 : index
    %112 = vector.load %arg13[%c0_45, %c0_46] : memref<256x256xf32, #tpu.memory_space<vmem>>, vector<256x256xf32>
    %cst_47 = arith.constant dense<0.000000e+00> : vector<32x256xf32>
    %113 = tpu.matmul %111, %112, %cst_47 {dimension_numbers = #tpu.dot_dimension_numbers<[1], [0], [0], [1], [0, 0, 1, 1], [], []>} : vector<32x256xf32>, vector<256x256xf32>, vector<32x256xf32> -> vector<32x256xf32>
    %c0_48 = arith.constant 0 : index
    %c0_49 = arith.constant 0 : index
    %114 = vector.load %arg14[%c0_48, %c0_49] : memref<1x256xf32, #tpu.memory_space<vmem>>, vector<1x256xf32>
    %115 = vector.broadcast %114 : vector<1x256xf32> to vector<32x256xf32>
    %116 = arith.addf %113, %115 : vector<32x256xf32>
    %cst_50 = arith.constant 5.000000e-01 : f32
    %117 = vector.broadcast %cst_50 : f32 to vector<32x256xf32>
    %118 = arith.mulf %117, %116 : vector<32x256xf32>
    %119 = arith.mulf %116, %116 : vector<32x256xf32>
    %120 = arith.mulf %119, %116 : vector<32x256xf32>
    %cst_51 = arith.constant 4.471500e-02 : f32
    %121 = vector.broadcast %cst_51 : f32 to vector<32x256xf32>
    %122 = arith.mulf %121, %120 : vector<32x256xf32>
    %123 = arith.addf %116, %122 : vector<32x256xf32>
    %cst_52 = arith.constant 0.797884583 : f32
    %124 = vector.broadcast %cst_52 : f32 to vector<32x256xf32>
    %125 = arith.mulf %124, %123 : vector<32x256xf32>
    %126 = math.tanh %125 : vector<32x256xf32>
    %cst_53 = arith.constant 1.000000e+00 : f32
    %127 = vector.broadcast %cst_53 : f32 to vector<32x256xf32>
    %128 = arith.addf %127, %126 : vector<32x256xf32>
    %129 = arith.mulf %118, %128 : vector<32x256xf32>
    %c0_54 = arith.constant 0 : index
    %c0_55 = arith.constant 0 : index
    %130 = vector.load %arg15[%c0_54, %c0_55] : memref<256x256xf32, #tpu.memory_space<vmem>>, vector<256x256xf32>
    %cst_56 = arith.constant dense<0.000000e+00> : vector<32x256xf32>
    %131 = tpu.matmul %129, %130, %cst_56 {dimension_numbers = #tpu.dot_dimension_numbers<[1], [0], [0], [1], [0, 0, 1, 1], [], []>} : vector<32x256xf32>, vector<256x256xf32>, vector<32x256xf32> -> vector<32x256xf32>
    %c0_57 = arith.constant 0 : index
    %c0_58 = arith.constant 0 : index
    %132 = vector.load %arg16[%c0_57, %c0_58] : memref<1x256xf32, #tpu.memory_space<vmem>>, vector<1x256xf32>
    %133 = vector.broadcast %132 : vector<1x256xf32> to vector<32x256xf32>
    %134 = arith.addf %131, %133 : vector<32x256xf32>
    %135 = arith.addf %69, %134 : vector<32x256xf32>
    %c0_59 = arith.constant 0 : index
    %c0_60 = arith.constant 0 : index
    %136 = vector.load %arg17[%c0_59, %c0_60] : memref<256x128xf32, #tpu.memory_space<vmem>>, vector<256x128xf32>
    %cst_61 = arith.constant dense<0.000000e+00> : vector<32x128xf32>
    %137 = tpu.matmul %135, %136, %cst_61 {dimension_numbers = #tpu.dot_dimension_numbers<[1], [0], [0], [1], [0, 0, 1, 1], [], []>} : vector<32x256xf32>, vector<256x128xf32>, vector<32x128xf32> -> vector<32x128xf32>
    %c0_62 = arith.constant 0 : index
    %c0_63 = arith.constant 0 : index
    %138 = vector.load %arg18[%c0_62, %c0_63] : memref<1x128xf32, #tpu.memory_space<vmem>>, vector<1x128xf32>
    %139 = vector.broadcast %138 : vector<1x128xf32> to vector<32x128xf32>
    %140 = arith.addf %137, %139 : vector<32x128xf32>
    %c0_64 = arith.constant 0 : index
    %c0_65 = arith.constant 0 : index
    %141 = vector.load %arg19[%c0_64, %c0_65] : memref<32x128xf32, #tpu.memory_space<vmem>>, vector<32x128xf32>
    tpu.vector_store %arg19[%c0_64, %c0_65], %140 {strides = array<i32>} : memref<32x128xf32, #tpu.memory_space<vmem>>, vector<32x128xf32>,
    return
  }
  func.func @transform_0(%arg0: i32) -> (i32, i32) {
    %c0_i32 = arith.constant 0 : i32
    %c0_i32_0 = arith.constant 0 : i32
    return %arg0, %c0_i32 : i32, i32
  }
  func.func @transform_1(%arg0: i32) -> (i32, i32) {
    %c0_i32 = arith.constant 0 : i32
    %c0_i32_0 = arith.constant 0 : i32
    %c0_i32_1 = arith.constant 0 : i32
    return %c0_i32, %c0_i32_0 : i32, i32
  }
  func.func @transform_2(%arg0: i32) -> (i32, i32) {
    %c0_i32 = arith.constant 0 : i32
    %c0_i32_0 = arith.constant 0 : i32
    %c0_i32_1 = arith.constant 0 : i32
    return %c0_i32, %c0_i32_0 : i32, i32
  }
  func.func @transform_3(%arg0: i32) -> (i32, i32) {
    %c0_i32 = arith.constant 0 : i32
    %c0_i32_0 = arith.constant 0 : i32
    %c0_i32_1 = arith.constant 0 : i32
    return %c0_i32, %c0_i32_0 : i32, i32
  }
  func.func @transform_4(%arg0: i32) -> (i32, i32) {
    %c0_i32 = arith.constant 0 : i32
    %c0_i32_0 = arith.constant 0 : i32
    %c0_i32_1 = arith.constant 0 : i32
    return %c0_i32, %c0_i32_0 : i32, i32
  }
  func.func @transform_5(%arg0: i32) -> (i32, i32) {
    %c0_i32 = arith.constant 0 : i32
    %c0_i32_0 = arith.constant 0 : i32
    %c0_i32_1 = arith.constant 0 : i32
    return %c0_i32, %c0_i32_0 : i32, i32
  }
  func.func @transform_6(%arg0: i32) -> (i32, i32) {
    %c0_i32 = arith.constant 0 : i32
    %c0_i32_0 = arith.constant 0 : i32
    %c0_i32_1 = arith.constant 0 : i32
    return %c0_i32, %c0_i32_0 : i32, i32
  }
  func.func @transform_7(%arg0: i32) -> (i32, i32) {
    %c0_i32 = arith.constant 0 : i32
    %c0_i32_0 = arith.constant 0 : i32
    %c0_i32_1 = arith.constant 0 : i32
    return %c0_i32, %c0_i32_0 : i32, i32
  }
  func.func @transform_8(%arg0: i32) -> (i32, i32) {
    %c0_i32 = arith.constant 0 : i32
    %c0_i32_0 = arith.constant 0 : i32
    %c0_i32_1 = arith.constant 0 : i32
    return %c0_i32, %c0_i32_0 : i32, i32
  }
  func.func @transform_9(%arg0: i32) -> (i32, i32) {
    %c0_i32 = arith.constant 0 : i32
    %c0_i32_0 = arith.constant 0 : i32
    %c0_i32_1 = arith.constant 0 : i32
    return %c0_i32, %c0_i32_0 : i32, i32
  }
  func.func @transform_10(%arg0: i32) -> (i32, i32) {
    %c0_i32 = arith.constant 0 : i32
    %c0_i32_0 = arith.constant 0 : i32
    %c0_i32_1 = arith.constant 0 : i32
    return %c0_i32, %c0_i32_0 : i32, i32
  }
  func.func @transform_11(%arg0: i32) -> (i32, i32) {
    %c0_i32 = arith.constant 0 : i32
    %c0_i32_0 = arith.constant 0 : i32
    %c0_i32_1 = arith.constant 0 : i32
    return %c0_i32, %c0_i32_0 : i32, i32
  }
  func.func @transform_12(%arg0: i32) -> (i32, i32) {
    %c0_i32 = arith.constant 0 : i32
    %c0_i32_0 = arith.constant 0 : i32
    %c0_i32_1 = arith.constant 0 : i32
    return %c0_i32, %c0_i32_0 : i32, i32
  }
  func.func @transform_13(%arg0: i32) -> (i32, i32) {
    %c0_i32 = arith.constant 0 : i32
    %c0_i32_0 = arith.constant 0 : i32
    %c0_i32_1 = arith.constant 0 : i32
    return %c0_i32, %c0_i32_0 : i32, i32
  }
  func.func @transform_14(%arg0: i32) -> (i32, i32) {
    %c0_i32 = arith.constant 0 : i32
    %c0_i32_0 = arith.constant 0 : i32
    %c0_i32_1 = arith.constant 0 : i32
    return %c0_i32, %c0_i32_0 : i32, i32
  }
  func.func @transform_15(%arg0: i32) -> (i32, i32) {
    %c0_i32 = arith.constant 0 : i32
    %c0_i32_0 = arith.constant 0 : i32
    %c0_i32_1 = arith.constant 0 : i32
    return %c0_i32, %c0_i32_0 : i32, i32
  }
  func.func @transform_16(%arg0: i32) -> (i32, i32) {
    %c0_i32 = arith.constant 0 : i32
    %c0_i32_0 = arith.constant 0 : i32
    %c0_i32_1 = arith.constant 0 : i32
    return %c0_i32, %c0_i32_0 : i32, i32
  }
  func.func @transform_17(%arg0: i32) -> (i32, i32) {
    %c0_i32 = arith.constant 0 : i32
    %c0_i32_0 = arith.constant 0 : i32
    %c0_i32_1 = arith.constant 0 : i32
    return %c0_i32, %c0_i32_0 : i32, i32
  }
  func.func @transform_18(%arg0: i32) -> (i32, i32) {
    %c0_i32 = arith.constant 0 : i32
    %c0_i32_0 = arith.constant 0 : i32
    return %arg0, %c0_i32 : i32, i32
  }
}

</mosaic_0001>

<bundles_post_ra>
// kernel: tpu_custom_call.1
= control target key start
LH: loop header
LB: loop body
LE: loop exit
PB: predicated region body
PF: predicated region fallthrough
CT: control target
= control target key end

     0   :  { %s4977_s0 = inlined_call_operand.hbm [shape: f32[64,64], index: 0, kind: input, shape index: {}]   ;;  %s4978_s1 = inlined_call_operand.hbm [shape: f32[64,256], index: 1, kind: input, shape index: {}]   ;;  %s4979_s2 = inlined_call_operand.vmem [shape: f32[1,256], index: 2, kind: input, shape index: {}]   ;;  %s4980_s3 = inlined_call_operand.hbm [shape: f32[32,256], index: 3, kind: input, shape index: {}]   ;;  %s4981_s4 = inlined_call_operand.vmem [shape: f32[1,256], index: 4, kind: input, shape index: {}]   ;;  %s4982_s5 = inlined_call_operand.vmem [shape: f32[1,256], index: 5, kind: input, shape index: {}]   ;;  %s4983_s6 = inlined_call_operand.hbm [shape: f32[256,768], index: 6, kind: input, shape index: {}]   ;;  %s4984_s7 = inlined_call_operand.hbm [shape: f32[256,256], index: 7, kind: input, shape index: {}]   ;;  %s4985_s8 = inlined_call_operand.vmem [shape: f32[1,256], index: 8, kind: input, shape index: {}]   ;;  %s4986_s9 = inlined_call_operand.vmem [shape: f32[1,256], index: 9, kind: input, shape index: {}]   ;;  %s4987_s10 = inlined_call_operand.hbm [shape: f32[256,256], index: 10, kind: input, shape index: {}]   ;;  %s4988_s11 = inlined_call_operand.vmem [shape: f32[1,256], index: 11, kind: input, shape index: {}]   ;;  %s4989_s12 = inlined_call_operand.hbm [shape: f32[256,256], index: 12, kind: input, shape index: {}]   ;;  %s4990_s13 = inlined_call_operand.vmem [shape: f32[1,256], index: 13, kind: input, shape index: {}]   ;;  %s4991_s14 = inlined_call_operand.hbm [shape: f32[256,256], index: 14, kind: input, shape index: {}]   ;;  %s4992_s15 = inlined_call_operand.vmem [shape: f32[1,256], index: 15, kind: input, shape index: {}]   ;;  %s4993_s16 = inlined_call_operand.hbm [shape: f32[256,128], index: 16, kind: input, shape index: {}]   ;;  %s4994_s17 = inlined_call_operand.vmem [shape: f32[1,128], index: 17, kind: input, shape index: {}]   ;;  %s4995_s18 = inlined_call_operand.hbm [shape: f32[64,128], index: 18, kind: output, shape index: {}]  }
   0x1   :  { %5004 = sst [smem:[#allocation24_spill]] %s4977_s0 }
   0x2   :  { %5005 = sst [smem:[#allocation25_spill]] %s4978_s1 }
   0x3   :  { %5006 = sst [smem:[#allocation26_spill]] %s4979_s2 }
   0x4   :  { %5007 = sst [smem:[#allocation27_spill]] %s4980_s3 }
   0x5   :  { %5008 = sst [smem:[#allocation28_spill]] %s4983_s6 }
   0x6   :  { %5009 = sst [smem:[#allocation29_spill]] %s4984_s7 }
   0x7   :  { %5010 = sst [smem:[#allocation30_spill]] %s4987_s10 }
   0x8   :  { %5011 = sst [smem:[#allocation31_spill]] %s4989_s12 }
   0x9   :  { %5012 = sst [smem:[#allocation32_spill]] %s4990_s13 }
   0xa   :  { %5013 = sst [smem:[#allocation33_spill]] %s4991_s14 }
   0xb   :  { %5014 = sst [smem:[#allocation34_spill]] %s4992_s15 }
   0xc   :  { %5015 = sst [smem:[#allocation35_spill]] %s4994_s17 }
   0xd   :  { %5016 = sst [smem:[#allocation36_spill]] %s4995_s18 }
   0xe   :  { %23 = vsyncpa [#allocation3], 0 }
   0xf   :  { %25 = vsyncpa [#allocation3 + $0x1], 0 }
  0x10   :  { %26 = vsyncpa [#allocation6], 0 }
  0x11   :  { %27 = vsyncpa [#allocation9], 0 }
  0x12   :  { %28 = vsyncpa [#allocation12], 0 }
  0x13   :  { %29 = vsyncpa [#allocation15], 0 }
  0x14   :  { %30 = vsyncpa [#allocation4], 0 }
  0x15   :  { %32 = vsyncpa [#allocation4 + $0x1], 0  ;;  %s4207_s27 = smov 0   ;;  %s4209_s28 = smov 0  }
  0x16   :  { %s4211_s29 = smov 0   ;;  %s4213_s30 = smov 0  }
  0x17 LB: > { %s4093_s0 = smov [#allocation5]   ;;  %s4228_s1 = sadd.s32 4294967295, %s4091_s30   ;;  %s4091_s30 = sphi %s4213_s30, %s5056_s30   ;;  %s4087_s29 = sphi %s4211_s29, %s5055_s29   ;;  %s4083_s28 = sphi %s4209_s28, %s5054_s28   ;;  %s4079_s27 = sphi %s4207_s27, %s5053_s27  }
  0x18   : > { %s464_s19 = sshll.u32 %s4093_s0, 4  ;;  %p3351_p0 = scmp.ge.s32.totalorder %s4091_s30, 1  ;;  %s465_s19 = int_to_ptr.vmem [resolvable:$true] %s464_s19 }
  0x19   : > { %p5000_p1 = scmp.eq.s32.totalorder %s4228_s1, 0  ;;  %p452_p2 = scmp.lt.s32.totalorder %s4091_s30, 3 }
  0x1a   : > { %s4094_s21 = smov [#allocation8]   ;;  %s4095_s23 = smov [#allocation11]  }
  0x1b   : > { %p4233_p3 = pnand %p3351_p0, %p452_p2  ;;  %s499_s22 = sshll.u32 %s4094_s21, 4  ;;  %s4246_s22 = int_to_ptr.vmem [resolvable:$true] %s499_s22 }
  0x1c   : > { %s4248_s24 = sshll.u32 %s4095_s23, 4  ;;  %s3786_s26 = scalar_lea.vmem %s465_s19, 2048  ;;  %s532_s24 = int_to_ptr.vmem [resolvable:$true] %s4248_s24 }
  0x1d   : > { %s5017_s20 = scalar_select %p4233_p3, 1, 0 }
  0x1e   : > { %p3595_p5 = pneg %p4233_p3  ;;  %p3787_p8 = scmp.ne.s32.totalorder %s465_s19, %s3786_s26 }
  0x1f   : > { %p3794_p11 = scmp.lt.s32.totalorder %s465_s19, %s465_s19  ;;  %p3795_p12 = scmp.lt.s32.totalorder %s3786_s26, %s3786_s26 }
  0x20   : > { %p4242_p6 = pnand %p3595_p5, %p5000_p1 }
  0x21   : > { %p3796_p13 = por %p3795_p12, %p3794_p11 }
  0x22   : > { %p4252_p7 = pneg %p4242_p6 }
  0x24   : > { %p3789_p9 = pnand %p3787_p8, %p4252_p7 }
  0x26   : > { %p3790_p10 = pneg %p3789_p9 }
  0x28   : > { %p3797_p0 = pnand %p3796_p13, %p3790_p10 }
  0x2a   : > { %3800 = shalt.err (!%p3797_p0)
}
  0x2b   : > { %s4096_s0 = smov 256   ;;  %s4097_s21 = smov 16  }
  0x2c   : > { %s5020_s17 = sld [smem:[#allocation25_spill]]  ;;  %s3812_s15 = scalar_lea.vmem %s4246_s22, 24576 }
  0x2d   : > { %p3813_p2 = scmp.ne.s32.totalorder %s4246_s22, %s3812_s15  ;;  %p3820_p9 = scmp.lt.s32.totalorder %s4246_s22, %s4246_s22 }
  0x2e   : > { %p3821_p10 = scmp.lt.s32.totalorder %s3812_s15, %s3812_s15 }
  0x2f   : > { %p3815_p5 = pnand %p3813_p2, %p4252_p7 }
  0x30   : > { %p3822_p11 = por %p3821_p10, %p3820_p9 }
  0x31   : > { %p3816_p8 = pneg %p3815_p5 }
  0x32   : > { %3598 = dma.hbm_to_vmem [thread:$0]  (!%p4242_p6), %s5020_s17, 2048, %s465_s19, [#allocation6], %s4096_s0, %s4096_s0, %s4097_s21  }
  0x33   : > { %p3823_p12 = pnand %p3822_p11, %p3816_p8 }
  0x35   : > { %3826 = shalt.err (!%p3823_p12)
}
  0x36   : > { %s4098_s26 = smov 768   ;;  %s4099_s13 = smov 48  }
  0x37   : > { %s5021_s6 = sld [smem:[#allocation28_spill]]  ;;  %s3838_s19 = scalar_lea.vmem %s532_s24, 8192 }
  0x38   : > { %p3839_p13 = scmp.ne.s32.totalorder %s532_s24, %s3838_s19  ;;  %p3846_p5 = scmp.lt.s32.totalorder %s532_s24, %s532_s24 }
  0x39   : > { %p3847_p8 = scmp.lt.s32.totalorder %s3838_s19, %s3838_s19 }
  0x3a   : > { %p3841_p0 = pnand %p3839_p13, %p4252_p7 }
  0x3b   : > { %p3848_p9 = por %p3847_p8, %p3846_p5 }
  0x3c   : > { %p3842_p2 = pneg %p3841_p0 }
  0x3d   : > { %3604 = dma.hbm_to_vmem [thread:$0]  (!%p4242_p6), %s5021_s6, 24576, %s4246_s22, [#allocation9], %s4098_s26, %s4098_s26, %s4099_s13  }
  0x3e   : > { %p3849_p10 = pnand %p3848_p9, %p3842_p2 }
  0x40   : > { %3852 = shalt.err (!%p3849_p10)
}
  0x41   : > { %s5022_s10 = sld [smem:[#allocation30_spill]]  ;;  %s4100_s13 = smov [#allocation14]  }
  0x42   : > { %s563_s22 = sshll.u32 %s4100_s13, 4  ;;  %s4101_s26 = smov [#allocation7]   ;;  %s564_s22 = int_to_ptr.vmem [resolvable:$true] %s563_s22 }
  0x43   : > { %s480_s18 = sshll.u32 %s4101_s26, 4  ;;  %s3864_s17 = scalar_lea.vmem %s564_s22, 8192  ;;  %s481_s18 = int_to_ptr.vmem [resolvable:$true] %s480_s18 }
  0x44   : > { %p3865_p11 = scmp.ne.s32.totalorder %s564_s22, %s3864_s17  ;;  %p3872_p0 = scmp.lt.s32.totalorder %s564_s22, %s564_s22 }
  0x45   : > { %p3873_p2 = scmp.lt.s32.totalorder %s3864_s17, %s3864_s17 }
  0x46   : > { %p3867_p12 = pnand %p3865_p11, %p4252_p7 }
  0x47   : > { %3610 = dma.hbm_to_vmem [thread:$0]  (!%p4242_p6), %s5022_s10, 8192, %s532_s24, [#allocation12], %s4096_s0, %s4096_s0, %s4097_s21  }
  0x48   : > { %p3868_p13 = pneg %p3867_p12  ;;  %p3874_p5 = por %p3873_p2, %p3872_p0 }
  0x4a   : > { %p3875_p8 = pnand %p3874_p5, %p3868_p13 }
  0x4c   : > { %3878 = shalt.err (!%p3875_p8)
}
  0x4d   : > { %s5023_s14 = sld [smem:[#allocation33_spill]]  ;;  %s3890_s15 = scalar_lea.vmem %s481_s18, 1024 }
  0x4e   : > { %p3891_p9 = scmp.ne.s32.totalorder %s481_s18, %s3890_s15  ;;  %p3898_p12 = scmp.lt.s32.totalorder %s481_s18, %s481_s18 }
  0x4f   : > { %p3899_p0 = scmp.lt.s32.totalorder %s3890_s15, %s3890_s15 }
  0x50   : > { %p3893_p10 = pnand %p3891_p9, %p4252_p7 }
  0x51   : > { %p3900_p13 = por %p3899_p0, %p3898_p12 }
  0x52   : > { %p3894_p11 = pneg %p3893_p10 }
  0x53   : > { %3616 = dma.hbm_to_vmem [thread:$0]  (!%p4242_p6), %s5023_s14, 8192, %s564_s22, [#allocation15], %s4096_s0, %s4096_s0, %s4097_s21  }
  0x54   : > { %p3901_p2 = pnand %p3900_p13, %p3894_p11 }
  0x56   : > { %3904 = shalt.err (!%p3901_p2)
}
  0x57   : > { %s5024_s3 = sld [smem:[#allocation27_spill]]  ;;  %s4102_s22 = smov [#allocation10]  }
  0x58   : > { %s512_s26 = sshll.u32 %s4102_s22, 4  ;;  %s4103_s17 = smov [#allocation13]   ;;  %s513_s26 = int_to_ptr.vmem [resolvable:$true] %s512_s26 }
  0x59   : > { %s547_s24 = sshll.u32 %s4103_s17, 4  ;;  %s3916_s19 = scalar_lea.vmem %s513_s26, 8192  ;;  %s548_s24 = int_to_ptr.vmem [resolvable:$true] %s547_s24 }
  0x5a   : > { %p3917_p5 = scmp.ne.s32.totalorder %s513_s26, %s3916_s19  ;;  %p3924_p10 = scmp.lt.s32.totalorder %s513_s26, %s513_s26 }
  0x5b   : > { %p3925_p11 = scmp.lt.s32.totalorder %s3916_s19, %s3916_s19 }
  0x5c   : > { %p3919_p8 = pnand %p3917_p5, %p4252_p7 }
  0x5d   : > { %3601 = dma.hbm_to_vmem [thread:$0]  (!%p4242_p6), %s5024_s3, 1024, %s481_s18, [#allocation6], %s4096_s0, %s4096_s0, %s4097_s21  }
  0x5e   : > { %p3920_p9 = pneg %p3919_p8  ;;  %p3926_p12 = por %p3925_p11, %p3924_p10 }
  0x60   : > { %p3927_p0 = pnand %p3926_p12, %p3920_p9 }
  0x62   : > { %3930 = shalt.err (!%p3927_p0)
}
  0x63   : > { %s5025_s7 = sld [smem:[#allocation29_spill]]  ;;  %s3942_s23 = scalar_lea.vmem %s548_s24, 8192 }
  0x64   : > { %p3943_p13 = scmp.ne.s32.totalorder %s548_s24, %s3942_s23  ;;  %p3950_p8 = scmp.lt.s32.totalorder %s548_s24, %s548_s24 }
  0x65   : > { %p3951_p10 = scmp.lt.s32.totalorder %s3942_s23, %s3942_s23 }
  0x66   : > { %p3945_p2 = pnand %p3943_p13, %p4252_p7 }
  0x67   : > { %p3952_p9 = por %p3951_p10, %p3950_p8 }
  0x68   : > { %p3946_p5 = pneg %p3945_p2 }
  0x69   : > { %3607 = dma.hbm_to_vmem [thread:$0]  (!%p4242_p6), %s5025_s7, 8192, %s513_s26, [#allocation9], %s4096_s0, %s4096_s0, %s4097_s21  }
  0x6a   : > { %p3953_p11 = pnand %p3952_p9, %p3946_p5 }
  0x6c   : > { %3956 = shalt.err (!%p3953_p11)
}
  0x6d   : > { %s5026_s12 = sld [smem:[#allocation31_spill]]  ;;  %s4104_s26 = smov [#allocation16]  }
  0x6e   : > { %s579_s17 = sshll.u32 %s4104_s26, 4  ;;  %s580_s17 = int_to_ptr.vmem [resolvable:$true] %s579_s17 }
  0x6f   : > { %s3968_s19 = scalar_lea.vmem %s580_s17, 4096  ;;  %p3976_p2 = scmp.lt.s32.totalorder %s580_s17, %s580_s17 }
  0x70   : > { %p3969_p12 = scmp.ne.s32.totalorder %s580_s17, %s3968_s19  ;;  %p3977_p5 = scmp.lt.s32.totalorder %s3968_s19, %s3968_s19 }
  0x72   : > { %p3971_p0 = pnand %p3969_p12, %p4252_p7  ;;  %p3978_p8 = por %p3977_p5, %p3976_p2 }
  0x73   : > { %3613 = dma.hbm_to_vmem [thread:$0]  (!%p4242_p6), %s5026_s12, 8192, %s548_s24, [#allocation12], %s4096_s0, %s4096_s0, %s4097_s21  }
  0x74   : > { %p3972_p13 = pneg %p3971_p0 }
  0x76   : > { %p3979_p10 = pnand %p3978_p8, %p3972_p13 }
  0x78   : > { %3982 = shalt.err (!%p3979_p10)
}
  0x79   : > { %s4998_s18 = smov 128   ;;  %s4999_s25 = smov 8  }
  0x7a   : > { %3619 = dma.hbm_to_vmem [thread:$0]  (!%p4242_p6), %s4993_s16, 4096, %s580_s17, [#allocation15], %s4998_s18, %s4998_s18, %s4999_s25  }
  0x7b   : > { %s3350_s24 = sadd.s32 4294967294, %s4091_s30   ;;  %s4341_s15 = sadd.s32 1, %s4091_s30  }
  0x7c   : > { %s42_s23 = ssub.s32 %s4091_s30, %s4341_s15  ;;  %s45_s13 = sadd.s32 1, %s4087_s29 }
  0x7d   : > { %p43_p7 = scmp.eq.s32.totalorder %s42_s23, 0  ;;  %p52_p9 = scmp.ne.s32.totalorder %s4087_s29, %s4083_s28 }
  0x7e   : > { %p53_p11 = scmp.eq.s32.totalorder %s4091_s30, 0  ;;  %p58_p12 = scmp.ne.s32.totalorder %s4083_s28, %s4079_s27 }
  0x7f   : > { %s4352_s2 = scalar_select %p43_p7, %s4087_s29, %s45_s13  }
  0x80   : > { %p4354_p0 = por %p53_p11, %p52_p9  ;;  %p4360_p6 = por %p5000_p1, %p58_p12 }
  0x81   : > { %p439_p13 = scmp.eq.s32.totalorder %s4228_s1, 1  ;;  %p445_p2 = scmp.eq.s32.totalorder %s3350_s24, 1 }
  0x82   : > { %s5028_s26 = scalar_select %p4360_p6, 1, 0 }
  0x83   : > { %p3636_p5 = scmp.lt.s32.totalorder %s4091_s30, 2  ;;  %s596_s17 = sand.u32 1, %s4087_s29  }
  0x84   : > { %p4367_p8 = por %p439_p13, %p52_p9  ;;  %p4371_p10 = por %p445_p2, %p58_p12 }
  0x85   : > { %s3361_s21 = sshll.u32 %s596_s17, 5  ;;  %s3393_s23 = sshll.u32 %s4091_s30, 9 }
  0x86   : > { %s5029_s19 = scalar_select %p4367_p8, 1, 0 }
  0x87   : > { %s5030_s0 = scalar_select %p4371_p10, 1, 0 }
  0x88   : > { %s5031_s25 = sld [smem:[#allocation24_spill]]  ;;  %s600_s24 = scalar_lea.vmem [#allocation2], %s3361_s21 }
  0x89   : > { %s607_s6 = sshll.u32 %s600_s24, 4  ;;  %p4385_p7 = pnand %p3636_p5, %p4354_p0  ;;  %s4381_s6 = int_to_ptr.vmem [resolvable:$true] %s607_s6 }
  0x8a   : > { %s4389_s10 = scalar_lea.sflag [#allocation3], %s596_s17 }
  0x8b   : > { %p3985_p11 = pneg %p4385_p7 }
  0x8e   : > { %s4379_s3 = scalar_lea.hbm %s5031_s25, %s3393_s23  ;;  %s3988_s21 = scalar_lea.hbm %s5031_s25, 1024 }
  0x8f   : > { %s3983_s12 = scalar_lea.hbm %s4379_s3, 512  ;;  %p3989_p0 = scmp.lt.s32.totalorder %s4379_s3, %s5031_s25 }
  0x90   : > { %p3984_p9 = scmp.ne.s32.totalorder %s4379_s3, %s3983_s12  ;;  %p3990_p2 = scmp.lt.s32.totalorder %s3988_s21, %s3983_s12 }
  0x92   : > { %p3986_p12 = pnand %p3985_p11, %p3984_p9  ;;  %p3991_p5 = por %p3990_p2, %p3989_p0 }
  0x94   : > { %p3987_p13 = pneg %p3986_p12 }
  0x96   : > { %p3992_p4 = pnand %p3991_p5, %p3987_p13 }
  0x98   : > { %3995 = shalt.err (!%p3992_p4)
}
  0x99   : > { %s3996_s22 = scalar_lea.vmem %s4381_s6, 512  ;;  %s4107_s17 = smov [#allocation2]  }
  0x9a   : > { %p3997_p1 = scmp.ne.s32.totalorder %s4381_s6, %s3996_s22  ;;  %s4001_s14 = sshll.u32 %s4107_s17, 4  ;;  %s4002_s14 = int_to_ptr.vmem [resolvable:$false] %s4001_s14 }
  0x9b   : > { %s4003_s18 = scalar_lea.vmem %s4002_s14, 1024  ;;  %p4004_p12 = scmp.lt.s32.totalorder %s4381_s6, %s4002_s14 }
  0x9c   : > { %p3999_p10 = pnand %p3997_p1, %p3985_p11  ;;  %p4005_p8 = scmp.lt.s32.totalorder %s4003_s18, %s3996_s22 }
  0x9e   : > { %p4000_p9 = pneg %p3999_p10  ;;  %p4006_p6 = por %p4005_p8, %p4004_p12 }
  0xa0   : > { %p4007_p3 = pnand %p4006_p6, %p4000_p9 }
  0xa2   : > { %4010 = shalt.err (!%p4007_p3)
}
  0xa3   : > { %s5033_s12 = smov 8   ;;  %s5034_s23 = smov 128  }
  0xa4   : > { %3623 = dma.hbm_to_vmem [thread:$0]  (!%p4385_p7), %s4379_s3, 512, %s4381_s6, %s4389_s10, %s5034_s23, %s5034_s23, %s5033_s12  }
  0xa5   : > { %p5035_p1 = scmp.ne.s32.totalorder %s5017_s20, 0 }
  0xa6   : > { %s4416_s21 = sand.u32 (!%p5035_p1), 1, %s4083_s28   ;;  %p5036_p3 = scmp.ne.s32.totalorder (!%p5035_p1), %s5028_s26, 0 }
  0xa7   : > { %619 = sbr.rel (%p5035_p1) target bundleno = 3027 (0xbd3), region = 92  ;;  %s3365_s14 = sshll.u32 (!%p5035_p1), %s4416_s21, 5 }
  0xa8   : > { %s622_s13 = scalar_lea.sflag (!%p5035_p1), [#allocation3], %s4416_s21  ;;  %s4422_s7 = scalar_lea.vmem (!%p5035_p1), [#allocation2], %s3365_s14 }
  0xac   : > { %4054 = dma.done.wait (%p5036_p3), %s622_s13, 512  }
  0xad   : > { %4056 = vsyncadd (%p5036_p3), %s622_s13, 4294966784  ;;  %p5037_p4 = scmp.eq.s32.totalorder %s4228_s1, 0 }
  0xaf   : > { %4058 = dma.done.wait (%p5037_p4), [#allocation6], 3072   ;;  %p5038_p6 = pmov %p5037_p4 }
  0xb0   : > { %p5039_p8 = pmov %p5037_p4 }
  0xb1   : > { %4060 = vsyncadd (%p5038_p6), [#allocation6], 4294964224 }
  0xb2   : > { %4062 = dma.done.wait (%p5039_p8), [#allocation9], 32768   ;;  %p5040_p10 = pmov %p5037_p4 }
  0xb3   : > { %p5041_p7 = pmov %p5037_p4 }
  0xb4   : > { %4064 = vsyncadd (%p5040_p10), [#allocation9], 4294934528 }
  0xb5   : > { %4066 = dma.done.wait (%p5041_p7), [#allocation12], 16384   ;;  %p5042_p11 = pmov %p5037_p4 }
  0xb6   : > { %p5043_p13 = pmov %p5037_p4 }
  0xb7   : > { %4068 = vsyncadd (%p5042_p11), [#allocation12], 4294950912 }
  0xb8   : > { %4070 = dma.done.wait (%p5043_p13), [#allocation15], 12288   ;;  %p5044_p0 = pmov %p5037_p4 }
  0xb9   : > { %v4108_v0 = vmov 0.0   ;;  %v731_v1 = vld [vmem:[#allocation5 + $0x78] sm:$0xff]  ;;  %v730_v2 = vld [vmem:[#allocation5 + $0x70] sm:$0xff]  ;;  %v729_v3 = vld [vmem:[#allocation5 + $0x68] sm:$0xff]  ;;  %vm744_vm0 = vcmask 523264   ;;  %v734_v21 = vlaneseq  ;;  %s5045_s10 = sld [smem:[#allocation26_spill]] }
  0xba   : > { %4072 = vsyncadd (%p5044_p0), [#allocation15], 4294955008  ;;  %821 = vmatprep.mubr.f32.mxu0 %v4108_v0  ;;  %773 = vmatprep.subr.mxu0 %v731_v1  ;;  %v728_v4 = vld [vmem:[#allocation5 + $0x60] sm:$0xff]  ;;  %v727_v5 = vld [vmem:[#allocation5 + $0x58] sm:$0xff]  ;;  %vm1734_vm1 = vcmask 130048   ;;  %s5047_s24 = sld [smem:[#allocation34_spill]] }
  0xbb   : > { %774 = vmatpush1.msra.mxu0 %v730_v2  ;;  %v726_v6 = vld [vmem:[#allocation5 + $0x50] sm:$0xff]  ;;  %v725_v7 = vld [vmem:[#allocation5 + $0x48] sm:$0xff]  ;;  %v724_v8 = vld [vmem:[#allocation5 + $0x40] sm:$0xff]  ;;  %v735_v22 = vshrl.u32 %v734_v21, 7  ;;  %s5048_s18 = sld [smem:[#allocation35_spill]]  ;;  %s709_s12 = scalar_lea.vmem [#allocation17], %s3365_s14 }
  0xbc   : > { %775 = vmatprep.subr.mxu0 %v729_v3  ;;  %v723_v9 = vld [vmem:[#allocation5 + $0x38] sm:$0xff]  ;;  %v722_v10 = vld [vmem:[#allocation5 + $0x30] sm:$0xff]  ;;  %v721_v11 = vld [vmem:[#allocation5 + $0x28] sm:$0xff]  ;;  %s3201_s23 = sshll.u32 %s709_s12, 4  ;;  %s3394_s13 = sshll.u32 %s4228_s1, 9  ;;  %s4929_s23 = int_to_ptr.vmem [resolvable:$true] %s3201_s23 }
  0xbd   : > { %776 = vmatpush1.msra.mxu0 %v728_v4  ;;  %v720_v12 = vld [vmem:[#allocation5 + $0x20] sm:$0xff]  ;;  %v719_v13 = vld [vmem:[#allocation5 + $0x18] sm:$0xff]  ;;  %v718_v14 = vld [vmem:[#allocation5 + $0x10] sm:$0xff]  ;;  %v4448_v23 = vsub.s32 0, %v735_v22  ;;  %v4453_v25 = vsub.s32 1, %v735_v22  ;;  %s5049_s3 = sld [smem:[#allocation36_spill]] }
  0xbe   : > { %777 = vmatprep.subr.mxu0 %v727_v5  ;;  %v717_v15 = vld [vmem:[#allocation5 + $0x8] sm:$0xff]  ;;  %v716_v16 = vld [vmem:[#allocation5] sm:$0xff]  ;;  %v714_v19 = vld [vmem:[%s4422_s7 + $0x10] sm:$0xff]  ;;  %s4011_s20 = scalar_lea.vmem %s4929_s23, 512  ;;  %p5050_p5 = scmp.ne.s32.totalorder %s5029_s19, 0 }
  0xbf   : > { %778 = vmatpush1.msra.mxu0 %v726_v6  ;;  %v712_v17 = vld [vmem:[%s4422_s7] sm:$0xff]  ;;  %v713_v18 = vld [vmem:[%s4422_s7 + $0x8] sm:$0xff]  ;;  %v715_v20 = vld [vmem:[%s4422_s7 + $0x18] sm:$0xff]  ;;  %p4012_p2 = scmp.ne.s32.totalorder %s4929_s23, %s4011_s20  ;;  %s4109_s1 = smov [#allocation17]  }
  0xc0   : > { %779 = vmatprep.subr.mxu0 %v725_v7  ;;  %v732_v24 = vld [vmem:[%s5045_s10] sm:$0x3]  ;;  %v847_v32 = vld [vmem:[#allocation7 + $0x8] sm:$0xff]  ;;  %v848_v38 = vld [vmem:[#allocation7 + $0x10] sm:$0xff]  ;;  %s5046_s10 = sld [smem:[#allocation32_spill]]  ;;  %s4015_s26 = sshll.u32 %s4109_s1, 4  ;;  %s4016_s26 = int_to_ptr.vmem [resolvable:$false] %s4015_s26 }
  0xc1   : > { %780 = vmatpush1.msra.mxu0 %v724_v8  ;;  %v737_v26 = vrot.slane %v732_v24, %v4448_v23  ;;  %v741_v27 = vrot.slane %v732_v24, %v4453_v25  ;;  %v846_v30 = vld [vmem:[#allocation7] sm:$0xff]  ;;  %v849_v40 = vld [vmem:[#allocation7 + $0x18] sm:$0xff]  ;;  %v851_v49 = vld [vmem:[#allocation7 + $0x28] sm:$0xff]  ;;  %p4013_p9 = pnand %p4012_p2, %p5050_p5  ;;  %p4018_p1 = scmp.lt.s32.totalorder %s4929_s23, %s4016_s26 }
  0xc2   : > { %781 = vmatprep.subr.mxu0 %v723_v9  ;;  %v850_v47 = vld [vmem:[#allocation7 + $0x20] sm:$0xff]  ;;  %v852_v56 = vld [vmem:[#allocation7 + $0x30] sm:$0xff]  ;;  %v853_v58 = vld [vmem:[#allocation7 + $0x38] sm:$0xff] }
  0xc3   : > { %782 = vmatpush1.msra.mxu0 %v722_v10  ;;  %v1057_v1 = vld [vmem:[#allocation8 + $0x2d0] sm:$0xff]  ;;  %v1060_v2 = vld [vmem:[#allocation8 + $0x2e8] sm:$0xff]  ;;  %v1059_v4 = vld [vmem:[#allocation8 + $0x2e0] sm:$0xff]  ;;  %s4934_s6 = scalar_lea.hbm %s5049_s3, %s3394_s13  ;;  %p4014_p12 = pneg %p4013_p9 }
  0xc4   : > { %783 = vmatprep.subr.mxu0 %v721_v11  ;;  %v1052_v3 = vld [vmem:[#allocation8 + $0x2a8] sm:$0xff]  ;;  %v1051_v5 = vld [vmem:[#allocation8 + $0x2a0] sm:$0xff]  ;;  %v1054_v6 = vld [vmem:[#allocation8 + $0x2b8] sm:$0xff] }
  0xc5   : > { %784 = vmatpush1.msra.mxu0 %v720_v12  ;;  %v1046_v7 = vld [vmem:[#allocation8 + $0x278] sm:$0xff]  ;;  %v1053_v8 = vld [vmem:[#allocation8 + $0x2b0] sm:$0xff]  ;;  %v1048_v10 = vld [vmem:[#allocation8 + $0x288] sm:$0xff] }
  0xc6   : > { %785 = vmatprep.subr.mxu0 %v719_v13  ;;  %v1045_v9 = vld [vmem:[#allocation8 + $0x270] sm:$0xff]  ;;  %v1040_v11 = vld [vmem:[#allocation8 + $0x248] sm:$0xff]  ;;  %v1047_v12 = vld [vmem:[#allocation8 + $0x280] sm:$0xff] }
  0xc7   : > { %786 = vmatpush1.msra.mxu0 %v718_v14  ;;  %v1042_v13 = vld [vmem:[#allocation8 + $0x258] sm:$0xff]  ;;  %v1039_v14 = vld [vmem:[#allocation8 + $0x240] sm:$0xff]  ;;  %v1029_v24 = vld [vmem:[#allocation8 + $0x1f0] sm:$0xff] }
  0xc8   : > { %787 = vmatprep.subr.mxu0 %v717_v15  ;;  %v1041_v15 = vld [vmem:[#allocation8 + $0x250] sm:$0xff]  ;;  %v1030_v21 = vld [vmem:[#allocation8 + $0x1f8] sm:$0xff]  ;;  %v1027_v22 = vld [vmem:[#allocation8 + $0x1e0] sm:$0xff] }
  0xc9   : > { %788 = vmatpush1.msra.mxu0 %v716_v16  ;;  %v1034_v16 = vld [vmem:[#allocation8 + $0x218] sm:$0xff] }
  0xca   : > { %3375 = vmatmul.mubr.msk.f32.vlgmr.msra.gmra.mxu0 %vm744_vm0, %v712_v17  ;;  %1248 = vmatprep.subr.mxu0 %v1060_v2  ;;  %v1036_v17 = vld [vmem:[#allocation8 + $0x228] sm:$0xff]  ;;  %v974_v2 = vld [vmem:[#allocation8 + $0x38] sm:$0xff] }
  0xcb   : > { %827 = vmatprep.mubr.f32.mxu0 %v4108_v0  ;;  %1249 = vmatpush1.msra.mxu0 %v1059_v4  ;;  %v973_v4 = vld [vmem:[#allocation8 + $0x30] sm:$0xff] }
  0xcc   : > { %1250 = vmatprep.subr.mxu0 %v1054_v6  ;;  %v968_v6 = vld [vmem:[#allocation8 + $0x8] sm:$0xff] }
  0xcd   : > { %1251 = vmatpush1.msra.mxu0 %v1053_v8  ;;  %v967_v8 = vld [vmem:[#allocation8] sm:$0xff] }
  0xce   : > { %3376 = vmatmul.mubr.msk.f32.gmra.mxu0 %vm744_vm0, %v713_v18  ;;  %1252 = vmatprep.subr.mxu0 %v1048_v10  ;;  %v1033_v18 = vld [vmem:[#allocation8 + $0x210] sm:$0xff]  ;;  %v1154_v10 = vld [vmem:[#allocation8 + $0x5d8] sm:$0xff] }
  0xcf   : > { %833 = vmatprep.mubr.f32.mxu0 %v4108_v0  ;;  %1253 = vmatpush1.msra.mxu0 %v1047_v12  ;;  %v1153_v12 = vld [vmem:[#allocation8 + $0x5d0] sm:$0xff] }
  0xd0   : > { %1254 = vmatprep.subr.mxu0 %v1042_v13  ;;  %v1155_v13 = vld [vmem:[#allocation8 + $0x5e0] sm:$0xff] }
  0xd1   : > { %1255 = vmatpush1.msra.mxu0 %v1041_v15  ;;  %v1150_v15 = vld [vmem:[#allocation8 + $0x5b8] sm:$0xff] }
  0xd2   : > { %3377 = vmatmul.mubr.msk.f32.gmra.mxu0 %vm744_vm0, %v714_v19  ;;  %v1035_v19 = vld [vmem:[#allocation8 + $0x220] sm:$0xff]  ;;  %1256 = vmatprep.subr.mxu0 %v1036_v17  ;;  %v1149_v17 = vld [vmem:[#allocation8 + $0x5b0] sm:$0xff] }
  0xd3   : > { %839 = vmatprep.mubr.f32.mxu0 %v4108_v0  ;;  %v1058_v0 = vld [vmem:[#allocation8 + $0x2d8] sm:$0xff]  ;;  %1257 = vmatpush1.msra.mxu0 %v1035_v19  ;;  %v1144_v19 = vld [vmem:[#allocation8 + $0x588] sm:$0xff] }
  0xd4   : > { %1159 = vmatprep.subr.mxu1 %v1058_v0  ;;  %1258 = vmatprep.subr.mxu0 %v1030_v21  ;;  %v979_v0 = vld [vmem:[#allocation8 + $0x60] sm:$0xff] }
  0xd5   : > { %1160 = vmatpush1.msra.mxu1 %v1057_v1  ;;  %1259 = vmatpush1.msra.mxu0 %v1029_v24  ;;  %v981_v1 = vld [vmem:[#allocation8 + $0x70] sm:$0xff]  ;;  %v1143_v21 = vld [vmem:[#allocation8 + $0x580] sm:$0xff]  ;;  %v1138_v24 = vld [vmem:[#allocation8 + $0x558] sm:$0xff] }
  0xd6   : > { %3378 = vmatmul.mubr.msk.f32.gmra.mxu0 %vm744_vm0, %v715_v20  ;;  %1161 = vmatprep.subr.mxu1 %v1052_v3  ;;  %v1028_v20 = vld [vmem:[#allocation8 + $0x1e8] sm:$0xff] }
  0xd7   : > { %1162 = vmatpush1.msra.mxu1 %v1051_v5  ;;  %v976_v3 = vld [vmem:[#allocation8 + $0x48] sm:$0xff]  ;;  %v975_v5 = vld [vmem:[#allocation8 + $0x40] sm:$0xff] }
  0xd8   : > { %1163 = vmatprep.subr.mxu1 %v1046_v7  ;;  %v970_v7 = vld [vmem:[#allocation8 + $0x18] sm:$0xff] }
  0xd9   : > { %1164 = vmatpush1.msra.mxu1 %v1045_v9  ;;  %v969_v9 = vld [vmem:[#allocation8 + $0x10] sm:$0xff] }
  0xda   : > { %1165 = vmatprep.subr.mxu1 %v1040_v11  ;;  %v1156_v11 = vld [vmem:[#allocation8 + $0x5e8] sm:$0xff] }
  0xdb   : > { %1166 = vmatpush1.msra.mxu1 %v1039_v14  ;;  %v1148_v14 = vld [vmem:[#allocation8 + $0x5a8] sm:$0xff] }
  0xdc   : > { %1167 = vmatprep.subr.mxu1 %v1034_v16  ;;  %v1147_v16 = vld [vmem:[#allocation8 + $0x5a0] sm:$0xff] }
  0xdd   : > { %1168 = vmatpush1.msra.mxu1 %v1033_v18  ;;  %v1142_v18 = vld [vmem:[#allocation8 + $0x578] sm:$0xff] }
  0xde   : > { %1169 = vmatprep.subr.mxu1 %v1028_v20  ;;  %v1141_v20 = vld [vmem:[#allocation8 + $0x570] sm:$0xff] }
  0xdf   : > { %1170 = vmatpush1.msra.mxu1 %v1027_v22  ;;  %v1136_v22 = vld [vmem:[#allocation8 + $0x548] sm:$0xff] }
 0x18a   : > { %v823_v28 = vpop.f32.mrf.mxu0 }
 0x18b   : > { %v824_v29 = vadd.f32 %v823_v28, %v737_v26  ;;  %v1021_v28 = vld [vmem:[#allocation8 + $0x1b0] sm:$0xff] }
 0x18c   : > { %v825_v31 = vpop.f32.mrf.mxu0 }
 0x18d   : > { %v826_v33 = vadd.f32 %v825_v31, %v741_v27  ;;  %v4457_v35 = vadd.f32 %v846_v30, %v824_v29  ;;  %v1023_v29 = vld [vmem:[#allocation8 + $0x1c0] sm:$0xff]  ;;  %v1016_v30 = vld [vmem:[#allocation8 + $0x188] sm:$0xff]  ;;  %v1018_v31 = vld [vmem:[#allocation8 + $0x198] sm:$0xff] }
 0x18e   : > { %v829_v34 = vpop.f32.mrf.mxu0 }
 0x18f   : > { %v4459_v36 = vadd.f32 %v847_v32, %v826_v33  ;;  %v830_v37 = vadd.f32 %v829_v34, %v737_v26  ;;  %v1015_v32 = vld [vmem:[#allocation8 + $0x180] sm:$0xff]  ;;  %v1017_v33 = vld [vmem:[#allocation8 + $0x190] sm:$0xff]  ;;  %v1010_v34 = vld [vmem:[#allocation8 + $0x158] sm:$0xff] }
 0x190   : > { %v831_v39 = vpop.f32.mrf.mxu0 }
 0x191   : > { %v832_v41 = vadd.f32 %v831_v39, %v741_v27  ;;  %v864_v42 = vadd.f32 %v4459_v36, %v4457_v35  ;;  %v4463_v44 = vadd.f32 %v848_v38, %v830_v37  ;;  %v1012_v37 = vld [vmem:[#allocation8 + $0x168] sm:$0xff]  ;;  %v1009_v38 = vld [vmem:[#allocation8 + $0x150] sm:$0xff]  ;;  %v1011_v39 = vld [vmem:[#allocation8 + $0x160] sm:$0xff] }
 0x192   : > { %v835_v43 = vpop.f32.mrf.mxu0 }
 0x193   : > { %v4465_v45 = vadd.f32 %v849_v40, %v832_v41  ;;  %v836_v46 = vadd.f32 %v835_v43, %v737_v26  ;;  %865 = vadd.xlane.f32.xlu0 %v864_v42  ;;  %v1004_v40 = vld [vmem:[#allocation8 + $0x128] sm:$0xff]  ;;  %v1006_v41 = vld [vmem:[#allocation8 + $0x138] sm:$0xff]  ;;  %v1003_v42 = vld [vmem:[#allocation8 + $0x120] sm:$0xff] }
 0x194   : > { %v837_v48 = vpop.f32.mrf.mxu0  ;;  %v1005_v43 = vld [vmem:[#allocation8 + $0x130] sm:$0xff] }
 0x195   : > { %v838_v50 = vadd.f32 %v837_v48, %v741_v27  ;;  %v867_v51 = vadd.f32 %v4465_v45, %v4463_v44  ;;  %v4469_v53 = vadd.f32 %v850_v47, %v836_v46  ;;  %v998_v46 = vld [vmem:[#allocation8 + $0xf8] sm:$0xff]  ;;  %v1000_v47 = vld [vmem:[#allocation8 + $0x108] sm:$0xff]  ;;  %v997_v48 = vld [vmem:[#allocation8 + $0xf0] sm:$0xff] }
 0x196   : > { %v841_v52 = vpop.f32.mrf.mxu0 }
 0x197   : > { %v4471_v54 = vadd.f32 %v851_v49, %v838_v50  ;;  %v842_v55 = vadd.f32 %v841_v52, %v737_v26  ;;  %868 = vadd.xlane.f32.xlu0 %v867_v51  ;;  %v1022_v26 = vld [vmem:[#allocation8 + $0x1b8] sm:$0xff]  ;;  %v999_v49 = vld [vmem:[#allocation8 + $0x100] sm:$0xff]  ;;  %v992_v50 = vld [vmem:[#allocation8 + $0xc8] sm:$0xff] }
 0x198   : > { %v843_v57 = vpop.f32.mrf.mxu0  ;;  %1171 = vmatprep.subr.mxu1 %v1022_v26  ;;  %v994_v51 = vld [vmem:[#allocation8 + $0xd8] sm:$0xff]  ;;  %v991_v52 = vld [vmem:[#allocation8 + $0xc0] sm:$0xff] }
 0x199   : > { %v844_v59 = vadd.f32 %v843_v57, %v741_v27  ;;  %v870_v60 = vadd.f32 %v4471_v54, %v4469_v53  ;;  %v4475_v61 = vadd.f32 %v852_v56, %v842_v55  ;;  %v1024_v27 = vld [vmem:[#allocation8 + $0x1c8] sm:$0xff]  ;;  %1172 = vmatpush1.msra.mxu1 %v1021_v28  ;;  %v993_v55 = vld [vmem:[#allocation8 + $0xd0] sm:$0xff]  ;;  %v986_v56 = vld [vmem:[#allocation8 + $0x98] sm:$0xff] }
 0x19a   : > { %1260 = vmatprep.subr.mxu0 %v1024_v27  ;;  %1173 = vmatprep.subr.mxu1 %v1016_v30  ;;  %v988_v57 = vld [vmem:[#allocation8 + $0xa8] sm:$0xff]  ;;  %v1135_v26 = vld [vmem:[#allocation8 + $0x540] sm:$0xff] }
 0x19b   : > { %v4477_v62 = vadd.f32 %v853_v58, %v844_v59  ;;  %871 = vadd.xlane.f32.xlu1 %v870_v60  ;;  %1261 = vmatpush1.msra.mxu0 %v1023_v29  ;;  %v985_v58 = vld [vmem:[#allocation8 + $0x90] sm:$0xff]  ;;  %v987_v59 = vld [vmem:[#allocation8 + $0xa0] sm:$0xff]  ;;  %v980_v60 = vld [vmem:[#allocation8 + $0x68] sm:$0xff] }
 0x19c   : > { %1262 = vmatprep.subr.mxu0 %v1018_v31  ;;  %1174 = vmatpush1.msra.mxu1 %v1015_v32 }
 0x19d   : > { %v873_v63 = vadd.f32 %v4477_v62, %v4475_v61  ;;  %1263 = vmatpush1.msra.mxu0 %v1017_v33  ;;  %1175 = vmatprep.subr.mxu1 %v1010_v34 }
 0x19e   : > { %1264 = vmatprep.subr.mxu0 %v1012_v37  ;;  %1176 = vmatpush1.msra.mxu1 %v1009_v38 }
 0x19f   : > { %874 = vadd.xlane.f32.xlu1 %v873_v63  ;;  %1265 = vmatpush1.msra.mxu0 %v1011_v39  ;;  %v982_v63 = vld [vmem:[#allocation8 + $0x78] sm:$0xff] }
 0x1a0   : > { %1177 = vmatprep.subr.mxu1 %v1004_v40  ;;  %1266 = vmatprep.subr.mxu0 %v1006_v41 }
 0x1a1   : > { %1178 = vmatpush1.msra.mxu1 %v1003_v42  ;;  %1267 = vmatpush1.msra.mxu0 %v1005_v43 }
 0x1a2   : > { %1179 = vmatprep.subr.mxu1 %v998_v46  ;;  %1268 = vmatprep.subr.mxu0 %v1000_v47 }
 0x1a3   : > { %1180 = vmatpush1.msra.mxu1 %v997_v48  ;;  %1269 = vmatpush1.msra.mxu0 %v999_v49 }
 0x1a4   : > { %1181 = vmatprep.subr.mxu1 %v992_v50  ;;  %1270 = vmatprep.subr.mxu0 %v994_v51 }
 0x1a5   : > { %1182 = vmatpush1.msra.mxu1 %v991_v52  ;;  %1271 = vmatpush1.msra.mxu0 %v993_v55 }
 0x1a6   : > { %1183 = vmatprep.subr.mxu1 %v986_v56  ;;  %1272 = vmatprep.subr.mxu0 %v988_v57 }
 0x1a7   : > { %1184 = vmatpush1.msra.mxu1 %v985_v58  ;;  %1273 = vmatpush1.msra.mxu0 %v987_v59 }
 0x1a8   : > { %1185 = vmatprep.subr.mxu1 %v980_v60  ;;  %1274 = vmatprep.subr.mxu0 %v982_v63  ;;  %v1130_v60 = vld [vmem:[#allocation8 + $0x518] sm:$0xff]  ;;  %v1137_v63 = vld [vmem:[#allocation8 + $0x550] sm:$0xff] }
 0x1a9   : > { %1186 = vmatpush1.msra.mxu1 %v979_v0  ;;  %1275 = vmatpush1.msra.mxu0 %v981_v1  ;;  %v1129_v1 = vld [vmem:[#allocation8 + $0x510] sm:$0xff] }
 0x1aa   : > { %1187 = vmatprep.subr.mxu1 %v974_v2  ;;  %1276 = vmatprep.subr.mxu0 %v976_v3  ;;  %v1132_v2 = vld [vmem:[#allocation8 + $0x528] sm:$0xff] }
 0x1ab   : > { %1188 = vmatpush1.msra.mxu1 %v973_v4  ;;  %1277 = vmatpush1.msra.mxu0 %v975_v5  ;;  %v1124_v3 = vld [vmem:[#allocation8 + $0x4e8] sm:$0xff]  ;;  %v1131_v4 = vld [vmem:[#allocation8 + $0x520] sm:$0xff] }
 0x1ac   : > { %1189 = vmatprep.subr.mxu1 %v968_v6  ;;  %1278 = vmatprep.subr.mxu0 %v970_v7  ;;  %v1123_v5 = vld [vmem:[#allocation8 + $0x4e0] sm:$0xff]  ;;  %v1126_v6 = vld [vmem:[#allocation8 + $0x4f8] sm:$0xff] }
 0x1ad   : > { %1190 = vmatpush1.msra.mxu1 %v967_v8  ;;  %1279 = vmatpush1.msra.mxu0 %v969_v9  ;;  %v1118_v7 = vld [vmem:[#allocation8 + $0x4b8] sm:$0xff]  ;;  %v1125_v8 = vld [vmem:[#allocation8 + $0x4f0] sm:$0xff] }
 0x1ae   : > { %1191 = vmatprep.subr.mxu1 %v1154_v10  ;;  %1280 = vmatprep.subr.mxu0 %v1156_v11  ;;  %v1117_v9 = vld [vmem:[#allocation8 + $0x4b0] sm:$0xff]  ;;  %v1120_v10 = vld [vmem:[#allocation8 + $0x4c8] sm:$0xff] }
 0x1af   : > { %1192 = vmatpush2.msra.mxu1 %v1153_v12  ;;  %1281 = vmatpush2.msra.mxu0 %v1155_v13  ;;  %v1112_v11 = vld [vmem:[#allocation8 + $0x488] sm:$0xff]  ;;  %v1119_v12 = vld [vmem:[#allocation8 + $0x4c0] sm:$0xff] }
 0x1b0   : > { %1193 = vmatprep.subr.mxu1 %v1148_v14  ;;  %1282 = vmatprep.subr.mxu0 %v1150_v15  ;;  %v1111_v13 = vld [vmem:[#allocation8 + $0x480] sm:$0xff]  ;;  %v1114_v14 = vld [vmem:[#allocation8 + $0x498] sm:$0xff] }
 0x1b1   : > { %1194 = vmatpush2.msra.mxu1 %v1147_v16  ;;  %1283 = vmatpush2.msra.mxu0 %v1149_v17  ;;  %v1106_v15 = vld [vmem:[#allocation8 + $0x458] sm:$0xff]  ;;  %v1113_v16 = vld [vmem:[#allocation8 + $0x490] sm:$0xff] }
 0x1b2   : > { %1195 = vmatprep.subr.mxu1 %v1142_v18  ;;  %1284 = vmatprep.subr.mxu0 %v1144_v19  ;;  %v1105_v17 = vld [vmem:[#allocation8 + $0x450] sm:$0xff]  ;;  %v1108_v18 = vld [vmem:[#allocation8 + $0x468] sm:$0xff] }
 0x1b3   : > { %1196 = vmatpush2.msra.mxu1 %v1141_v20  ;;  %1285 = vmatpush2.msra.mxu0 %v1143_v21  ;;  %v1100_v19 = vld [vmem:[#allocation8 + $0x428] sm:$0xff]  ;;  %v1107_v20 = vld [vmem:[#allocation8 + $0x460] sm:$0xff] }
 0x1b4   : > { %1197 = vmatprep.subr.mxu1 %v1136_v22  ;;  %1286 = vmatprep.subr.mxu0 %v1138_v24  ;;  %v1099_v21 = vld [vmem:[#allocation8 + $0x420] sm:$0xff]  ;;  %v1102_v22 = vld [vmem:[#allocation8 + $0x438] sm:$0xff] }
 0x1b5   : > { %1198 = vmatpush2.msra.mxu1 %v1135_v26  ;;  %1287 = vmatpush2.msra.mxu0 %v1137_v63  ;;  %v1094_v24 = vld [vmem:[#allocation8 + $0x3f8] sm:$0xff]  ;;  %v1101_v26 = vld [vmem:[#allocation8 + $0x430] sm:$0xff]  ;;  %v1063_v63 = vld [vmem:[#allocation8 + $0x300] sm:$0xff] }
 0x1b6   : > { %1199 = vmatprep.subr.mxu1 %v1130_v60  ;;  %1288 = vmatprep.subr.mxu0 %v1132_v2  ;;  %v1071_v60 = vld [vmem:[#allocation8 + $0x340] sm:$0xff]  ;;  %v1062_v2 = vld [vmem:[#allocation8 + $0x2f8] sm:$0xff] }
 0x1b7   : > { %1200 = vmatpush2.msra.mxu1 %v1129_v1  ;;  %1289 = vmatpush2.msra.mxu0 %v1131_v4  ;;  %v1065_v1 = vld [vmem:[#allocation8 + $0x310] sm:$0xff] }
 0x1b8   : > { %1201 = vmatprep.subr.mxu1 %v1124_v3  ;;  %1290 = vmatprep.subr.mxu0 %v1126_v6 }
 0x1b9   : > { %1202 = vmatpush2.msra.mxu1 %v1123_v5  ;;  %1291 = vmatpush2.msra.mxu0 %v1125_v8 }
 0x1ba   : > { %1203 = vmatprep.subr.mxu1 %v1118_v7  ;;  %1292 = vmatprep.subr.mxu0 %v1120_v10 }
 0x1bb   : > { %1204 = vmatpush2.msra.mxu1 %v1117_v9  ;;  %1293 = vmatpush2.msra.mxu0 %v1119_v12 }
 0x1bc   : > { %1205 = vmatprep.subr.mxu1 %v1112_v11  ;;  %1294 = vmatprep.subr.mxu0 %v1114_v14  ;;  %v862_v14 = vld [vmem:[%s4981_s4] sm:$0x3] }
 0x1bd   : > { %1206 = vmatpush2.msra.mxu1 %v1111_v13  ;;  %1295 = vmatpush2.msra.mxu0 %v1113_v16  ;;  %v863_v16 = vld [vmem:[%s4982_s5] sm:$0x3] }
 0x1be   : > { %1207 = vmatprep.subr.mxu1 %v1106_v15  ;;  %1296 = vmatprep.subr.mxu0 %v1108_v18  ;;  %v933_v18 = vrot.slane %v862_v14, %v4448_v23 }
 0x1bf   : > { %1208 = vmatpush2.msra.mxu1 %v1105_v17  ;;  %1297 = vmatpush2.msra.mxu0 %v1107_v20  ;;  %v937_v17 = vrot.slane %v862_v14, %v4453_v25  ;;  %v1002_v14 = vld [vmem:[#allocation8 + $0x118] sm:$0xff] }
 0x1c0   : > { %1209 = vmatprep.subr.mxu1 %v1100_v19  ;;  %1298 = vmatprep.subr.mxu0 %v1102_v22 }
 0x1c1   : > { %1210 = vmatpush2.msra.mxu1 %v1099_v21  ;;  %1299 = vmatpush2.msra.mxu0 %v1101_v26  ;;  %v956_v21 = vrot.slane %v863_v16, %v4453_v25 }
 0x1c2   : > { %1211 = vmatprep.subr.mxu1 %v1094_v24  ;;  %v952_v24 = vrot.slane %v863_v16, %v4448_v23  ;;  %v996_v16 = vld [vmem:[#allocation8 + $0xe8] sm:$0xff] }
 0x21c   : > { %v866_v27 = vpop.xlane.xlu0 %865 }
 0x21d   : > { %v877_v28 = vmul.f32 0.00390625, %v866_v27  ;;  %v1093_v27 = vld [vmem:[#allocation8 + $0x3f0] sm:$0xff] }
 0x21e   : > { %1212 = vmatpush2.msra.mxu1 %v1093_v27 }
 0x21f   : > { %v4482_v29 = vsub.f32 %v4457_v35, %v877_v28  ;;  %v4485_v30 = vsub.f32 %v4459_v36, %v877_v28  ;;  %v1096_v28 = vld [vmem:[#allocation8 + $0x408] sm:$0xff] }
 0x220   : > { %v869_v31 = vpop.xlane.xlu0 %868  ;;  %1300 = vmatprep.subr.mxu0 %v1096_v28 }
 0x221   : > { %v878_v32 = vmul.f32 0.00390625, %v869_v31  ;;  %v889_v33 = vmul.f32 %v4482_v29, %v4482_v29  ;;  %v890_v34 = vmul.f32 %v4485_v30, %v4485_v30  ;;  %v1088_v31 = vld [vmem:[#allocation8 + $0x3c8] sm:$0xff] }
 0x222   : > { %1213 = vmatprep.subr.mxu1 %v1088_v31 }
 0x223   : > { %v4492_v37 = vsub.f32 %v4463_v44, %v878_v32  ;;  %v4495_v38 = vsub.f32 %v4465_v45, %v878_v32  ;;  %v897_v39 = vadd.f32 %v890_v34, %v889_v33  ;;  %v1095_v32 = vld [vmem:[#allocation8 + $0x400] sm:$0xff]  ;;  %v1090_v34 = vld [vmem:[#allocation8 + $0x3d8] sm:$0xff] }
 0x224   : > { %v872_v40 = vpop.xlane.xlu1 %871  ;;  %v1087_v33 = vld [vmem:[#allocation8 + $0x3c0] sm:$0xff]  ;;  %1301 = vmatpush2.msra.mxu0 %v1095_v32 }
 0x225   : > { %v879_v41 = vmul.f32 0.00390625, %v872_v40  ;;  %898 = vadd.xlane.f32.xlu0 %v897_v39  ;;  %v891_v42 = vmul.f32 %v4492_v37, %v4492_v37  ;;  %v892_v43 = vmul.f32 %v4495_v38, %v4495_v38  ;;  %1214 = vmatpush2.msra.mxu1 %v1087_v33  ;;  %v1082_v39 = vld [vmem:[#allocation8 + $0x398] sm:$0xff]  ;;  %v1089_v40 = vld [vmem:[#allocation8 + $0x3d0] sm:$0xff] }
 0x226   : > { %1302 = vmatprep.subr.mxu0 %v1090_v34  ;;  %1215 = vmatprep.subr.mxu1 %v1082_v39  ;;  %v1061_v39 = vld [vmem:[#allocation8 + $0x2f0] sm:$0xff] }
 0x227   : > { %v4502_v46 = vsub.f32 %v4469_v53, %v879_v41  ;;  %v4505_v47 = vsub.f32 %v4471_v54, %v879_v41  ;;  %v900_v48 = vadd.f32 %v892_v43, %v891_v42  ;;  %v1081_v41 = vld [vmem:[#allocation8 + $0x390] sm:$0xff]  ;;  %v1084_v42 = vld [vmem:[#allocation8 + $0x3a8] sm:$0xff]  ;;  %1303 = vmatpush2.msra.mxu0 %v1089_v40 }
 0x228   : > { %v875_v49 = vpop.xlane.xlu1 %874  ;;  %v1076_v43 = vld [vmem:[#allocation8 + $0x368] sm:$0xff]  ;;  %1216 = vmatpush2.msra.mxu1 %v1081_v41  ;;  %1304 = vmatprep.subr.mxu0 %v1084_v42  ;;  %v1055_v42 = vld [vmem:[#allocation8 + $0x2c0] sm:$0xff] }
 0x229   : > { %v880_v50 = vmul.f32 0.00390625, %v875_v49  ;;  %901 = vadd.xlane.f32.xlu1 %v900_v48  ;;  %v893_v51 = vmul.f32 %v4502_v46, %v4502_v46  ;;  %v894_v52 = vmul.f32 %v4505_v47, %v4505_v47  ;;  %v1083_v48 = vld [vmem:[#allocation8 + $0x3a0] sm:$0xff]  ;;  %1217 = vmatprep.subr.mxu1 %v1076_v43 }
 0x22a   : > { %v1075_v49 = vld [vmem:[#allocation8 + $0x360] sm:$0xff]  ;;  %1305 = vmatpush2.msra.mxu0 %v1083_v48 }
 0x22b   : > { %v4512_v55 = vsub.f32 %v4475_v61, %v880_v50  ;;  %v4515_v56 = vsub.f32 %v4477_v62, %v880_v50  ;;  %v903_v57 = vadd.f32 %v894_v52, %v893_v51  ;;  %v1078_v50 = vld [vmem:[#allocation8 + $0x378] sm:$0xff]  ;;  %v1077_v52 = vld [vmem:[#allocation8 + $0x370] sm:$0xff]  ;;  %1218 = vmatpush2.msra.mxu1 %v1075_v49 }
 0x22c   : > { %v1070_v51 = vld [vmem:[#allocation8 + $0x338] sm:$0xff]  ;;  %1306 = vmatprep.subr.mxu0 %v1078_v50  ;;  %v1049_v50 = vld [vmem:[#allocation8 + $0x290] sm:$0xff] }
 0x22d   : > { %904 = vadd.xlane.f32.xlu0 %v903_v57  ;;  %v895_v58 = vmul.f32 %v4512_v55, %v4512_v55  ;;  %v896_v59 = vmul.f32 %v4515_v56, %v4515_v56  ;;  %v1069_v57 = vld [vmem:[#allocation8 + $0x330] sm:$0xff]  ;;  %1219 = vmatprep.subr.mxu1 %v1070_v51 }
 0x22e   : > { %1307 = vmatpush2.msra.mxu0 %v1077_v52  ;;  %1220 = vmatpush2.msra.mxu1 %v1069_v57 }
 0x22f   : > { %v906_v0 = vadd.f32 %v896_v59, %v895_v58  ;;  %v1072_v58 = vld [vmem:[#allocation8 + $0x348] sm:$0xff] }
 0x230   : > { %v1064_v59 = vld [vmem:[#allocation8 + $0x308] sm:$0xff]  ;;  %1308 = vmatprep.subr.mxu0 %v1072_v58 }
 0x231   : > { %907 = vadd.xlane.f32.xlu1 %v906_v0  ;;  %v1066_v0 = vld [vmem:[#allocation8 + $0x318] sm:$0xff]  ;;  %1221 = vmatprep.subr.mxu1 %v1064_v59  ;;  %v1044_v58 = vld [vmem:[#allocation8 + $0x268] sm:$0xff]  ;;  %v1043_v59 = vld [vmem:[#allocation8 + $0x260] sm:$0xff] }
 0x232   : > { %1309 = vmatpush2.msra.mxu0 %v1071_v60  ;;  %1222 = vmatpush2.msra.mxu1 %v1063_v63  ;;  %v1038_v63 = vld [vmem:[#allocation8 + $0x238] sm:$0xff] }
 0x233   : > { %1310 = vmatprep.subr.mxu0 %v1066_v0  ;;  %1337 = vmatprep.subr.mxu1 %v1062_v2 }
 0x234   : > { %1311 = vmatpush2.msra.mxu0 %v1065_v1  ;;  %v1037_v1 = vld [vmem:[#allocation8 + $0x230] sm:$0xff] }
 0x2ae   : > { %v899_v3 = vpop.xlane.xlu0 %898 }
 0x2af   : > { %v909_v4 = vmul.f32 0.00390625, %v899_v3  ;;  %v1032_v3 = vld [vmem:[#allocation8 + $0x208] sm:$0xff] }
 0x2b1   : > { %v913_v5 = vadd.f32 1e-05, %v909_v4 }
 0x2b2   : > { %v902_v6 = vpop.xlane.xlu1 %901 }
 0x2b3   : > { %3695 = vrsqrt.f32 %v913_v5  ;;  %v910_v7 = vmul.f32 0.00390625, %v902_v6  ;;  %v1031_v5 = vld [vmem:[#allocation8 + $0x200] sm:$0xff] }
 0x2b5   : > { %v914_v8 = vadd.f32 1e-05, %v910_v7  ;;  %v1025_v7 = vld [vmem:[#allocation8 + $0x1d0] sm:$0xff] }
 0x2b6   : > { %v905_v9 = vpop.xlane.xlu0 %904 }
 0x2b7   : > { %3697 = vrsqrt.f32 %v914_v8  ;;  %v911_v10 = vmul.f32 0.00390625, %v905_v9  ;;  %v1020_v8 = vld [vmem:[#allocation8 + $0x1a8] sm:$0xff]  ;;  %v1019_v9 = vld [vmem:[#allocation8 + $0x1a0] sm:$0xff] }
 0x2b9   : > { %v915_v11 = vadd.f32 1e-05, %v911_v10  ;;  %v1014_v10 = vld [vmem:[#allocation8 + $0x178] sm:$0xff] }
 0x2ba   : > { %v908_v12 = vpop.xlane.xlu1 %907 }
 0x2bb   : > { %3699 = vrsqrt.f32 %v915_v11  ;;  %v912_v13 = vmul.f32 0.00390625, %v908_v12  ;;  %v1013_v11 = vld [vmem:[#allocation8 + $0x170] sm:$0xff]  ;;  %v1008_v12 = vld [vmem:[#allocation8 + $0x148] sm:$0xff] }
 0x2bd   : > { %v916_v15 = vadd.f32 1e-05, %v912_v13  ;;  %v1007_v13 = vld [vmem:[#allocation8 + $0x140] sm:$0xff] }
 0x2bf   : > { %3701 = vrsqrt.f32 %v916_v15  ;;  %v1001_v15 = vld [vmem:[#allocation8 + $0x110] sm:$0xff] }
 0x2c0   : > { %v3696_v19 = vpop.eup %3695 }
 0x2c1   : > { %v922_v20 = vmul.f32 %v3696_v19, %v4485_v30  ;;  %v921_v22 = vmul.f32 %v3696_v19, %v4482_v29  ;;  %v1056_v30 = vld [vmem:[#allocation8 + $0x2c8] sm:$0xff]  ;;  %v989_v19 = vld [vmem:[#allocation8 + $0xb0] sm:$0xff] }
 0x2c3   : > { %v941_v26 = vmul.f32 %v937_v17, %v922_v20  ;;  %v940_v27 = vmul.f32 %v933_v18, %v921_v22  ;;  %v984_v20 = vld [vmem:[#allocation8 + $0x88] sm:$0xff]  ;;  %v978_v22 = vld [vmem:[#allocation8 + $0x58] sm:$0xff] }
 0x2c4   : > { %v3698_v28 = vpop.eup %3697 }
 0x2c5   : > { %v4533_v31 = vadd.f32 %v956_v21, %v941_v26  ;;  %v4535_v32 = vadd.f32 %v952_v24, %v940_v27  ;;  %v924_v33 = vmul.f32 %v3698_v28, %v4495_v38  ;;  %v923_v34 = vmul.f32 %v3698_v28, %v4492_v37  ;;  %v1050_v38 = vld [vmem:[#allocation8 + $0x298] sm:$0xff]  ;;  %v972_v26 = vld [vmem:[#allocation8 + $0x28] sm:$0xff]  ;;  %v971_v27 = vld [vmem:[#allocation8 + $0x20] sm:$0xff] }
 0x2c6   : > { %v1158_v28 = vld [vmem:[#allocation8 + $0x5f8] sm:$0xff] }
 0x2c7   : > { %1223 = vmatprep.mubr.f32.mxu1 %v4533_v31  ;;  %1312 = vmatprep.mubr.f32.mxu0 %v4533_v31  ;;  %v943_v29 = vmul.f32 %v937_v17, %v924_v33  ;;  %v942_v40 = vmul.f32 %v933_v18, %v923_v34  ;;  %v1152_v33 = vld [vmem:[#allocation8 + $0x5c8] sm:$0xff]  ;;  %v1151_v34 = vld [vmem:[#allocation8 + $0x5c0] sm:$0xff] }
 0x2c8   : > { %v3700_v41 = vpop.eup %3699  ;;  %1224 = vmatmul.mubr.f32.vlgmr.msra.gmra.mxu1 %v4535_v32  ;;  %1313 = vmatmul.mubr.f32.vlgmr.msra.gmra.mxu0 %v4535_v32 }
 0x2c9   : > { %1338 = vmatpush1.msra.mxu1 %v1061_v39  ;;  %v4543_v43 = vadd.f32 %v956_v21, %v943_v29  ;;  %v4545_v48 = vadd.f32 %v952_v24, %v942_v40  ;;  %v926_v37 = vmul.f32 %v3700_v41, %v4505_v47  ;;  %v925_v49 = vmul.f32 %v3700_v41, %v4502_v46  ;;  %v1146_v39 = vld [vmem:[#allocation8 + $0x598] sm:$0xff]  ;;  %v1140_v29 = vld [vmem:[#allocation8 + $0x568] sm:$0xff]  ;;  %v1139_v40 = vld [vmem:[#allocation8 + $0x560] sm:$0xff] }
 0x2ca   : > { %1339 = vmatprep.subr.mxu1 %v1056_v30  ;;  %v1145_v30 = vld [vmem:[#allocation8 + $0x590] sm:$0xff]  ;;  %v1134_v41 = vld [vmem:[#allocation8 + $0x538] sm:$0xff] }
 0x2cb   : > { %1340 = vmatpush1.msra.mxu1 %v1055_v42  ;;  %1229 = vmatprep.mubr.f32.mxu1 %v4543_v43  ;;  %v945_v51 = vmul.f32 %v937_v17, %v926_v37  ;;  %v944_v52 = vmul.f32 %v933_v18, %v925_v49  ;;  %v1133_v42 = vld [vmem:[#allocation8 + $0x530] sm:$0xff]  ;;  %v1127_v37 = vld [vmem:[#allocation8 + $0x500] sm:$0xff]  ;;  %v1122_v49 = vld [vmem:[#allocation8 + $0x4d8] sm:$0xff] }
 0x2cc   : > { %v3702_v57 = vpop.eup %3701  ;;  %1318 = vmatprep.mubr.f32.mxu0 %v4543_v43  ;;  %1341 = vmatprep.subr.mxu1 %v1050_v38  ;;  %v1128_v38 = vld [vmem:[#allocation8 + $0x508] sm:$0xff] }
 0x2cd   : > { %1230 = vmatmul.mubr.f32.gmra.mxu1 %v4545_v48  ;;  %1319 = vmatmul.mubr.f32.gmra.mxu0 %v4545_v48  ;;  %v4553_v47 = vadd.f32 %v956_v21, %v945_v51  ;;  %v4555_v46 = vadd.f32 %v952_v24, %v944_v52  ;;  %v928_v60 = vmul.f32 %v3702_v57, %v4515_v56  ;;  %v1116_v51 = vld [vmem:[#allocation8 + $0x4a8] sm:$0xff]  ;;  %v1115_v52 = vld [vmem:[#allocation8 + $0x4a0] sm:$0xff] }
 0x2ce   : > { %1342 = vmatpush1.msra.mxu1 %v1049_v50  ;;  %v927_v0 = vmul.f32 %v3702_v57, %v4512_v55  ;;  %v1026_v55 = vld [vmem:[#allocation8 + $0x1d8] sm:$0xff]  ;;  %v1121_v50 = vld [vmem:[#allocation8 + $0x4d0] sm:$0xff] }
 0x2cf   : > { %1343 = vmatprep.subr.mxu1 %v1044_v58  ;;  %1235 = vmatprep.mubr.f32.mxu1 %v4553_v47  ;;  %v947_v2 = vmul.f32 %v937_v17, %v928_v60  ;;  %v995_v17 = vld [vmem:[#allocation8 + $0xe0] sm:$0xff]  ;;  %v1110_v57 = vld [vmem:[#allocation8 + $0x478] sm:$0xff]  ;;  %v1109_v58 = vld [vmem:[#allocation8 + $0x470] sm:$0xff] }
 0x2d0   : > { %1344 = vmatpush1.msra.mxu1 %v1043_v59  ;;  %1324 = vmatprep.mubr.f32.mxu0 %v4553_v47  ;;  %v946_v4 = vmul.f32 %v933_v18, %v927_v0  ;;  %v990_v18 = vld [vmem:[#allocation8 + $0xb8] sm:$0xff]  ;;  %v1104_v59 = vld [vmem:[#allocation8 + $0x448] sm:$0xff]  ;;  %v1103_v60 = vld [vmem:[#allocation8 + $0x440] sm:$0xff] }
 0x2d1   : > { %1345 = vmatprep.subr.mxu1 %v1038_v63  ;;  %1236 = vmatmul.mubr.f32.gmra.mxu1 %v4555_v46  ;;  %v4562_v6 = vadd.f32 %v956_v21, %v947_v2  ;;  %v983_v21 = vld [vmem:[#allocation8 + $0x80] sm:$0xff]  ;;  %v1098_v63 = vld [vmem:[#allocation8 + $0x418] sm:$0xff]  ;;  %v1097_v0 = vld [vmem:[#allocation8 + $0x410] sm:$0xff] }
 0x2d2   : > { %1325 = vmatmul.mubr.f32.gmra.mxu0 %v4555_v46  ;;  %1346 = vmatpush1.msra.mxu1 %v1037_v1  ;;  %v4565_v56 = vadd.f32 %v952_v24, %v946_v4  ;;  %v977_v24 = vld [vmem:[#allocation8 + $0x50] sm:$0xff]  ;;  %v1092_v1 = vld [vmem:[#allocation8 + $0x3e8] sm:$0xff]  ;;  %v1091_v2 = vld [vmem:[#allocation8 + $0x3e0] sm:$0xff] }
 0x2d3   : > { %1347 = vmatprep.subr.mxu1 %v1032_v3  ;;  %1241 = vmatprep.mubr.f32.mxu1 %v4562_v6  ;;  %v1086_v3 = vld [vmem:[#allocation8 + $0x3b8] sm:$0xff]  ;;  %v1085_v4 = vld [vmem:[#allocation8 + $0x3b0] sm:$0xff] }
 0x2d4   : > { %1348 = vmatpush1.msra.mxu1 %v1031_v5  ;;  %1330 = vmatprep.mubr.f32.mxu0 %v4562_v6  ;;  %v1080_v5 = vld [vmem:[#allocation8 + $0x388] sm:$0xff] }
 0x2d5   : > { %1349 = vmatprep.subr.mxu1 %v1026_v55  ;;  %1242 = vmatmul.mubr.f32.gmra.mxu1 %v4565_v56  ;;  %v1079_v55 = vld [vmem:[#allocation8 + $0x380] sm:$0xff] }
 0x2d6   : > { %1331 = vmatmul.mubr.f32.gmra.mxu0 %v4565_v56  ;;  %1350 = vmatpush1.msra.mxu1 %v1025_v7  ;;  %v1074_v7 = vld [vmem:[#allocation8 + $0x358] sm:$0xff] }
 0x2d7   : > { %1351 = vmatprep.subr.mxu1 %v1020_v8  ;;  %1401 = vmatprep.mubr.f32.mxu1 %v4533_v31  ;;  %v1157_v31 = vld [vmem:[#allocation8 + $0x5f0] sm:$0xff] }
 0x2d8   : > { %1352 = vmatpush1.msra.mxu1 %v1019_v9  ;;  %v1073_v8 = vld [vmem:[#allocation8 + $0x350] sm:$0xff]  ;;  %v1068_v9 = vld [vmem:[#allocation8 + $0x328] sm:$0xff] }
 0x2d9   : > { %1353 = vmatprep.subr.mxu1 %v1014_v10  ;;  %v1067_v10 = vld [vmem:[#allocation8 + $0x320] sm:$0xff] }
 0x2da   : > { %1354 = vmatpush1.msra.mxu1 %v1013_v11 }
 0x2db   : > { %1355 = vmatprep.subr.mxu1 %v1008_v12 }
 0x2dc   : > { %1356 = vmatpush1.msra.mxu1 %v1007_v13 }
 0x2dd   : > { %1357 = vmatprep.subr.mxu1 %v1002_v14 }
 0x2de   : > { %1358 = vmatpush1.msra.mxu1 %v1001_v15 }
 0x2df   : > { %1359 = vmatprep.subr.mxu1 %v996_v16 }
 0x2e0   : > { %1360 = vmatpush1.msra.mxu1 %v995_v17 }
 0x2e1   : > { %1361 = vmatprep.subr.mxu1 %v990_v18 }
 0x2e2   : > { %1362 = vmatpush1.msra.mxu1 %v989_v19 }
 0x2e3   : > { %1363 = vmatprep.subr.mxu1 %v984_v20 }
 0x2e4   : > { %1364 = vmatpush1.msra.mxu1 %v983_v21 }
 0x2e5   : > { %1365 = vmatprep.subr.mxu1 %v978_v22 }
 0x2e6   : > { %1366 = vmatpush1.msra.mxu1 %v977_v24 }
 0x2e7   : > { %1367 = vmatprep.subr.mxu1 %v972_v26 }
 0x2e8   : > { %1368 = vmatpush1.msra.mxu1 %v971_v27 }
 0x2e9   : > { %1369 = vmatprep.subr.mxu1 %v1158_v28 }
 0x2ea   : > { %1370 = vmatpush2.msra.mxu1 %v1157_v31 }
 0x2eb   : > { %1371 = vmatprep.subr.mxu1 %v1152_v33 }
 0x2ec   : > { %1372 = vmatpush2.msra.mxu1 %v1151_v34 }
 0x2ed   : > { %1373 = vmatprep.subr.mxu1 %v1146_v39 }
 0x2ee   : > { %1374 = vmatpush2.msra.mxu1 %v1145_v30 }
 0x2ef   : > { %1375 = vmatprep.subr.mxu1 %v1140_v29 }
 0x2f0   : > { %1376 = vmatpush2.msra.mxu1 %v1139_v40 }
 0x2f1   : > { %1377 = vmatprep.subr.mxu1 %v1134_v41 }
 0x2f2   : > { %1378 = vmatpush2.msra.mxu1 %v1133_v42 }
 0x2f3   : > { %1379 = vmatprep.subr.mxu1 %v1128_v38 }
 0x2f4   : > { %1380 = vmatpush2.msra.mxu1 %v1127_v37 }
 0x2f5   : > { %1381 = vmatprep.subr.mxu1 %v1122_v49 }
 0x2f6   : > { %1382 = vmatpush2.msra.mxu1 %v1121_v50 }
 0x2f7   : > { %1383 = vmatprep.subr.mxu1 %v1116_v51 }
 0x2f8   : > { %1384 = vmatpush2.msra.mxu1 %v1115_v52 }
 0x2f9   : > { %1385 = vmatprep.subr.mxu1 %v1110_v57 }
 0x2fa   : > { %1386 = vmatpush2.msra.mxu1 %v1109_v58 }
 0x2fb   : > { %1387 = vmatprep.subr.mxu1 %v1104_v59 }
 0x2fc   : > { %1388 = vmatpush2.msra.mxu1 %v1103_v60 }
 0x2fd   : > { %1389 = vmatprep.subr.mxu1 %v1098_v63 }
 0x2fe   : > { %1390 = vmatpush2.msra.mxu1 %v1097_v0 }
 0x2ff   : > { %1391 = vmatprep.subr.mxu1 %v1092_v1 }
 0x300   : > { %1392 = vmatpush2.msra.mxu1 %v1091_v2 }
 0x301   : > { %1393 = vmatprep.subr.mxu1 %v1086_v3 }
 0x302   : > { %1394 = vmatpush2.msra.mxu1 %v1085_v4 }
 0x303   : > { %1395 = vmatprep.subr.mxu1 %v1080_v5 }
 0x304   : > { %1396 = vmatpush2.msra.mxu1 %v1079_v55 }
 0x305   : > { %1397 = vmatprep.subr.mxu1 %v1074_v7 }
 0x306   : > { %1398 = vmatpush2.msra.mxu1 %v1073_v8 }
 0x307   : > { %1399 = vmatprep.subr.mxu1 %v1068_v9 }
 0x308   : > { %1400 = vmatpush2.msra.mxu1 %v1067_v10 }
 0x309   : > { %1402 = vmatmul.mubr.f32.vlgmr.msra.gmra.mxu1 %v4535_v32 }
 0x30a   : > { %1407 = vmatprep.mubr.f32.mxu1 %v4543_v43 }
 0x30d   : > { %1408 = vmatmul.mubr.f32.gmra.mxu1 %v4545_v48 }
 0x30e   : > { %1413 = vmatprep.mubr.f32.mxu1 %v4553_v47 }
 0x311   : > { %1414 = vmatmul.mubr.f32.gmra.mxu1 %v4555_v46 }
 0x312   : > { %1419 = vmatprep.mubr.f32.mxu1 %v4562_v6 }
 0x315   : > { %1420 = vmatmul.mubr.f32.gmra.mxu1 %v4565_v56 }
 0x388   : > { %v1225_v11 = vpop.f32.mrf.mxu1  ;;  %v1314_v12 = vpop.f32.mrf.mxu0 }
 0x389   : > { %3475 = vmatprep.mubr.f32.mxu0 %v1225_v11 }
 0x38a   : > { %v1227_v13 = vpop.f32.mrf.mxu1  ;;  %v1316_v14 = vpop.f32.mrf.mxu0 }
 0x38d   : > { %v1320_v15 = vpop.f32.mrf.mxu0  ;;  %v1231_v16 = vpop.f32.mrf.mxu1 }
 0x38e   : > { %3471 = vmatprep.subr.mxu0 %v1320_v15 }
 0x38f   : > { %v1322_v32 = vpop.f32.mrf.mxu0  ;;  %3472 = vmatpush3.xpose.msra.mxu0 %v1320_v15  ;;  %v1233_v43 = vpop.f32.mrf.mxu1 }
 0x390   : > { %3473 = vmatprep.subr.mxu0 %v1314_v12 }
 0x391   : > { %v1237_v46 = vpop.f32.mrf.mxu1 }
 0x392   : > { %v1326_v48 = vpop.f32.mrf.mxu0 }
 0x393   : > { %3474 = vmatpush3.xpose.msra.mxu0 %v1314_v12  ;;  %v1239_v6 = vpop.f32.mrf.mxu1 }
 0x394   : > { %v1328_v47 = vpop.f32.mrf.mxu0 }
 0x395   : > { %v1243_v56 = vpop.f32.mrf.mxu1 }
 0x396   : > { %v1332_v17 = vpop.f32.mrf.mxu0  ;;  %3476 = vmatmul.mubr.f32.vlgmr.msra.gmra.mxu0 %v1231_v16 }
 0x397   : > { %3478 = vmatprep.subr.mxu0 %v1332_v17  ;;  %3482 = vmatprep.mubr.f32.mxu0 %v1237_v46  ;;  %v1245_v19 = vpop.f32.mrf.mxu1 }
 0x398   : > { %3479 = vmatpush3.xpose.msra.mxu0 %v1332_v17  ;;  %v1334_v18 = vpop.f32.mrf.mxu0 }
 0x399   : > { %3480 = vmatprep.subr.mxu0 %v1326_v48 }
 0x39c   : > { %3481 = vmatpush3.xpose.msra.mxu0 %v1326_v48 }
 0x39d   : > { %3485 = vmatprep.subr.mxu0 %v1322_v32 }
 0x39f   : > { %3483 = vmatmul.mubr.f32.vlgmr.msra.gmra.mxu0 %v1243_v56 }
 0x3a0   : > { %3486 = vmatpush3.xpose.msra.mxu0 %v1322_v32  ;;  %3489 = vmatprep.mubr.f32.mxu0 %v1227_v13 }
 0x3a1   : > { %3487 = vmatprep.subr.mxu0 %v1316_v14 }
 0x3a4   : > { %3488 = vmatpush3.xpose.msra.mxu0 %v1316_v14 }
 0x3a5   : > { %3492 = vmatprep.subr.mxu0 %v1334_v18 }
 0x3a7   : > { %3490 = vmatmul.mubr.f32.vlgmr.msra.gmra.mxu0 %v1233_v43 }
 0x3a8   : > { %3493 = vmatpush3.xpose.msra.mxu0 %v1334_v18  ;;  %3496 = vmatprep.mubr.f32.mxu0 %v1239_v6 }
 0x3a9   : > { %3494 = vmatprep.subr.mxu0 %v1328_v47 }
 0x3ac   : > { %3495 = vmatpush3.xpose.msra.mxu0 %v1328_v47 }
 0x3af   : > { %3497 = vmatmul.mubr.f32.vlgmr.msra.gmra.mxu0 %v1245_v19 }
 0x3c9   : > { %v1403_v20 = vpop.f32.mrf.mxu1 }
 0x3cb   : > { %v4579_v21 = vpop.f32.mrf.mxu1 }
 0x3cd   : > { %v1409_v22 = vpop.f32.mrf.mxu1 }
 0x3ce   : > { %3499 = vmatprep.subr.mxu0 %v1409_v22 }
 0x3cf   : > { %v4581_v24 = vpop.f32.mrf.mxu1  ;;  %3500 = vmatpush3.msra.mxu0 %v1409_v22 }
 0x3d0   : > { %3501 = vmatprep.subr.mxu0 %v1403_v20 }
 0x3d1   : > { %v4583_v26 = vpop.f32.mrf.mxu1  ;;  %3502 = vmatpush3.msra.mxu0 %v1403_v20 }
 0x3d3   : > { %v4585_v27 = vpop.f32.mrf.mxu1 }
 0x3d5   : > { %v4587_v28 = vpop.f32.mrf.mxu1 }
 0x3d6   : > { %3506 = vmatprep.subr.mxu0 %v4587_v28 }
 0x456   : > { %v3477_v31 = vpop.f32.mrf.mxu0 }
 0x457   : > { %v1727_v33 = vmul.f32 0.088388346, %v3477_v31 }
 0x458   : > { %v1492_v34 = vpop.f32.mrf.mxu0 }
 0x459   : > { %v1726_v39 = vmul.f32 0.088388346, %v1492_v34  ;;  %v1738_v30 = vsel %vm1734_vm1, %v1727_v33, -inf }
 0x45a   : > { %1739 = vmax.xlane.f32.xlu1 %v1738_v30 }
 0x45b   : > { %v1735_v29 = vsel %vm1734_vm1, %v1726_v39, -inf }
 0x45c   : > { %1736 = vmax.xlane.f32.xlu0 %v1735_v29 }
 0x45f   : > { %v3484_v40 = vpop.f32.mrf.mxu0 }
 0x460   : > { %v1729_v41 = vmul.f32 0.088388346, %v3484_v40 }
 0x461   : > { %v1567_v42 = vpop.f32.mrf.mxu0 }
 0x462   : > { %v1728_v38 = vmul.f32 0.088388346, %v1567_v42  ;;  %v1744_v37 = vsel %vm1734_vm1, %v1729_v41, -inf }
 0x463   : > { %1745 = vmax.xlane.f32.xlu1 %v1744_v37 }
 0x464   : > { %v1741_v49 = vsel %vm1734_vm1, %v1728_v38, -inf }
 0x465   : > { %1742 = vmax.xlane.f32.xlu0 %v1741_v49 }
 0x467   : > { %v3491_v50 = vpop.f32.mrf.mxu0 }
 0x468   : > { %v1731_v51 = vmul.f32 0.088388346, %v3491_v50 }
 0x469   : > { %v1642_v52 = vpop.f32.mrf.mxu0 }
 0x46a   : > { %v1730_v57 = vmul.f32 0.088388346, %v1642_v52  ;;  %v1750_v58 = vsel %vm1734_vm1, %v1731_v51, -inf }
 0x46b   : > { %1751 = vmax.xlane.f32.xlu1 %v1750_v58  ;;  %v2177_v58 = vld [vmem:[#allocation10 + $0xf0] sm:$0xff] }
 0x46c   : > { %v1747_v59 = vsel %vm1734_vm1, %v1730_v57, -inf }
 0x46d   : > { %1748 = vmax.xlane.f32.xlu0 %v1747_v59  ;;  %v2176_v59 = vld [vmem:[#allocation10 + $0xe8] sm:$0xff] }
 0x46f   : > { %v3498_v60 = vpop.f32.mrf.mxu0 }
 0x470   : > { %v1733_v63 = vmul.f32 0.088388346, %v3498_v60  ;;  %v2175_v60 = vld [vmem:[#allocation10 + $0xe0] sm:$0xff] }
 0x471   : > { %v1717_v0 = vpop.f32.mrf.mxu0 }
 0x472   : > { %v1732_v1 = vmul.f32 0.088388346, %v1717_v0  ;;  %v1756_v2 = vsel %vm1734_vm1, %v1733_v63, -inf  ;;  %v2173_v0 = vld [vmem:[#allocation10 + $0xd0] sm:$0xff] }
 0x473   : > { %1757 = vmax.xlane.f32.xlu1 %v1756_v2  ;;  %v2171_v2 = vld [vmem:[#allocation10 + $0xc0] sm:$0xff] }
 0x474   : > { %v1753_v3 = vsel %vm1734_vm1, %v1732_v1, -inf }
 0x475   : > { %1754 = vmax.xlane.f32.xlu0 %v1753_v3  ;;  %v2170_v3 = vld [vmem:[#allocation10 + $0xb8] sm:$0xff] }
 0x4e3   : > { %v1740_v4 = vpop.xlane.xlu1 %1739 }
 0x4e4   : > { %v1760_v5 = vsub.f32 %v1727_v33, %v1740_v4  ;;  %v2169_v4 = vld [vmem:[#allocation10 + $0xb0] sm:$0xff] }
 0x4e5   : > { %v1737_v55 = vpop.xlane.xlu0 %1736 }
 0x4e6   : > { %v1769_v7 = vmul.f32 1.442695, %v1760_v5  ;;  %v1759_v8 = vsub.f32 %v1726_v39, %v1737_v55  ;;  %v2168_v5 = vld [vmem:[#allocation10 + $0xa8] sm:$0xff]  ;;  %v2167_v55 = vld [vmem:[#allocation10 + $0xa0] sm:$0xff] }
 0x4e8   : > { %3703 = vpow2.f32 %v1769_v7  ;;  %v1767_v9 = vmul.f32 1.442695, %v1759_v8  ;;  %v2166_v7 = vld [vmem:[#allocation10 + $0x98] sm:$0xff]  ;;  %v2165_v8 = vld [vmem:[#allocation10 + $0x90] sm:$0xff] }
 0x4ea   : > { %3705 = vpow2.f32 %v1767_v9  ;;  %v2164_v9 = vld [vmem:[#allocation10 + $0x88] sm:$0xff] }
 0x4ec   : > { %v1746_v10 = vpop.xlane.xlu1 %1745 }
 0x4ed   : > { %v1762_v11 = vsub.f32 %v1729_v41, %v1746_v10  ;;  %v2163_v10 = vld [vmem:[#allocation10 + $0x80] sm:$0xff] }
 0x4ee   : > { %v1743_v12 = vpop.xlane.xlu0 %1742 }
 0x4ef   : > { %v1773_v13 = vmul.f32 1.442695, %v1762_v11  ;;  %v1761_v14 = vsub.f32 %v1728_v38, %v1743_v12  ;;  %v2162_v11 = vld [vmem:[#allocation10 + $0x78] sm:$0xff]  ;;  %v2161_v12 = vld [vmem:[#allocation10 + $0x70] sm:$0xff] }
 0x4f1   : > { %3707 = vpow2.f32 %v1773_v13  ;;  %v1771_v15 = vmul.f32 1.442695, %v1761_v14  ;;  %v2160_v13 = vld [vmem:[#allocation10 + $0x68] sm:$0xff]  ;;  %v2159_v14 = vld [vmem:[#allocation10 + $0x60] sm:$0xff] }
 0x4f3   : > { %3709 = vpow2.f32 %v1771_v15  ;;  %v2158_v15 = vld [vmem:[#allocation10 + $0x58] sm:$0xff] }
 0x4f4   : > { %v1752_v16 = vpop.xlane.xlu1 %1751 }
 0x4f5   : > { %v4598_v32 = vpop.eup %3703  ;;  %v1764_v43 = vsub.f32 %v1731_v51, %v1752_v16  ;;  %v2157_v16 = vld [vmem:[#allocation10 + $0x50] sm:$0xff] }
 0x4f6   : > { %v1749_v48 = vpop.xlane.xlu0 %1748  ;;  %v1786_v47 = vsel %vm1734_vm1, %v4598_v32, 0.0 }
 0x4f7   : > { %v4602_v46 = vpop.eup %3705  ;;  %v1777_v17 = vmul.f32 1.442695, %v1764_v43  ;;  %v1763_v6 = vsub.f32 %v1730_v57, %v1749_v48  ;;  %1787 = vadd.xlane.f32.xlu1 %v1786_v47  ;;  %v2178_v57 = vld [vmem:[#allocation10 + $0xf8] sm:$0xff]  ;;  %v2156_v43 = vld [vmem:[#allocation10 + $0x48] sm:$0xff]  ;;  %v2155_v48 = vld [vmem:[#allocation10 + $0x40] sm:$0xff] }
 0x4f8   : > { %v1783_v56 = vsel %vm1734_vm1, %v4602_v46, 0.0  ;;  %2211 = vmatprep.subr.mxu1 %v2178_v57  ;;  %v2154_v47 = vld [vmem:[#allocation10 + $0x38] sm:$0xff]  ;;  %v2201_v57 = vld [vmem:[#allocation10 + $0x1b0] sm:$0xff] }
 0x4f9   : > { %3711 = vpow2.f32 %v1777_v17  ;;  %v1775_v18 = vmul.f32 1.442695, %v1763_v6  ;;  %1784 = vadd.xlane.f32.xlu0 %v1783_v56  ;;  %2212 = vmatpush1.msra.mxu1 %v2177_v58  ;;  %v2153_v17 = vld [vmem:[#allocation10 + $0x30] sm:$0xff]  ;;  %v2152_v6 = vld [vmem:[#allocation10 + $0x28] sm:$0xff]  ;;  %v2151_v56 = vld [vmem:[#allocation10 + $0x20] sm:$0xff] }
 0x4fa   : > { %2213 = vmatprep.subr.mxu1 %v2176_v59  ;;  %v2200_v58 = vld [vmem:[#allocation10 + $0x1a8] sm:$0xff]  ;;  %v2199_v59 = vld [vmem:[#allocation10 + $0x1a0] sm:$0xff] }
 0x4fb   : > { %3713 = vpow2.f32 %v1775_v18  ;;  %2214 = vmatpush1.msra.mxu1 %v2175_v60  ;;  %v2150_v18 = vld [vmem:[#allocation10 + $0x18] sm:$0xff] }
 0x4fc   : > { %v1758_v19 = vpop.xlane.xlu1 %1757 }
 0x4fd   : > { %v1766_v20 = vsub.f32 %v1733_v63, %v1758_v19  ;;  %v2174_v63 = vld [vmem:[#allocation10 + $0xd8] sm:$0xff]  ;;  %v2149_v19 = vld [vmem:[#allocation10 + $0x10] sm:$0xff] }
 0x4fe   : > { %v4606_v22 = vpop.eup %3707  ;;  %v1755_v31 = vpop.xlane.xlu0 %1754  ;;  %2215 = vmatprep.subr.mxu1 %v2174_v63 }
 0x4ff   : > { %v1781_v33 = vmul.f32 1.442695, %v1766_v20  ;;  %v1765_v34 = vsub.f32 %v1732_v1, %v1755_v31  ;;  %v1792_v39 = vsel %vm1734_vm1, %v4606_v22, 0.0  ;;  %v2172_v1 = vld [vmem:[#allocation10 + $0xc8] sm:$0xff]  ;;  %2216 = vmatpush1.msra.mxu1 %v2173_v0  ;;  %v2147_v31 = vld [vmem:[#allocation10] sm:$0xff] }
 0x500   : > { %v4610_v30 = vpop.eup %3709  ;;  %1793 = vadd.xlane.f32.xlu1 %v1792_v39  ;;  %2217 = vmatprep.subr.mxu1 %v2172_v1  ;;  %v2148_v20 = vld [vmem:[#allocation10 + $0x8] sm:$0xff] }
 0x501   : > { %3715 = vpow2.f32 %v1781_v33  ;;  %v1779_v29 = vmul.f32 1.442695, %v1765_v34  ;;  %v1789_v40 = vsel %vm1734_vm1, %v4610_v30, 0.0  ;;  %2218 = vmatpush1.msra.mxu1 %v2171_v2  ;;  %v2210_v33 = vld [vmem:[#allocation10 + $0x1f8] sm:$0xff]  ;;  %v2209_v34 = vld [vmem:[#allocation10 + $0x1f0] sm:$0xff]  ;;  %v2208_v39 = vld [vmem:[#allocation10 + $0x1e8] sm:$0xff] }
 0x502   : > { %1790 = vadd.xlane.f32.xlu0 %v1789_v40  ;;  %2219 = vmatprep.subr.mxu1 %v2170_v3  ;;  %v2206_v40 = vld [vmem:[#allocation10 + $0x1d8] sm:$0xff] }
 0x503   : > { %3717 = vpow2.f32 %v1779_v29  ;;  %2220 = vmatpush1.msra.mxu1 %v2169_v4  ;;  %v2207_v29 = vld [vmem:[#allocation10 + $0x1e0] sm:$0xff] }
 0x504   : > { %2221 = vmatprep.subr.mxu1 %v2168_v5 }
 0x505   : > { %2222 = vmatpush1.msra.mxu1 %v2167_v55 }
 0x506   : > { %v4614_v41 = vpop.eup %3711  ;;  %2223 = vmatprep.subr.mxu1 %v2166_v7 }
 0x507   : > { %v1798_v42 = vsel %vm1734_vm1, %v4614_v41, 0.0  ;;  %2224 = vmatpush1.msra.mxu1 %v2165_v8 }
 0x508   : > { %v4618_v38 = vpop.eup %3713  ;;  %1799 = vadd.xlane.f32.xlu1 %v1798_v42  ;;  %2225 = vmatprep.subr.mxu1 %v2164_v9  ;;  %v2205_v42 = vld [vmem:[#allocation10 + $0x1d0] sm:$0xff] }
 0x509   : > { %v1795_v37 = vsel %vm1734_vm1, %v4618_v38, 0.0  ;;  %2226 = vmatpush1.msra.mxu1 %v2163_v10 }
 0x50a   : > { %1796 = vadd.xlane.f32.xlu0 %v1795_v37  ;;  %2227 = vmatprep.subr.mxu1 %v2162_v11  ;;  %v2204_v37 = vld [vmem:[#allocation10 + $0x1c8] sm:$0xff] }
 0x50b   : > { %2228 = vmatpush1.msra.mxu1 %v2161_v12 }
 0x50c   : > { %2229 = vmatprep.subr.mxu1 %v2160_v13 }
 0x50d   : > { %2230 = vmatpush1.msra.mxu1 %v2159_v14 }
 0x50e   : > { %v4622_v49 = vpop.eup %3715  ;;  %2231 = vmatprep.subr.mxu1 %v2158_v15  ;;  %v2196_v15 = vld [vmem:[#allocation10 + $0x188] sm:$0xff] }
 0x50f   : > { %v1804_v50 = vsel %vm1734_vm1, %v4622_v49, 0.0  ;;  %2232 = vmatpush1.msra.mxu1 %v2157_v16  ;;  %v2195_v16 = vld [vmem:[#allocation10 + $0x180] sm:$0xff] }
 0x510   : > { %v4626_v51 = vpop.eup %3717  ;;  %1805 = vadd.xlane.f32.xlu1 %v1804_v50  ;;  %2233 = vmatprep.subr.mxu1 %v2156_v43  ;;  %v2203_v50 = vld [vmem:[#allocation10 + $0x1c0] sm:$0xff]  ;;  %v2194_v43 = vld [vmem:[#allocation10 + $0x178] sm:$0xff] }
 0x511   : > { %v1801_v52 = vsel %vm1734_vm1, %v4626_v51, 0.0  ;;  %2234 = vmatpush1.msra.mxu1 %v2155_v48  ;;  %v2193_v48 = vld [vmem:[#allocation10 + $0x170] sm:$0xff] }
 0x512   : > { %1802 = vadd.xlane.f32.xlu0 %v1801_v52  ;;  %2235 = vmatprep.subr.mxu1 %v2154_v47  ;;  %v2202_v52 = vld [vmem:[#allocation10 + $0x1b8] sm:$0xff]  ;;  %v2191_v47 = vld [vmem:[#allocation10 + $0x160] sm:$0xff] }
 0x513   : > { %2236 = vmatpush1.msra.mxu1 %v2153_v17  ;;  %v2188_v17 = vld [vmem:[#allocation10 + $0x148] sm:$0xff] }
 0x514   : > { %2237 = vmatprep.subr.mxu1 %v2152_v6  ;;  %v2187_v6 = vld [vmem:[#allocation10 + $0x140] sm:$0xff] }
 0x515   : > { %2238 = vmatpush1.msra.mxu1 %v2151_v56  ;;  %v2186_v56 = vld [vmem:[#allocation10 + $0x138] sm:$0xff] }
 0x516   : > { %2239 = vmatprep.subr.mxu1 %v2150_v18  ;;  %v2185_v18 = vld [vmem:[#allocation10 + $0x130] sm:$0xff] }
 0x517   : > { %2240 = vmatpush1.msra.mxu1 %v2149_v19  ;;  %v2184_v19 = vld [vmem:[#allocation10 + $0x128] sm:$0xff] }
 0x518   : > { %2241 = vmatprep.subr.mxu1 %v2148_v20  ;;  %v2183_v20 = vld [vmem:[#allocation10 + $0x120] sm:$0xff] }
 0x519   : > { %2242 = vmatpush1.msra.mxu1 %v2147_v31  ;;  %v2182_v31 = vld [vmem:[#allocation10 + $0x118] sm:$0xff] }
 0x51a   : > { %2243 = vmatprep.subr.mxu1 %v2210_v33  ;;  %v2181_v33 = vld [vmem:[#allocation10 + $0x110] sm:$0xff] }
 0x51b   : > { %2244 = vmatpush2.msra.mxu1 %v2209_v34  ;;  %v2180_v34 = vld [vmem:[#allocation10 + $0x108] sm:$0xff] }
 0x51c   : > { %2245 = vmatprep.subr.mxu1 %v2208_v39  ;;  %v2179_v39 = vld [vmem:[#allocation10 + $0x100] sm:$0xff] }
 0x51d   : > { %2246 = vmatpush2.msra.mxu1 %v2207_v29 }
 0x51e   : > { %2247 = vmatprep.subr.mxu1 %v2206_v40 }
 0x51f   : > { %2248 = vmatpush2.msra.mxu1 %v2205_v42 }
 0x520   : > { %2249 = vmatprep.subr.mxu1 %v2204_v37 }
 0x521   : > { %2250 = vmatpush2.msra.mxu1 %v2203_v50 }
 0x522   : > { %2251 = vmatprep.subr.mxu1 %v2202_v52 }
 0x523   : > { %2252 = vmatpush2.msra.mxu1 %v2201_v57 }
 0x524   : > { %2253 = vmatprep.subr.mxu1 %v2200_v58 }
 0x525   : > { %2254 = vmatpush2.msra.mxu1 %v2199_v59 }
 0x580   : > { %v1788_v60 = vpop.xlane.xlu1 %1787 }
 0x581   : > { %3719 = vrcp.f32 %v1788_v60 }
 0x582   : > { %v1785_v63 = vpop.xlane.xlu0 %1784 }
 0x583   : > { %3721 = vrcp.f32 %v1785_v63 }
 0x589   : > { %v1794_v0 = vpop.xlane.xlu1 %1793 }
 0x58a   : > { %3723 = vrcp.f32 %v1794_v0 }
 0x58b   : > { %v1791_v1 = vpop.xlane.xlu0 %1790 }
 0x58c   : > { %3725 = vrcp.f32 %v1791_v1 }
 0x58e   : > { %v3720_v2 = vpop.eup %3719 }
 0x58f   : > { %v1816_v55 = vmul.f32 %v3720_v2, %v4598_v32 }
 0x590   : > { %v3722_v3 = vpop.eup %3721 }
 0x591   : > { %v1800_v4 = vpop.xlane.xlu1 %1799  ;;  %v1815_v5 = vmul.f32 %v3722_v3, %v4602_v46 }
 0x592   : > { %3727 = vrcp.f32 %v1800_v4 }
 0x593   : > { %v1797_v7 = vpop.xlane.xlu0 %1796  ;;  %3503 = vmatprep.mubr.msk.f32.mxu0 %vm1734_vm1, %v1815_v5 }
 0x594   : > { %3729 = vrcp.f32 %v1797_v7  ;;  %3504 = vmatmul.mubr.msk.f32.vlgmr.msra.gmra.mxu0 %vm1734_vm1, %v1816_v55 }
 0x595   : > { %3507 = vmatpush3.msra.mxu0 %v4587_v28  ;;  %v1423_v28 = vpop.f32.mrf.mxu1 }
 0x596   : > { %3508 = vmatprep.subr.mxu0 %v4583_v26 }
 0x597   : > { %3509 = vmatpush3.msra.mxu0 %v4583_v26  ;;  %v3724_v8 = vpop.eup %3723 }
 0x598   : > { %3513 = vmatprep.subr.mxu0 %v4581_v24  ;;  %v1818_v11 = vmul.f32 %v3724_v8, %v4606_v22 }
 0x599   : > { %v3726_v9 = vpop.eup %3725  ;;  %v1806_v46 = vpop.xlane.xlu1 %1805 }
 0x59a   : > { %v1817_v32 = vmul.f32 %v3726_v9, %v4610_v30  ;;  %3731 = vrcp.f32 %v1806_v46 }
 0x59b   : > { %v1803_v10 = vpop.xlane.xlu0 %1802 }
 0x59c   : > { %3733 = vrcp.f32 %v1803_v10  ;;  %3510 = vmatprep.mubr.msk.f32.mxu0 %vm1734_vm1, %v1817_v32  ;;  %v2443_v10 = vld [vmem:[#allocation11 + $0xf8] sm:$0xff] }
 0x59d   : > { %3511 = vmatmul.mubr.msk.f32.vlgmr.msra.gmra.mxu0 %vm1734_vm1, %v1818_v11  ;;  %v2441_v11 = vld [vmem:[#allocation11 + $0xe8] sm:$0xff] }
 0x59e   : > { %3514 = vmatpush3.msra.mxu0 %v4581_v24 }
 0x59f   : > { %3515 = vmatprep.subr.mxu0 %v4579_v21  ;;  %v3728_v26 = vpop.eup %3727 }
 0x5a0   : > { %3516 = vmatpush3.msra.mxu0 %v4579_v21  ;;  %v1820_v13 = vmul.f32 %v3728_v26, %v4614_v41  ;;  %v2198_v41 = vld [vmem:[#allocation10 + $0x198] sm:$0xff]  ;;  %v2440_v26 = vld [vmem:[#allocation11 + $0xe0] sm:$0xff] }
 0x5a1   : > { %v3730_v12 = vpop.eup %3729  ;;  %3520 = vmatprep.subr.mxu0 %v1423_v28  ;;  %2255 = vmatprep.subr.mxu1 %v2198_v41  ;;  %v2429_v41 = vld [vmem:[#allocation11 + $0x88] sm:$0xff] }
 0x5a2   : > { %v1819_v30 = vmul.f32 %v3730_v12, %v4618_v38  ;;  %v2197_v38 = vld [vmem:[#allocation10 + $0x190] sm:$0xff] }
 0x5a3   : > { %2256 = vmatpush2.msra.mxu1 %v2197_v38  ;;  %v2438_v12 = vld [vmem:[#allocation11 + $0xd0] sm:$0xff]  ;;  %v2428_v38 = vld [vmem:[#allocation11 + $0x80] sm:$0xff] }
 0x5a4   : > { %3517 = vmatprep.mubr.msk.f32.mxu0 %vm1734_vm1, %v1819_v30  ;;  %2257 = vmatprep.subr.mxu1 %v2196_v15  ;;  %v2436_v30 = vld [vmem:[#allocation11 + $0xc0] sm:$0xff]  ;;  %v2427_v15 = vld [vmem:[#allocation11 + $0x78] sm:$0xff] }
 0x5a5   : > { %3518 = vmatmul.mubr.msk.f32.vlgmr.msra.gmra.mxu0 %vm1734_vm1, %v1820_v13  ;;  %2258 = vmatpush2.msra.mxu1 %v2195_v16  ;;  %v2434_v13 = vld [vmem:[#allocation11 + $0xb0] sm:$0xff] }
 0x5a6   : > { %3521 = vmatpush3.msra.mxu0 %v1423_v28  ;;  %2259 = vmatprep.subr.mxu1 %v2194_v43  ;;  %v2439_v28 = vld [vmem:[#allocation11 + $0xd8] sm:$0xff]  ;;  %v2426_v16 = vld [vmem:[#allocation11 + $0x70] sm:$0xff]  ;;  %v2425_v43 = vld [vmem:[#allocation11 + $0x68] sm:$0xff] }
 0x5a7   : > { %3522 = vmatprep.subr.mxu0 %v4585_v27  ;;  %v3732_v24 = vpop.eup %3731  ;;  %2260 = vmatpush2.msra.mxu1 %v2193_v48  ;;  %v2424_v48 = vld [vmem:[#allocation11 + $0x60] sm:$0xff] }
 0x5a8   : > { %3523 = vmatpush3.msra.mxu0 %v4585_v27  ;;  %v1822_v21 = vmul.f32 %v3732_v24, %v4622_v49  ;;  %v2192_v27 = vld [vmem:[#allocation10 + $0x168] sm:$0xff]  ;;  %v2190_v49 = vld [vmem:[#allocation10 + $0x158] sm:$0xff] }
 0x5a9   : > { %v3734_v22 = vpop.eup %3733  ;;  %2261 = vmatprep.subr.mxu1 %v2192_v27  ;;  %2488 = vmatprep.subr.mxu0 %v2443_v10  ;;  %v2433_v24 = vld [vmem:[#allocation11 + $0xa8] sm:$0xff]  ;;  %v2423_v27 = vld [vmem:[#allocation11 + $0x58] sm:$0xff] }
 0x5aa   : > { %v1821_v14 = vmul.f32 %v3734_v22, %v4626_v51  ;;  %2262 = vmatpush2.msra.mxu1 %v2191_v47  ;;  %v2189_v51 = vld [vmem:[#allocation10 + $0x150] sm:$0xff]  ;;  %v2432_v22 = vld [vmem:[#allocation11 + $0xa0] sm:$0xff] }
 0x5ab   : > { %2263 = vmatprep.subr.mxu1 %v2190_v49  ;;  %v2422_v47 = vld [vmem:[#allocation11 + $0x50] sm:$0xff]  ;;  %v2421_v49 = vld [vmem:[#allocation11 + $0x48] sm:$0xff] }
 0x5ac   : > { %3524 = vmatprep.mubr.msk.f32.mxu0 %vm1734_vm1, %v1821_v14  ;;  %2264 = vmatpush2.msra.mxu1 %v2189_v51  ;;  %v2431_v14 = vld [vmem:[#allocation11 + $0x98] sm:$0xff]  ;;  %v2420_v51 = vld [vmem:[#allocation11 + $0x40] sm:$0xff] }
 0x5ad   : > { %3525 = vmatmul.mubr.msk.f32.vlgmr.msra.gmra.mxu0 %vm1734_vm1, %v1822_v21  ;;  %2265 = vmatprep.subr.mxu1 %v2188_v17  ;;  %v2430_v21 = vld [vmem:[#allocation11 + $0x90] sm:$0xff]  ;;  %v2419_v17 = vld [vmem:[#allocation11 + $0x38] sm:$0xff] }
 0x5ae   : > { %2266 = vmatpush2.msra.mxu1 %v2187_v6  ;;  %v2418_v6 = vld [vmem:[#allocation11 + $0x30] sm:$0xff] }
 0x5af   : > { %2267 = vmatprep.subr.mxu1 %v2186_v56  ;;  %v2417_v56 = vld [vmem:[#allocation11 + $0x28] sm:$0xff] }
 0x5b0   : > { %2268 = vmatpush2.msra.mxu1 %v2185_v18  ;;  %v2416_v18 = vld [vmem:[#allocation11 + $0x20] sm:$0xff] }
 0x5b1   : > { %2269 = vmatprep.subr.mxu1 %v2184_v19  ;;  %v2415_v19 = vld [vmem:[#allocation11 + $0x18] sm:$0xff] }
 0x5b2   : > { %2270 = vmatpush2.msra.mxu1 %v2183_v20  ;;  %v2414_v20 = vld [vmem:[#allocation11 + $0x10] sm:$0xff] }
 0x5b3   : > { %2271 = vmatprep.subr.mxu1 %v2182_v31  ;;  %v2413_v31 = vld [vmem:[#allocation11 + $0x8] sm:$0xff] }
 0x5b4   : > { %2272 = vmatpush2.msra.mxu1 %v2181_v33  ;;  %v2412_v33 = vld [vmem:[#allocation11] sm:$0xff] }
 0x5b5   : > { %2273 = vmatprep.subr.mxu1 %v2180_v34  ;;  %v2475_v34 = vld [vmem:[#allocation11 + $0x1f8] sm:$0xff] }
 0x5b6   : > { %2274 = vmatpush2.msra.mxu1 %v2179_v39  ;;  %v2474_v39 = vld [vmem:[#allocation11 + $0x1f0] sm:$0xff] }
 0x654   : > { %v3505_v29 = vpop.f32.mrf.mxu0 }
 0x656   : > { %v1895_v40 = vpop.f32.mrf.mxu0 }
 0x65d   : > { %v3512_v42 = vpop.f32.mrf.mxu0 }
 0x65f   : > { %v1976_v37 = vpop.f32.mrf.mxu0 }
 0x665   : > { %v3519_v50 = vpop.f32.mrf.mxu0 }
 0x667   : > { %v2057_v52 = vpop.f32.mrf.mxu0 }
 0x668   : > { %2275 = vmatprep.mubr.f32.mxu1 %v2057_v52 }
 0x669   : > { %2276 = vmatmul.mubr.f32.vlgmr.msra.gmra.mxu1 %v1895_v40  ;;  %v2472_v40 = vld [vmem:[#allocation11 + $0x1e0] sm:$0xff] }
 0x66a   : > { %2281 = vmatprep.mubr.f32.mxu1 %v3519_v50  ;;  %v2469_v50 = vld [vmem:[#allocation11 + $0x1c8] sm:$0xff] }
 0x66d   : > { %v3526_v57 = vpop.f32.mrf.mxu0  ;;  %2282 = vmatmul.mubr.f32.gmra.mxu1 %v3505_v29  ;;  %v2473_v29 = vld [vmem:[#allocation11 + $0x1e8] sm:$0xff] }
 0x66f   : > { %v2138_v58 = vpop.f32.mrf.mxu0 }
 0x670   : > { %2287 = vmatprep.mubr.f32.mxu1 %v2138_v58 }
 0x671   : > { %2288 = vmatmul.mubr.f32.gmra.mxu1 %v1976_v37  ;;  %v2470_v37 = vld [vmem:[#allocation11 + $0x1d0] sm:$0xff] }
 0x672   : > { %2293 = vmatprep.mubr.f32.mxu1 %v3526_v57 }
 0x675   : > { %2294 = vmatmul.mubr.f32.gmra.mxu1 %v3512_v42  ;;  %v2471_v42 = vld [vmem:[#allocation11 + $0x1d8] sm:$0xff] }
 0x729   : > { %v2277_v59 = vpop.f32.mrf.mxu1 }
 0x72a   : > { %v4656_v63 = vadd.f32 %v2277_v59, %v4457_v35 }
 0x72b   : > { %v2279_v60 = vpop.f32.mrf.mxu1 }
 0x72c   : > { %v4659_v0 = vadd.f32 %v2279_v60, %v4459_v36 }
 0x72d   : > { %v2283_v1 = vpop.f32.mrf.mxu1 }
 0x72e   : > { %v2310_v2 = vadd.f32 %v4659_v0, %v4656_v63  ;;  %v4664_v4 = vadd.f32 %v2283_v1, %v4463_v44 }
 0x72f   : > { %v2285_v3 = vpop.f32.mrf.mxu1 }
 0x730   : > { %v4667_v5 = vadd.f32 %v2285_v3, %v4465_v45  ;;  %2311 = vadd.xlane.f32.xlu0 %v2310_v2 }
 0x731   : > { %v2289_v55 = vpop.f32.mrf.mxu1 }
 0x732   : > { %v2313_v35 = vadd.f32 %v4667_v5, %v4664_v4  ;;  %v4672_v36 = vadd.f32 %v2289_v55, %v4469_v53 }
 0x733   : > { %v2291_v7 = vpop.f32.mrf.mxu1 }
 0x734   : > { %v4675_v8 = vadd.f32 %v2291_v7, %v4471_v54  ;;  %2314 = vadd.xlane.f32.xlu1 %v2313_v35  ;;  %v2442_v54 = vld [vmem:[#allocation11 + $0xf0] sm:$0xff] }
 0x735   : > { %v2295_v9 = vpop.f32.mrf.mxu1  ;;  %2489 = vmatpush1.msra.mxu0 %v2442_v54 }
 0x736   : > { %v2316_v44 = vadd.f32 %v4675_v8, %v4672_v36  ;;  %v4680_v45 = vadd.f32 %v2295_v9, %v4475_v61  ;;  %2490 = vmatprep.subr.mxu0 %v2441_v11  ;;  %v2437_v61 = vld [vmem:[#allocation11 + $0xc8] sm:$0xff] }
 0x737   : > { %v2297_v46 = vpop.f32.mrf.mxu1  ;;  %2491 = vmatpush1.msra.mxu0 %v2440_v26 }
 0x738   : > { %v4683_v32 = vadd.f32 %v2297_v46, %v4477_v62  ;;  %2317 = vadd.xlane.f32.xlu0 %v2316_v44  ;;  %2492 = vmatprep.subr.mxu0 %v2439_v28  ;;  %v2435_v62 = vld [vmem:[#allocation11 + $0xb8] sm:$0xff] }
 0x739   : > { %2493 = vmatpush1.msra.mxu0 %v2438_v12 }
 0x73a   : > { %v2319_v53 = vadd.f32 %v4683_v32, %v4680_v45  ;;  %2494 = vmatprep.subr.mxu0 %v2437_v61 }
 0x73b   : > { %2495 = vmatpush1.msra.mxu0 %v2436_v30 }
 0x73c   : > { %2320 = vadd.xlane.f32.xlu1 %v2319_v53  ;;  %2496 = vmatprep.subr.mxu0 %v2435_v62 }
 0x73d   : > { %2497 = vmatpush1.msra.mxu0 %v2434_v13 }
 0x73e   : > { %2498 = vmatprep.subr.mxu0 %v2433_v24 }
 0x73f   : > { %2499 = vmatpush1.msra.mxu0 %v2432_v22 }
 0x740   : > { %2500 = vmatprep.subr.mxu0 %v2431_v14 }
 0x741   : > { %2501 = vmatpush1.msra.mxu0 %v2430_v21  ;;  %v2468_v21 = vld [vmem:[#allocation11 + $0x1c0] sm:$0xff] }
 0x742   : > { %2502 = vmatprep.subr.mxu0 %v2429_v41  ;;  %v2467_v41 = vld [vmem:[#allocation11 + $0x1b8] sm:$0xff] }
 0x743   : > { %2503 = vmatpush1.msra.mxu0 %v2428_v38  ;;  %v2466_v38 = vld [vmem:[#allocation11 + $0x1b0] sm:$0xff] }
 0x744   : > { %2504 = vmatprep.subr.mxu0 %v2427_v15  ;;  %v2465_v15 = vld [vmem:[#allocation11 + $0x1a8] sm:$0xff] }
 0x745   : > { %2505 = vmatpush1.msra.mxu0 %v2426_v16  ;;  %v2464_v16 = vld [vmem:[#allocation11 + $0x1a0] sm:$0xff] }
 0x746   : > { %2506 = vmatprep.subr.mxu0 %v2425_v43  ;;  %v2463_v43 = vld [vmem:[#allocation11 + $0x198] sm:$0xff] }
 0x747   : > { %2507 = vmatpush1.msra.mxu0 %v2424_v48  ;;  %v2462_v48 = vld [vmem:[#allocation11 + $0x190] sm:$0xff] }
 0x748   : > { %2508 = vmatprep.subr.mxu0 %v2423_v27  ;;  %v2461_v27 = vld [vmem:[#allocation11 + $0x188] sm:$0xff] }
 0x749   : > { %2509 = vmatpush1.msra.mxu0 %v2422_v47  ;;  %v2460_v47 = vld [vmem:[#allocation11 + $0x180] sm:$0xff] }
 0x74a   : > { %2510 = vmatprep.subr.mxu0 %v2421_v49  ;;  %v2459_v49 = vld [vmem:[#allocation11 + $0x178] sm:$0xff] }
 0x74b   : > { %2511 = vmatpush1.msra.mxu0 %v2420_v51  ;;  %v2458_v51 = vld [vmem:[#allocation11 + $0x170] sm:$0xff] }
 0x74c   : > { %2512 = vmatprep.subr.mxu0 %v2419_v17  ;;  %v2457_v17 = vld [vmem:[#allocation11 + $0x168] sm:$0xff] }
 0x74d   : > { %2513 = vmatpush1.msra.mxu0 %v2418_v6  ;;  %v2456_v6 = vld [vmem:[#allocation11 + $0x160] sm:$0xff] }
 0x74e   : > { %2514 = vmatprep.subr.mxu0 %v2417_v56  ;;  %v2455_v56 = vld [vmem:[#allocation11 + $0x158] sm:$0xff] }
 0x74f   : > { %2515 = vmatpush1.msra.mxu0 %v2416_v18  ;;  %v2454_v18 = vld [vmem:[#allocation11 + $0x150] sm:$0xff] }
 0x750   : > { %2516 = vmatprep.subr.mxu0 %v2415_v19  ;;  %v2453_v19 = vld [vmem:[#allocation11 + $0x148] sm:$0xff] }
 0x751   : > { %2517 = vmatpush1.msra.mxu0 %v2414_v20  ;;  %v2452_v20 = vld [vmem:[#allocation11 + $0x140] sm:$0xff] }
 0x752   : > { %2518 = vmatprep.subr.mxu0 %v2413_v31  ;;  %v2451_v31 = vld [vmem:[#allocation11 + $0x138] sm:$0xff] }
 0x753   : > { %2519 = vmatpush1.msra.mxu0 %v2412_v33  ;;  %v2450_v33 = vld [vmem:[#allocation11 + $0x130] sm:$0xff] }
 0x754   : > { %2520 = vmatprep.subr.mxu0 %v2475_v34  ;;  %v2449_v34 = vld [vmem:[#allocation11 + $0x128] sm:$0xff] }
 0x755   : > { %2521 = vmatpush2.msra.mxu0 %v2474_v39  ;;  %v2448_v39 = vld [vmem:[#allocation11 + $0x120] sm:$0xff] }
 0x756   : > { %2522 = vmatprep.subr.mxu0 %v2473_v29  ;;  %v2447_v29 = vld [vmem:[#allocation11 + $0x118] sm:$0xff] }
 0x757   : > { %2523 = vmatpush2.msra.mxu0 %v2472_v40  ;;  %v2446_v40 = vld [vmem:[#allocation11 + $0x110] sm:$0xff] }
 0x758   : > { %2524 = vmatprep.subr.mxu0 %v2471_v42  ;;  %v2445_v42 = vld [vmem:[#allocation11 + $0x108] sm:$0xff] }
 0x759   : > { %2525 = vmatpush2.msra.mxu0 %v2470_v37  ;;  %v2444_v37 = vld [vmem:[#allocation11 + $0x100] sm:$0xff] }
 0x75a   : > { %2526 = vmatprep.subr.mxu0 %v2469_v50  ;;  %v2680_v50 = vld [vmem:[#allocation13 + $0xf8] sm:$0xff] }
 0x75b   : > { %2527 = vmatpush2.msra.mxu0 %v2468_v21  ;;  %2725 = vmatprep.subr.mxu1 %v2680_v50  ;;  %v2659_v21 = vld [vmem:[#allocation13 + $0x50] sm:$0xff] }
 0x75c   : > { %2528 = vmatprep.subr.mxu0 %v2467_v41  ;;  %v2658_v41 = vld [vmem:[#allocation13 + $0x48] sm:$0xff] }
 0x75d   : > { %2529 = vmatpush2.msra.mxu0 %v2466_v38  ;;  %v2657_v38 = vld [vmem:[#allocation13 + $0x40] sm:$0xff] }
 0x75e   : > { %2530 = vmatprep.subr.mxu0 %v2465_v15  ;;  %v2656_v15 = vld [vmem:[#allocation13 + $0x38] sm:$0xff] }
 0x75f   : > { %2531 = vmatpush2.msra.mxu0 %v2464_v16  ;;  %v2655_v16 = vld [vmem:[#allocation13 + $0x30] sm:$0xff] }
 0x760   : > { %2532 = vmatprep.subr.mxu0 %v2463_v43  ;;  %v2654_v43 = vld [vmem:[#allocation13 + $0x28] sm:$0xff] }
 0x761   : > { %2533 = vmatpush2.msra.mxu0 %v2462_v48  ;;  %v2653_v48 = vld [vmem:[#allocation13 + $0x20] sm:$0xff] }
 0x762   : > { %2534 = vmatprep.subr.mxu0 %v2461_v27  ;;  %v2652_v27 = vld [vmem:[#allocation13 + $0x18] sm:$0xff] }
 0x763   : > { %2535 = vmatpush2.msra.mxu0 %v2460_v47  ;;  %v2651_v47 = vld [vmem:[#allocation13 + $0x10] sm:$0xff] }
 0x764   : > { %2536 = vmatprep.subr.mxu0 %v2459_v49 }
 0x765   : > { %2537 = vmatpush2.msra.mxu0 %v2458_v51 }
 0x766   : > { %2538 = vmatprep.subr.mxu0 %v2457_v17 }
 0x767   : > { %2539 = vmatpush2.msra.mxu0 %v2456_v6 }
 0x768   : > { %2540 = vmatprep.subr.mxu0 %v2455_v56 }
 0x769   : > { %2541 = vmatpush2.msra.mxu0 %v2454_v18 }
 0x76a   : > { %2542 = vmatprep.subr.mxu0 %v2453_v19 }
 0x76b   : > { %2543 = vmatpush2.msra.mxu0 %v2452_v20 }
 0x76c   : > { %2544 = vmatprep.subr.mxu0 %v2451_v31 }
 0x76d   : > { %2545 = vmatpush2.msra.mxu0 %v2450_v33 }
 0x76e   : > { %2546 = vmatprep.subr.mxu0 %v2449_v34 }
 0x76f   : > { %2547 = vmatpush2.msra.mxu0 %v2448_v39  ;;  %v2308_v39 = vld [vmem:[%s4985_s8] sm:$0x3] }
 0x770   : > { %2548 = vmatprep.subr.mxu0 %v2447_v29 }
 0x771   : > { %2549 = vmatpush2.msra.mxu0 %v2446_v40  ;;  %v2309_v40 = vld [vmem:[%s4986_s9] sm:$0x3] }
 0x772   : > { %2550 = vmatprep.subr.mxu0 %v2445_v42  ;;  %v2378_v42 = vrot.slane %v2308_v39, %v4448_v23 }
 0x773   : > { %2551 = vmatpush2.msra.mxu0 %v2444_v37  ;;  %v2382_v37 = vrot.slane %v2308_v39, %v4453_v25  ;;  %v2695_v39 = vld [vmem:[#allocation13 + $0x170] sm:$0xff] }
 0x7b9   : > { %v2312_v52 = vpop.xlane.xlu0 %2311 }
 0x7ba   : > { %v2322_v57 = vmul.f32 0.00390625, %v2312_v52  ;;  %v2679_v52 = vld [vmem:[#allocation13 + $0xf0] sm:$0xff] }
 0x7bb   : > { %2726 = vmatpush1.msra.mxu1 %v2679_v52 }
 0x7bc   : > { %v4688_v58 = vsub.f32 %v4656_v63, %v2322_v57  ;;  %v4691_v59 = vsub.f32 %v4659_v0, %v2322_v57  ;;  %v2678_v57 = vld [vmem:[#allocation13 + $0xe8] sm:$0xff] }
 0x7bd   : > { %v2315_v60 = vpop.xlane.xlu1 %2314  ;;  %2727 = vmatprep.subr.mxu1 %v2678_v57  ;;  %v2397_v57 = vrot.slane %v2309_v40, %v4448_v23 }
 0x7be   : > { %v2323_v1 = vmul.f32 0.00390625, %v2315_v60  ;;  %v2334_v2 = vmul.f32 %v4688_v58, %v4688_v58  ;;  %v2335_v3 = vmul.f32 %v4691_v59, %v4691_v59  ;;  %v2677_v60 = vld [vmem:[#allocation13 + $0xe0] sm:$0xff] }
 0x7bf   : > { %2728 = vmatpush1.msra.mxu1 %v2677_v60  ;;  %v2401_v60 = vrot.slane %v2309_v40, %v4453_v25  ;;  %v2693_v40 = vld [vmem:[#allocation13 + $0x160] sm:$0xff] }
 0x7c0   : > { %v4698_v55 = vsub.f32 %v4664_v4, %v2323_v1  ;;  %v4701_v35 = vsub.f32 %v4667_v5, %v2323_v1  ;;  %v2342_v7 = vadd.f32 %v2335_v3, %v2334_v2  ;;  %v2676_v1 = vld [vmem:[#allocation13 + $0xd8] sm:$0xff]  ;;  %v2675_v2 = vld [vmem:[#allocation13 + $0xd0] sm:$0xff]  ;;  %v2674_v3 = vld [vmem:[#allocation13 + $0xc8] sm:$0xff] }
 0x7c1   : > { %v2318_v9 = vpop.xlane.xlu0 %2317  ;;  %2729 = vmatprep.subr.mxu1 %v2676_v1 }
 0x7c2   : > { %v2324_v44 = vmul.f32 0.00390625, %v2318_v9  ;;  %2343 = vadd.xlane.f32.xlu0 %v2342_v7  ;;  %v2336_v46 = vmul.f32 %v4698_v55, %v4698_v55  ;;  %v2337_v53 = vmul.f32 %v4701_v35, %v4701_v35  ;;  %v2673_v7 = vld [vmem:[#allocation13 + $0xc0] sm:$0xff]  ;;  %2730 = vmatpush1.msra.mxu1 %v2675_v2  ;;  %v2672_v9 = vld [vmem:[#allocation13 + $0xb8] sm:$0xff] }
 0x7c3   : > { %2731 = vmatprep.subr.mxu1 %v2674_v3 }
 0x7c4   : > { %v4708_v10 = vsub.f32 %v4672_v36, %v2324_v44  ;;  %v4711_v54 = vsub.f32 %v4675_v8, %v2324_v44  ;;  %v2345_v11 = vadd.f32 %v2337_v53, %v2336_v46  ;;  %v2671_v44 = vld [vmem:[#allocation13 + $0xb0] sm:$0xff]  ;;  %2732 = vmatpush1.msra.mxu1 %v2673_v7  ;;  %v2670_v46 = vld [vmem:[#allocation13 + $0xa8] sm:$0xff]  ;;  %v2669_v53 = vld [vmem:[#allocation13 + $0xa0] sm:$0xff] }
 0x7c5   : > { %v2321_v26 = vpop.xlane.xlu1 %2320  ;;  %2733 = vmatprep.subr.mxu1 %v2672_v9 }
 0x7c6   : > { %v2325_v28 = vmul.f32 0.00390625, %v2321_v26  ;;  %2346 = vadd.xlane.f32.xlu1 %v2345_v11  ;;  %v2338_v12 = vmul.f32 %v4708_v10, %v4708_v10  ;;  %v2339_v61 = vmul.f32 %v4711_v54, %v4711_v54  ;;  %2734 = vmatpush1.msra.mxu1 %v2671_v44  ;;  %v2668_v11 = vld [vmem:[#allocation13 + $0x98] sm:$0xff]  ;;  %v2667_v26 = vld [vmem:[#allocation13 + $0x90] sm:$0xff] }
 0x7c7   : > { %2735 = vmatprep.subr.mxu1 %v2670_v46 }
 0x7c8   : > { %v4718_v30 = vsub.f32 %v4680_v45, %v2325_v28  ;;  %v4721_v62 = vsub.f32 %v4683_v32, %v2325_v28  ;;  %v2348_v13 = vadd.f32 %v2339_v61, %v2338_v12  ;;  %2736 = vmatpush1.msra.mxu1 %v2669_v53  ;;  %v2666_v28 = vld [vmem:[#allocation13 + $0x88] sm:$0xff]  ;;  %v2665_v12 = vld [vmem:[#allocation13 + $0x80] sm:$0xff]  ;;  %v2664_v61 = vld [vmem:[#allocation13 + $0x78] sm:$0xff] }
 0x7c9   : > { %2737 = vmatprep.subr.mxu1 %v2668_v11 }
 0x7ca   : > { %2349 = vadd.xlane.f32.xlu0 %v2348_v13  ;;  %v2340_v24 = vmul.f32 %v4718_v30, %v4718_v30  ;;  %v2341_v22 = vmul.f32 %v4721_v62, %v4721_v62  ;;  %2738 = vmatpush1.msra.mxu1 %v2667_v26  ;;  %v2663_v13 = vld [vmem:[#allocation13 + $0x70] sm:$0xff] }
 0x7cb   : > { %2739 = vmatprep.subr.mxu1 %v2666_v28 }
 0x7cc   : > { %v2351_v14 = vadd.f32 %v2341_v22, %v2340_v24  ;;  %2740 = vmatpush1.msra.mxu1 %v2665_v12  ;;  %v2662_v24 = vld [vmem:[#allocation13 + $0x68] sm:$0xff]  ;;  %v2661_v22 = vld [vmem:[#allocation13 + $0x60] sm:$0xff] }
 0x7cd   : > { %2741 = vmatprep.subr.mxu1 %v2664_v61 }
 0x7ce   : > { %2352 = vadd.xlane.f32.xlu1 %v2351_v14  ;;  %2742 = vmatpush1.msra.mxu1 %v2663_v13  ;;  %v2660_v14 = vld [vmem:[#allocation13 + $0x58] sm:$0xff] }
 0x7cf   : > { %2743 = vmatprep.subr.mxu1 %v2662_v24 }
 0x7d0   : > { %2744 = vmatpush1.msra.mxu1 %v2661_v22 }
 0x7d1   : > { %2745 = vmatprep.subr.mxu1 %v2660_v14 }
 0x7d2   : > { %2746 = vmatpush1.msra.mxu1 %v2659_v21 }
 0x7d3   : > { %2747 = vmatprep.subr.mxu1 %v2658_v41 }
 0x7d4   : > { %2748 = vmatpush1.msra.mxu1 %v2657_v38 }
 0x7d5   : > { %2749 = vmatprep.subr.mxu1 %v2656_v15 }
 0x7d6   : > { %2750 = vmatpush1.msra.mxu1 %v2655_v16 }
 0x7d7   : > { %2751 = vmatprep.subr.mxu1 %v2654_v43  ;;  %v2712_v43 = vld [vmem:[#allocation13 + $0x1f8] sm:$0xff] }
 0x7d8   : > { %2752 = vmatpush1.msra.mxu1 %v2653_v48  ;;  %v2711_v48 = vld [vmem:[#allocation13 + $0x1f0] sm:$0xff] }
 0x7d9   : > { %2753 = vmatprep.subr.mxu1 %v2652_v27  ;;  %v2710_v27 = vld [vmem:[#allocation13 + $0x1e8] sm:$0xff] }
 0x7da   : > { %2754 = vmatpush1.msra.mxu1 %v2651_v47  ;;  %v2707_v47 = vld [vmem:[#allocation13 + $0x1d0] sm:$0xff] }
 0x84b   : > { %v2344_v49 = vpop.xlane.xlu0 %2343 }
 0x84c   : > { %v2354_v51 = vmul.f32 0.00390625, %v2344_v49  ;;  %v2706_v49 = vld [vmem:[#allocation13 + $0x1c8] sm:$0xff] }
 0x84e   : > { %v2358_v17 = vadd.f32 1e-05, %v2354_v51  ;;  %v2705_v51 = vld [vmem:[#allocation13 + $0x1c0] sm:$0xff] }
 0x84f   : > { %v2347_v6 = vpop.xlane.xlu1 %2346 }
 0x850   : > { %3735 = vrsqrt.f32 %v2358_v17  ;;  %v2355_v56 = vmul.f32 0.00390625, %v2347_v6  ;;  %v2704_v17 = vld [vmem:[#allocation13 + $0x1b8] sm:$0xff]  ;;  %v2703_v6 = vld [vmem:[#allocation13 + $0x1b0] sm:$0xff] }
 0x852   : > { %v2359_v18 = vadd.f32 1e-05, %v2355_v56  ;;  %v2702_v56 = vld [vmem:[#allocation13 + $0x1a8] sm:$0xff] }
 0x853   : > { %v2350_v19 = vpop.xlane.xlu0 %2349 }
 0x854   : > { %3737 = vrsqrt.f32 %v2359_v18  ;;  %v2356_v20 = vmul.f32 0.00390625, %v2350_v19  ;;  %v2701_v18 = vld [vmem:[#allocation13 + $0x1a0] sm:$0xff]  ;;  %v2700_v19 = vld [vmem:[#allocation13 + $0x198] sm:$0xff] }
 0x856   : > { %v2360_v31 = vadd.f32 1e-05, %v2356_v20  ;;  %v2699_v20 = vld [vmem:[#allocation13 + $0x190] sm:$0xff] }
 0x857   : > { %v2353_v33 = vpop.xlane.xlu1 %2352 }
 0x858   : > { %3739 = vrsqrt.f32 %v2360_v31  ;;  %v2357_v34 = vmul.f32 0.00390625, %v2353_v33  ;;  %v2698_v31 = vld [vmem:[#allocation13 + $0x188] sm:$0xff]  ;;  %v2697_v33 = vld [vmem:[#allocation13 + $0x180] sm:$0xff] }
 0x85a   : > { %v2361_v29 = vadd.f32 1e-05, %v2357_v34  ;;  %v2696_v34 = vld [vmem:[#allocation13 + $0x178] sm:$0xff] }
 0x85c   : > { %3741 = vrsqrt.f32 %v2361_v29  ;;  %v2694_v29 = vld [vmem:[#allocation13 + $0x168] sm:$0xff] }
 0x85d   : > { %v3736_v50 = vpop.eup %3735 }
 0x85e   : > { %v2367_v52 = vmul.f32 %v3736_v50, %v4691_v59  ;;  %v2366_v1 = vmul.f32 %v3736_v50, %v4688_v58  ;;  %v2690_v50 = vld [vmem:[#allocation13 + $0x148] sm:$0xff] }
 0x860   : > { %v2386_v2 = vmul.f32 %v2382_v37, %v2367_v52  ;;  %v2385_v3 = vmul.f32 %v2378_v42, %v2366_v1  ;;  %v2689_v52 = vld [vmem:[#allocation13 + $0x140] sm:$0xff]  ;;  %v2686_v1 = vld [vmem:[#allocation13 + $0x128] sm:$0xff] }
 0x861   : > { %v3738_v7 = vpop.eup %3737 }
 0x862   : > { %v2405_v9 = vadd.f32 %v2401_v60, %v2386_v2  ;;  %v2404_v44 = vadd.f32 %v2397_v57, %v2385_v3  ;;  %v2369_v46 = vmul.f32 %v3738_v7, %v4701_v35  ;;  %v2368_v53 = vmul.f32 %v3738_v7, %v4698_v55  ;;  %v2685_v2 = vld [vmem:[#allocation13 + $0x120] sm:$0xff]  ;;  %v2684_v3 = vld [vmem:[#allocation13 + $0x118] sm:$0xff]  ;;  %v2683_v7 = vld [vmem:[#allocation13 + $0x110] sm:$0xff] }
 0x864   : > { %2552 = vmatprep.mubr.f32.mxu0 %v2405_v9  ;;  %v2388_v11 = vmul.f32 %v2382_v37, %v2369_v46  ;;  %v2387_v26 = vmul.f32 %v2378_v42, %v2368_v53  ;;  %v2682_v9 = vld [vmem:[#allocation13 + $0x108] sm:$0xff]  ;;  %v2917_v46 = vld [vmem:[#allocation14 + $0xf8] sm:$0xff]  ;;  %v2916_v53 = vld [vmem:[#allocation14 + $0xf0] sm:$0xff] }
 0x865   : > { %v3740_v28 = vpop.eup %3739  ;;  %2553 = vmatmul.mubr.f32.vlgmr.msra.gmra.mxu0 %v2404_v44  ;;  %v2681_v44 = vld [vmem:[#allocation13 + $0x100] sm:$0xff]  ;;  %2962 = vmatprep.subr.mxu0 %v2917_v46 }
 0x866   : > { %v2407_v59 = vadd.f32 %v2401_v60, %v2388_v11  ;;  %v2406_v12 = vadd.f32 %v2397_v57, %v2387_v26  ;;  %v2371_v61 = vmul.f32 %v3740_v28, %v4711_v54  ;;  %v2370_v58 = vmul.f32 %v3740_v28, %v4708_v10  ;;  %v2650_v10 = vld [vmem:[#allocation13 + $0x8] sm:$0xff]  ;;  %v2649_v54 = vld [vmem:[#allocation13] sm:$0xff]  ;;  %2963 = vmatpush1.msra.mxu0 %v2916_v53  ;;  %v2913_v28 = vld [vmem:[#allocation14 + $0xd8] sm:$0xff] }
 0x867   : > { %2755 = vmatprep.subr.mxu1 %v2650_v10  ;;  %v2915_v11 = vld [vmem:[#allocation14 + $0xe8] sm:$0xff]  ;;  %v2914_v26 = vld [vmem:[#allocation14 + $0xe0] sm:$0xff]  ;;  %v2897_v10 = vld [vmem:[#allocation14 + $0x58] sm:$0xff] }
 0x868   : > { %2558 = vmatprep.mubr.f32.mxu0 %v2407_v59  ;;  %v2390_v13 = vmul.f32 %v2382_v37, %v2371_v61  ;;  %v2389_v24 = vmul.f32 %v2378_v42, %v2370_v58  ;;  %2756 = vmatpush1.msra.mxu1 %v2649_v54  ;;  %v2912_v59 = vld [vmem:[#allocation14 + $0xd0] sm:$0xff]  ;;  %v2910_v61 = vld [vmem:[#allocation14 + $0xc0] sm:$0xff]  ;;  %v2909_v58 = vld [vmem:[#allocation14 + $0xb8] sm:$0xff] }
 0x869   : > { %v3742_v22 = vpop.eup %3741  ;;  %2559 = vmatmul.mubr.f32.gmra.mxu0 %v2406_v12  ;;  %2757 = vmatprep.subr.mxu1 %v2712_v43  ;;  %v2911_v12 = vld [vmem:[#allocation14 + $0xc8] sm:$0xff]  ;;  %v2896_v54 = vld [vmem:[#allocation14 + $0x50] sm:$0xff] }
 0x86a   : > { %v2409_v14 = vadd.f32 %v2401_v60, %v2390_v13  ;;  %v2408_v35 = vadd.f32 %v2397_v57, %v2389_v24  ;;  %v2373_v55 = vmul.f32 %v3742_v22, %v4721_v62  ;;  %v2372_v21 = vmul.f32 %v3742_v22, %v4718_v30  ;;  %2758 = vmatpush2.msra.mxu1 %v2711_v48  ;;  %v2709_v62 = vld [vmem:[#allocation13 + $0x1e0] sm:$0xff]  ;;  %v2708_v30 = vld [vmem:[#allocation13 + $0x1d8] sm:$0xff]  ;;  %v2908_v13 = vld [vmem:[#allocation14 + $0xb0] sm:$0xff] }
 0x86b   : > { %2759 = vmatprep.subr.mxu1 %v2710_v27  ;;  %2964 = vmatprep.subr.mxu0 %v2915_v11  ;;  %v2907_v24 = vld [vmem:[#allocation14 + $0xa8] sm:$0xff]  ;;  %v2906_v22 = vld [vmem:[#allocation14 + $0xa0] sm:$0xff]  ;;  %v2893_v27 = vld [vmem:[#allocation14 + $0x38] sm:$0xff] }
 0x86c   : > { %2564 = vmatprep.mubr.f32.mxu0 %v2409_v14  ;;  %v2392_v41 = vmul.f32 %v2382_v37, %v2373_v55  ;;  %v2391_v38 = vmul.f32 %v2378_v42, %v2372_v21  ;;  %2760 = vmatpush2.msra.mxu1 %v2709_v62  ;;  %v2692_v42 = vld [vmem:[#allocation13 + $0x158] sm:$0xff]  ;;  %v2691_v37 = vld [vmem:[#allocation13 + $0x150] sm:$0xff]  ;;  %v2903_v55 = vld [vmem:[#allocation14 + $0x88] sm:$0xff] }
 0x86d   : > { %2565 = vmatmul.mubr.f32.gmra.mxu0 %v2408_v35  ;;  %2761 = vmatprep.subr.mxu1 %v2708_v30  ;;  %v2905_v14 = vld [vmem:[#allocation14 + $0x98] sm:$0xff]  ;;  %v2904_v35 = vld [vmem:[#allocation14 + $0x90] sm:$0xff]  ;;  %v2902_v21 = vld [vmem:[#allocation14 + $0x80] sm:$0xff] }
 0x86e   : > { %v2411_v15 = vadd.f32 %v2401_v60, %v2392_v41  ;;  %v2410_v16 = vadd.f32 %v2397_v57, %v2391_v38  ;;  %2762 = vmatpush2.msra.mxu1 %v2707_v47  ;;  %v2688_v57 = vld [vmem:[#allocation13 + $0x138] sm:$0xff]  ;;  %v2687_v60 = vld [vmem:[#allocation13 + $0x130] sm:$0xff]  ;;  %2965 = vmatpush1.msra.mxu0 %v2914_v26  ;;  %v2895_v43 = vld [vmem:[#allocation14 + $0x48] sm:$0xff] }
 0x86f   : > { %2763 = vmatprep.subr.mxu1 %v2706_v49  ;;  %2966 = vmatprep.subr.mxu0 %v2913_v28  ;;  %v2901_v41 = vld [vmem:[#allocation14 + $0x78] sm:$0xff]  ;;  %v2900_v38 = vld [vmem:[#allocation14 + $0x70] sm:$0xff]  ;;  %v2894_v48 = vld [vmem:[#allocation14 + $0x40] sm:$0xff] }
 0x870   : > { %2570 = vmatprep.mubr.f32.mxu0 %v2411_v15  ;;  %2764 = vmatpush2.msra.mxu1 %v2705_v51  ;;  %v2899_v15 = vld [vmem:[#allocation14 + $0x68] sm:$0xff]  ;;  %v2892_v62 = vld [vmem:[#allocation14 + $0x30] sm:$0xff]  ;;  %v2890_v47 = vld [vmem:[#allocation14 + $0x20] sm:$0xff] }
 0x871   : > { %2571 = vmatmul.mubr.f32.gmra.mxu0 %v2410_v16  ;;  %2765 = vmatprep.subr.mxu1 %v2704_v17  ;;  %v2898_v16 = vld [vmem:[#allocation14 + $0x60] sm:$0xff]  ;;  %v2891_v30 = vld [vmem:[#allocation14 + $0x28] sm:$0xff]  ;;  %v2889_v49 = vld [vmem:[#allocation14 + $0x18] sm:$0xff] }
 0x872   : > { %2766 = vmatpush2.msra.mxu1 %v2703_v6  ;;  %2967 = vmatpush1.msra.mxu0 %v2912_v59  ;;  %v2888_v51 = vld [vmem:[#allocation14 + $0x10] sm:$0xff]  ;;  %v2476_v17 = vld [vmem:[%s4988_s11] sm:$0x3] }
 0x873   : > { %2767 = vmatprep.subr.mxu1 %v2702_v56  ;;  %2968 = vmatprep.subr.mxu0 %v2911_v12  ;;  %v2481_v6 = vrot.slane %v2476_v17, %v4448_v23  ;;  %v2485_v56 = vrot.slane %v2476_v17, %v4453_v25 }
 0x874   : > { %2768 = vmatpush2.msra.mxu1 %v2701_v18  ;;  %2969 = vmatpush1.msra.mxu0 %v2910_v61 }
 0x875   : > { %2769 = vmatprep.subr.mxu1 %v2700_v19  ;;  %2970 = vmatprep.subr.mxu0 %v2909_v58 }
 0x876   : > { %2770 = vmatpush2.msra.mxu1 %v2699_v20  ;;  %2971 = vmatpush1.msra.mxu0 %v2908_v13 }
 0x877   : > { %2771 = vmatprep.subr.mxu1 %v2698_v31  ;;  %2972 = vmatprep.subr.mxu0 %v2907_v24 }
 0x878   : > { %2772 = vmatpush2.msra.mxu1 %v2697_v33  ;;  %2973 = vmatpush1.msra.mxu0 %v2906_v22 }
 0x879   : > { %2773 = vmatprep.subr.mxu1 %v2696_v34  ;;  %2974 = vmatprep.subr.mxu0 %v2905_v14 }
 0x87a   : > { %2774 = vmatpush2.msra.mxu1 %v2695_v39  ;;  %2975 = vmatpush1.msra.mxu0 %v2904_v35 }
 0x87b   : > { %2775 = vmatprep.subr.mxu1 %v2694_v29  ;;  %2976 = vmatprep.subr.mxu0 %v2903_v55 }
 0x87c   : > { %2776 = vmatpush2.msra.mxu1 %v2693_v40  ;;  %2977 = vmatpush1.msra.mxu0 %v2902_v21 }
 0x87d   : > { %2777 = vmatprep.subr.mxu1 %v2692_v42  ;;  %2978 = vmatprep.subr.mxu0 %v2901_v41 }
 0x87e   : > { %2778 = vmatpush2.msra.mxu1 %v2691_v37  ;;  %2979 = vmatpush1.msra.mxu0 %v2900_v38 }
 0x87f   : > { %2779 = vmatprep.subr.mxu1 %v2690_v50  ;;  %2980 = vmatprep.subr.mxu0 %v2899_v15 }
 0x880   : > { %2780 = vmatpush2.msra.mxu1 %v2689_v52  ;;  %2981 = vmatpush1.msra.mxu0 %v2898_v16 }
 0x881   : > { %2781 = vmatprep.subr.mxu1 %v2688_v57  ;;  %2982 = vmatprep.subr.mxu0 %v2897_v10 }
 0x882   : > { %2782 = vmatpush2.msra.mxu1 %v2687_v60  ;;  %2983 = vmatpush1.msra.mxu0 %v2896_v54 }
 0x883   : > { %2783 = vmatprep.subr.mxu1 %v2686_v1  ;;  %2984 = vmatprep.subr.mxu0 %v2895_v43 }
 0x884   : > { %2784 = vmatpush2.msra.mxu1 %v2685_v2  ;;  %2985 = vmatpush1.msra.mxu0 %v2894_v48 }
 0x885   : > { %2785 = vmatprep.subr.mxu1 %v2684_v3  ;;  %2986 = vmatprep.subr.mxu0 %v2893_v27 }
 0x886   : > { %2786 = vmatpush2.msra.mxu1 %v2683_v7  ;;  %2987 = vmatpush1.msra.mxu0 %v2892_v62 }
 0x887   : > { %2787 = vmatprep.subr.mxu1 %v2682_v9  ;;  %2988 = vmatprep.subr.mxu0 %v2891_v30 }
 0x888   : > { %2788 = vmatpush2.msra.mxu1 %v2681_v44  ;;  %2989 = vmatpush1.msra.mxu0 %v2890_v47 }
 0x889   : > { %2990 = vmatprep.subr.mxu0 %v2889_v49 }
 0x88a   : > { %2991 = vmatpush1.msra.mxu0 %v2888_v51 }
 0x925   : > { %v2554_v18 = vpop.f32.mrf.mxu0 }
 0x926   : > { %v4750_v19 = vadd.f32 %v2554_v18, %v2481_v6 }
 0x927   : > { %v2556_v20 = vpop.f32.mrf.mxu0 }
 0x928   : > { %v2585_v31 = vmul.f32 %v4750_v19, %v4750_v19  ;;  %v2557_v33 = vadd.f32 %v2556_v20, %v2485_v56 }
 0x929   : > { %v2560_v34 = vpop.f32.mrf.mxu0 }
 0x92a   : > { %v2593_v39 = vmul.f32 %v2585_v31, %v4750_v19  ;;  %v2586_v29 = vmul.f32 %v2557_v33, %v2557_v33  ;;  %v4755_v40 = vadd.f32 %v2560_v34, %v2481_v6 }
 0x92b   : > { %v2562_v42 = vpop.f32.mrf.mxu0 }
 0x92c   : > { %v2601_v37 = vmul.f32 0.044715, %v2593_v39  ;;  %v2594_v50 = vmul.f32 %v2586_v29, %v2557_v33  ;;  %v2587_v52 = vmul.f32 %v4755_v40, %v4755_v40  ;;  %v2563_v57 = vadd.f32 %v2562_v42, %v2485_v56 }
 0x92d   : > { %v2566_v60 = vpop.f32.mrf.mxu0  ;;  %v2578_v29 = vmul.f32 0.5, %v2557_v33 }
 0x92e   : > { %v2609_v1 = vadd.f32 %v2601_v37, %v4750_v19  ;;  %v2602_v2 = vmul.f32 0.044715, %v2594_v50  ;;  %v2595_v3 = vmul.f32 %v2587_v52, %v4755_v40  ;;  %v2588_v7 = vmul.f32 %v2563_v57, %v2563_v57 }
 0x92f   : > { %v4761_v9 = vadd.f32 %v2566_v60, %v2481_v6  ;;  %v2568_v44 = vpop.f32.mrf.mxu0  ;;  %v2577_v50 = vmul.f32 0.5, %v4750_v19 }
 0x930   : > { %v2617_v46 = vmul.f32 0.7978846, %v2609_v1  ;;  %v2610_v53 = vadd.f32 %v2602_v2, %v2557_v33  ;;  %v2603_v11 = vmul.f32 0.044715, %v2595_v3  ;;  %v2596_v26 = vmul.f32 %v2588_v7, %v2563_v57 }
 0x931   : > { %v2589_v28 = vmul.f32 %v4761_v9, %v4761_v9  ;;  %v2569_v59 = vadd.f32 %v2568_v44, %v2485_v56  ;;  %v2572_v12 = vpop.f32.mrf.mxu0  ;;  %v2580_v3 = vmul.f32 0.5, %v2563_v57  ;;  %v2579_v44 = vmul.f32 0.5, %v4755_v40 }
 0x932   : > { %3743 = vtanh.f32 %v2617_v46  ;;  %v2618_v61 = vmul.f32 0.7978846, %v2610_v53  ;;  %v2611_v58 = vadd.f32 %v2603_v11, %v4755_v40  ;;  %v2604_v13 = vmul.f32 0.044715, %v2596_v26 }
 0x933   : > { %v2597_v24 = vmul.f32 %v2589_v28, %v4761_v9  ;;  %v2590_v22 = vmul.f32 %v2569_v59, %v2569_v59  ;;  %v4767_v14 = vadd.f32 %v2572_v12, %v2481_v6  ;;  %v2574_v35 = vpop.f32.mrf.mxu0  ;;  %v2582_v28 = vmul.f32 0.5, %v2569_v59 }
 0x934   : > { %v2619_v55 = vmul.f32 0.7978846, %v2611_v58  ;;  %v2612_v21 = vadd.f32 %v2604_v13, %v2563_v57  ;;  %v2575_v41 = vadd.f32 %v2574_v35, %v2485_v56  ;;  %3745 = vtanh.f32 %v2618_v61 }
 0x935   : > { %v2605_v38 = vmul.f32 0.044715, %v2597_v24  ;;  %v2598_v15 = vmul.f32 %v2590_v22, %v2569_v59  ;;  %v2591_v16 = vmul.f32 %v4767_v14, %v4767_v14  ;;  %v2581_v61 = vmul.f32 0.5, %v4761_v9 }
 0x936   : > { %v2620_v10 = vmul.f32 0.7978846, %v2612_v21  ;;  %v2592_v54 = vmul.f32 %v2575_v41, %v2575_v41  ;;  %3747 = vtanh.f32 %v2619_v55  ;;  %v2584_v57 = vmul.f32 0.5, %v2575_v41 }
 0x937   : > { %v2613_v43 = vadd.f32 %v2605_v38, %v4761_v9  ;;  %v2606_v48 = vmul.f32 0.044715, %v2598_v15  ;;  %v2599_v27 = vmul.f32 %v2591_v16, %v4767_v14  ;;  %v2583_v55 = vmul.f32 0.5, %v4767_v14  ;;  %v2887_v38 = vld [vmem:[#allocation14 + $0x8] sm:$0xff]  ;;  %v2949_v15 = vld [vmem:[#allocation14 + $0x1f8] sm:$0xff]  ;;  %v2948_v9 = vld [vmem:[#allocation14 + $0x1f0] sm:$0xff] }
 0x938   : > { %v2600_v62 = vmul.f32 %v2592_v54, %v2575_v41  ;;  %3749 = vtanh.f32 %v2620_v10  ;;  %2992 = vmatprep.subr.mxu0 %v2887_v38  ;;  %v2947_v16 = vld [vmem:[#allocation14 + $0x1e8] sm:$0xff]  ;;  %v2945_v10 = vld [vmem:[#allocation14 + $0x1d8] sm:$0xff]  ;;  %v2944_v54 = vld [vmem:[#allocation14 + $0x1d0] sm:$0xff] }
 0x939   : > { %v2621_v30 = vmul.f32 0.7978846, %v2613_v43  ;;  %v2614_v47 = vadd.f32 %v2606_v48, %v2569_v59  ;;  %v2607_v49 = vmul.f32 0.044715, %v2599_v27  ;;  %v2886_v59 = vld [vmem:[#allocation14] sm:$0xff]  ;;  %v2941_v48 = vld [vmem:[#allocation14 + $0x1b8] sm:$0xff] }
 0x93a   : > { %v2608_v51 = vmul.f32 0.044715, %v2600_v62  ;;  %2993 = vmatpush1.msra.mxu0 %v2886_v59  ;;  %v2942_v43 = vld [vmem:[#allocation14 + $0x1c0] sm:$0xff]  ;;  %v2940_v27 = vld [vmem:[#allocation14 + $0x1b0] sm:$0xff]  ;;  %v2939_v62 = vld [vmem:[#allocation14 + $0x1a8] sm:$0xff] }
 0x93b   : > { %v2622_v17 = vmul.f32 0.7978846, %v2614_v47  ;;  %v2615_v6 = vadd.f32 %v2607_v49, %v4767_v14  ;;  %3751 = vtanh.f32 %v2621_v30  ;;  %2994 = vmatprep.subr.mxu0 %v2949_v15  ;;  %v2943_v14 = vld [vmem:[#allocation14 + $0x1c8] sm:$0xff]  ;;  %v2938_v30 = vld [vmem:[#allocation14 + $0x1a0] sm:$0xff]  ;;  %v2937_v47 = vld [vmem:[#allocation14 + $0x198] sm:$0xff] }
 0x93c   : > { %v2616_v56 = vadd.f32 %v2608_v51, %v2575_v41  ;;  %2995 = vmatpush2.msra.mxu0 %v2948_v9  ;;  %v2946_v41 = vld [vmem:[#allocation14 + $0x1e0] sm:$0xff]  ;;  %v2936_v49 = vld [vmem:[#allocation14 + $0x190] sm:$0xff]  ;;  %v2935_v51 = vld [vmem:[#allocation14 + $0x188] sm:$0xff] }
 0x93d   : > { %v2623_v18 = vmul.f32 0.7978846, %v2615_v6  ;;  %3753 = vtanh.f32 %v2622_v17  ;;  %2996 = vmatprep.subr.mxu0 %v2947_v16  ;;  %v2934_v17 = vld [vmem:[#allocation14 + $0x180] sm:$0xff]  ;;  %v2933_v6 = vld [vmem:[#allocation14 + $0x178] sm:$0xff]  ;;  %v4834_v38 = vld [vmem:[#allocation16 + $0xa8] sm:$0xff] }
 0x93e   : > { %v2624_v20 = vmul.f32 0.7978846, %v2616_v56  ;;  %2997 = vmatpush2.msra.mxu0 %v2946_v41  ;;  %v2932_v56 = vld [vmem:[#allocation14 + $0x170] sm:$0xff]  ;;  %v4837_v59 = vld [vmem:[#allocation16 + $0x28] sm:$0xff]  ;;  %v4840_v15 = vld [vmem:[#allocation16 + $0xa0] sm:$0xff] }
 0x93f   : > { %v3744_v31 = vpop.eup %3743  ;;  %3755 = vtanh.f32 %v2623_v18  ;;  %2998 = vmatprep.subr.mxu0 %v2945_v10  ;;  %v2931_v18 = vld [vmem:[#allocation14 + $0x168] sm:$0xff]  ;;  %v4843_v9 = vld [vmem:[#allocation16 + $0x20] sm:$0xff] }
 0x940   : > { %3757 = vtanh.f32 %v2624_v20  ;;  %v2633_v39 = vadd.f32 1.0, %v3744_v31  ;;  %2999 = vmatpush2.msra.mxu0 %v2944_v54  ;;  %v2930_v20 = vld [vmem:[#allocation14 + $0x160] sm:$0xff]  ;;  %v2929_v31 = vld [vmem:[#allocation14 + $0x158] sm:$0xff] }
 0x941   : > { %v3746_v34 = vpop.eup %3745  ;;  %3000 = vmatprep.subr.mxu0 %v2943_v14  ;;  %v2713_v16 = vld [vmem:[%s5046_s10] sm:$0x3]  ;;  %s3188_s10 = scalar_lea.sflag [#allocation4], %s4416_s21 }
 0x942   : > { %v2634_v42 = vadd.f32 1.0, %v3746_v34  ;;  %v2641_v1 = vmul.f32 %v2633_v39, %v2577_v50  ;;  %3001 = vmatpush2.msra.mxu0 %v2942_v43  ;;  %v2928_v34 = vld [vmem:[#allocation14 + $0x150] sm:$0xff]  ;;  %v2927_v39 = vld [vmem:[#allocation14 + $0x148] sm:$0xff]  ;;  %v2718_v41 = vrot.slane %v2713_v16, %v4448_v23  ;;  %v2722_v10 = vrot.slane %v2713_v16, %v4453_v25 }
 0x943   : > { %v3748_v37 = vpop.eup %3747  ;;  %3002 = vmatprep.subr.mxu0 %v2941_v48  ;;  %v2923_v50 = vld [vmem:[#allocation14 + $0x128] sm:$0xff] }
 0x944   : > { %v2642_v52 = vmul.f32 %v2634_v42, %v2578_v29  ;;  %v2635_v2 = vadd.f32 1.0, %v3748_v37  ;;  %3003 = vmatpush2.msra.mxu0 %v2940_v27  ;;  %v2926_v29 = vld [vmem:[#allocation14 + $0x140] sm:$0xff]  ;;  %v2925_v42 = vld [vmem:[#allocation14 + $0x138] sm:$0xff]  ;;  %v2924_v37 = vld [vmem:[#allocation14 + $0x130] sm:$0xff] }
 0x945   : > { %v3750_v60 = vpop.eup %3749  ;;  %3004 = vmatprep.subr.mxu0 %v2939_v62 }
 0x946   : > { %2789 = vmatprep.mubr.f32.mxu1 %v2642_v52  ;;  %v2636_v7 = vadd.f32 1.0, %v3750_v60  ;;  %v2643_v11 = vmul.f32 %v2635_v2, %v2579_v44  ;;  %3005 = vmatpush2.msra.mxu0 %v2938_v30  ;;  %v2922_v52 = vld [vmem:[#allocation14 + $0x120] sm:$0xff]  ;;  %v2921_v60 = vld [vmem:[#allocation14 + $0x118] sm:$0xff]  ;;  %v2919_v2 = vld [vmem:[#allocation14 + $0x108] sm:$0xff] }
 0x947   : > { %2790 = vmatmul.mubr.f32.vlgmr.msra.gmra.mxu1 %v2641_v1  ;;  %3006 = vmatprep.subr.mxu0 %v2937_v47  ;;  %v2920_v1 = vld [vmem:[#allocation14 + $0x110] sm:$0xff]  ;;  %v4778_v44 = vld [vmem:[#allocation16 + $0x78] sm:$0xff] }
 0x948   : > { %v3752_v46 = vpop.eup %3751  ;;  %v2644_v53 = vmul.f32 %v2636_v7, %v2580_v3  ;;  %3007 = vmatpush2.msra.mxu0 %v2936_v49  ;;  %v2918_v3 = vld [vmem:[#allocation14 + $0x100] sm:$0xff]  ;;  %v3090_v7 = vld [vmem:[#allocation16 + $0xf8] sm:$0xff] }
 0x949   : > { %v2637_v33 = vadd.f32 1.0, %v3752_v46  ;;  %3008 = vmatprep.subr.mxu0 %v2935_v51  ;;  %3527 = vmatprep.subr.mxu1 %v3090_v7  ;;  %v4780_v46 = vld [vmem:[#allocation16 + $0xf0] sm:$0xff] }
 0x94a   : > { %v3754_v26 = vpop.eup %3753  ;;  %2795 = vmatprep.mubr.f32.mxu1 %v2644_v53  ;;  %3009 = vmatpush2.msra.mxu0 %v2934_v17  ;;  %v4783_v53 = vld [vmem:[#allocation16 + $0x70] sm:$0xff] }
 0x94b   : > { %2796 = vmatmul.mubr.f32.gmra.mxu1 %v2643_v11  ;;  %v2638_v12 = vadd.f32 1.0, %v3754_v26  ;;  %v2645_v24 = vmul.f32 %v2637_v33, %v2581_v61  ;;  %3010 = vmatprep.subr.mxu0 %v2933_v6  ;;  %v4786_v11 = vld [vmem:[#allocation16 + $0xe8] sm:$0xff]  ;;  %v4792_v33 = vld [vmem:[#allocation16 + $0xe0] sm:$0xff]  ;;  %v4804_v61 = vld [vmem:[#allocation16 + $0xd0] sm:$0xff] }
 0x94c   : > { %v3756_v19 = vpop.eup %3755  ;;  %3011 = vmatpush2.msra.mxu0 %v2932_v56  ;;  %3543 = vmatpush3.msra.mxu1 %v4778_v44  ;;  %v4789_v26 = vld [vmem:[#allocation16 + $0x68] sm:$0xff] }
 0x94d   : > { %v3758_v58 = vpop.eup %3757  ;;  %v2646_v13 = vmul.f32 %v2638_v12, %v2582_v28  ;;  %v2639_v35 = vadd.f32 1.0, %v3756_v19  ;;  %3012 = vmatprep.subr.mxu0 %v2931_v18  ;;  %3528 = vmatprep.subr.mxu1 %v4780_v46  ;;  %v4795_v28 = vld [vmem:[#allocation16 + $0x60] sm:$0xff]  ;;  %v4798_v12 = vld [vmem:[#allocation16 + $0xd8] sm:$0xff] }
 0x94e   : > { %v2640_v22 = vadd.f32 1.0, %v3758_v58  ;;  %3013 = vmatpush2.msra.mxu0 %v2930_v20  ;;  %3544 = vmatpush3.msra.mxu1 %v4783_v53  ;;  %v4801_v19 = vld [vmem:[#allocation16 + $0x58] sm:$0xff]  ;;  %v4807_v58 = vld [vmem:[#allocation16 + $0x50] sm:$0xff] }
 0x94f   : > { %2801 = vmatprep.mubr.f32.mxu1 %v2646_v13  ;;  %v2647_v21 = vmul.f32 %v2639_v35, %v2583_v55  ;;  %3014 = vmatprep.subr.mxu0 %v2929_v31  ;;  %v4810_v13 = vld [vmem:[#allocation16 + $0xc8] sm:$0xff]  ;;  %v4822_v35 = vld [vmem:[#allocation16 + $0xb8] sm:$0xff]  ;;  %v4828_v55 = vld [vmem:[#allocation16 + $0xb0] sm:$0xff] }
 0x950   : > { %2802 = vmatmul.mubr.f32.gmra.mxu1 %v2645_v24  ;;  %v2648_v40 = vmul.f32 %v2640_v22, %v2584_v57  ;;  %3015 = vmatpush2.msra.mxu0 %v2928_v34  ;;  %v4813_v24 = vld [vmem:[#allocation16 + $0x48] sm:$0xff]  ;;  %v4816_v57 = vld [vmem:[#allocation16 + $0xc0] sm:$0xff] }
 0x951   : > { %3016 = vmatprep.subr.mxu0 %v2927_v39  ;;  %3529 = vmatprep.subr.mxu1 %v4786_v11  ;;  %v4819_v22 = vld [vmem:[#allocation16 + $0x40] sm:$0xff] }
 0x952   : > { %2807 = vmatprep.mubr.f32.mxu1 %v2648_v40  ;;  %3017 = vmatpush2.msra.mxu0 %v2926_v29  ;;  %v4825_v40 = vld [vmem:[#allocation16 + $0x38] sm:$0xff] }
 0x953   : > { %3018 = vmatprep.subr.mxu0 %v2925_v42  ;;  %3545 = vmatpush3.msra.mxu1 %v4789_v26 }
 0x954   : > { %2808 = vmatmul.mubr.f32.gmra.mxu1 %v2647_v21  ;;  %3019 = vmatpush2.msra.mxu0 %v2924_v37  ;;  %v4831_v21 = vld [vmem:[#allocation16 + $0x30] sm:$0xff] }
 0x955   : > { %3020 = vmatprep.subr.mxu0 %v2923_v50  ;;  %3530 = vmatprep.subr.mxu1 %v4792_v33 }
 0x956   : > { %3021 = vmatpush2.msra.mxu0 %v2922_v52  ;;  %3546 = vmatpush3.msra.mxu1 %v4795_v28 }
 0x957   : > { %3022 = vmatprep.subr.mxu0 %v2921_v60  ;;  %3531 = vmatprep.subr.mxu1 %v4798_v12 }
 0x958   : > { %3023 = vmatpush2.msra.mxu0 %v2920_v1  ;;  %3547 = vmatpush3.msra.mxu1 %v4801_v19 }
 0x959   : > { %3024 = vmatprep.subr.mxu0 %v2919_v2  ;;  %3532 = vmatprep.subr.mxu1 %v4804_v61 }
 0x95a   : > { %3025 = vmatpush2.msra.mxu0 %v2918_v3  ;;  %3548 = vmatpush3.msra.mxu1 %v4807_v58 }
 0x95b   : > { %3427 = vmatprep.subr.mxu0 %v3090_v7  ;;  %3533 = vmatprep.subr.mxu1 %v4810_v13 }
 0x95c   : > { %3549 = vmatpush3.msra.mxu1 %v4813_v24 }
 0x95d   : > { %3534 = vmatprep.subr.mxu1 %v4816_v57 }
 0x95e   : > { %3550 = vmatpush3.msra.mxu1 %v4819_v22 }
 0x95f   : > { %3535 = vmatprep.subr.mxu1 %v4822_v35 }
 0x960   : > { %3551 = vmatpush3.msra.mxu1 %v4825_v40 }
 0x961   : > { %3536 = vmatprep.subr.mxu1 %v4828_v55 }
 0x962   : > { %3552 = vmatpush3.msra.mxu1 %v4831_v21 }
 0x963   : > { %3537 = vmatprep.subr.mxu1 %v4834_v38 }
 0x964   : > { %3553 = vmatpush3.msra.mxu1 %v4837_v59 }
 0x965   : > { %3538 = vmatprep.subr.mxu1 %v4840_v15 }
 0x966   : > { %3554 = vmatpush3.msra.mxu1 %v4843_v9 }
 0xa07   : > { %v2791_v54 = vpop.f32.mrf.mxu1 }
 0xa08   : > { %v4852_v14 = vadd.f32 %v2791_v54, %v2718_v41 }
 0xa09   : > { %v2793_v43 = vpop.f32.mrf.mxu1 }
 0xa0a   : > { %v2822_v48 = vmul.f32 %v4852_v14, %v4852_v14  ;;  %v2794_v27 = vadd.f32 %v2793_v43, %v2722_v10 }
 0xa0b   : > { %v2797_v62 = vpop.f32.mrf.mxu1 }
 0xa0c   : > { %v2830_v30 = vmul.f32 %v2822_v48, %v4852_v14  ;;  %v2823_v47 = vmul.f32 %v2794_v27, %v2794_v27  ;;  %v4857_v49 = vadd.f32 %v2797_v62, %v2718_v41 }
 0xa0d   : > { %v2799_v51 = vpop.f32.mrf.mxu1 }
 0xa0e   : > { %v2838_v17 = vmul.f32 0.044715, %v2830_v30  ;;  %v2831_v6 = vmul.f32 %v2823_v47, %v2794_v27  ;;  %v2824_v56 = vmul.f32 %v4857_v49, %v4857_v49  ;;  %v2800_v18 = vadd.f32 %v2799_v51, %v2722_v10 }
 0xa10   : > { %v2846_v20 = vadd.f32 %v2838_v17, %v4852_v14  ;;  %v2839_v31 = vmul.f32 0.044715, %v2831_v6  ;;  %v2832_v34 = vmul.f32 %v2824_v56, %v4857_v49  ;;  %v2825_v39 = vmul.f32 %v2800_v18, %v2800_v18  ;;  %v2803_v29 = vpop.f32.mrf.mxu1 }
 0xa11   : > { %v4863_v42 = vadd.f32 %v2803_v29, %v2718_v41 }
 0xa12   : > { %v2854_v37 = vmul.f32 0.7978846, %v2846_v20  ;;  %v2847_v50 = vadd.f32 %v2839_v31, %v2794_v27  ;;  %v2840_v52 = vmul.f32 0.044715, %v2832_v34  ;;  %v2833_v60 = vmul.f32 %v2825_v39, %v2800_v18  ;;  %v2805_v1 = vpop.f32.mrf.mxu1 }
 0xa13   : > { %v2826_v2 = vmul.f32 %v4863_v42, %v4863_v42  ;;  %v4867_v3 = vadd.f32 %v2805_v1, %v2722_v10 }
 0xa14   : > { %3759 = vtanh.f32 %v2854_v37  ;;  %v2855_v7 = vmul.f32 0.7978846, %v2847_v50  ;;  %v2848_v16 = vadd.f32 %v2840_v52, %v4857_v49  ;;  %v2841_v54 = vmul.f32 0.044715, %v2833_v60  ;;  %v2809_v43 = vpop.f32.mrf.mxu1 }
 0xa15   : > { %v2834_v48 = vmul.f32 %v2826_v2, %v4863_v42  ;;  %v2827_v62 = vmul.f32 %v4867_v3, %v4867_v3  ;;  %v4873_v30 = vadd.f32 %v2809_v43, %v2718_v41 }
 0xa16   : > { %v2856_v47 = vmul.f32 0.7978846, %v2848_v16  ;;  %v2849_v51 = vadd.f32 %v2841_v54, %v2800_v18  ;;  %v2811_v17 = vpop.f32.mrf.mxu1  ;;  %3761 = vtanh.f32 %v2855_v7 }
 0xa17   : > { %v2842_v6 = vmul.f32 0.044715, %v2834_v48  ;;  %v2835_v56 = vmul.f32 %v2827_v62, %v4867_v3  ;;  %v2828_v20 = vmul.f32 %v4873_v30, %v4873_v30  ;;  %v2812_v31 = vadd.f32 %v2811_v17, %v2722_v10 }
 0xa18   : > { %v2857_v34 = vmul.f32 0.7978846, %v2849_v51  ;;  %3763 = vtanh.f32 %v2856_v47  ;;  %v2815_v51 = vmul.f32 0.5, %v2794_v27 }
 0xa19   : > { %v2850_v39 = vadd.f32 %v2842_v6, %v4863_v42  ;;  %v2843_v29 = vmul.f32 0.044715, %v2835_v56  ;;  %v2836_v37 = vmul.f32 %v2828_v20, %v4873_v30  ;;  %v2829_v41 = vmul.f32 %v2812_v31, %v2812_v31 }
 0xa1a   : > { %3765 = vtanh.f32 %v2857_v34  ;;  %v2814_v56 = vmul.f32 0.5, %v4852_v14 }
 0xa1b   : > { %v2858_v50 = vmul.f32 0.7978846, %v2850_v39  ;;  %v2851_v52 = vadd.f32 %v2843_v29, %v4867_v3  ;;  %v2844_v60 = vmul.f32 0.044715, %v2836_v37  ;;  %v2837_v1 = vmul.f32 %v2829_v41, %v2812_v31 }
 0xa1c   : > { %v2817_v37 = vmul.f32 0.5, %v2800_v18 }
 0xa1d   : > { %v2859_v2 = vmul.f32 0.7978846, %v2851_v52  ;;  %v2852_v7 = vadd.f32 %v2844_v60, %v4873_v30  ;;  %v2845_v16 = vmul.f32 0.044715, %v2837_v1  ;;  %3767 = vtanh.f32 %v2858_v50 }
 0xa1e   : > { %v2816_v50 = vmul.f32 0.5, %v4857_v49  ;;  %v2818_v49 = vmul.f32 0.5, %v4863_v42 }
 0xa1f   : > { %v2860_v10 = vmul.f32 0.7978846, %v2852_v7  ;;  %v2853_v54 = vadd.f32 %v2845_v16, %v2812_v31  ;;  %3769 = vtanh.f32 %v2859_v2  ;;  %v2819_v2 = vmul.f32 0.5, %v4867_v3 }
 0xa21   : > { %v3760_v43 = vpop.eup %3759  ;;  %v2861_v48 = vmul.f32 0.7978846, %v2853_v54  ;;  %3771 = vtanh.f32 %v2860_v10 }
 0xa22   : > { %v2870_v47 = vadd.f32 1.0, %v3760_v43 }
 0xa23   : > { %v3762_v62 = vpop.eup %3761  ;;  %3773 = vtanh.f32 %v2861_v48 }
 0xa24   : > { %v2871_v17 = vadd.f32 1.0, %v3762_v62  ;;  %v2878_v39 = vmul.f32 %v2870_v47, %v2814_v56 }
 0xa25   : > { %v3764_v6 = vpop.eup %3763 }
 0xa26   : > { %v2879_v20 = vmul.f32 %v2871_v17, %v2815_v51  ;;  %v2872_v29 = vadd.f32 1.0, %v3764_v6 }
 0xa27   : > { %v3766_v34 = vpop.eup %3765 }
 0xa28   : > { %3026 = vmatprep.mubr.f32.mxu0 %v2879_v20  ;;  %v2873_v41 = vadd.f32 1.0, %v3766_v34  ;;  %v2880_v1 = vmul.f32 %v2872_v29, %v2816_v50  ;;  %v3387_v34 = vld [vmem:[%s5048_s18] ss:$0 sm:$0xff] }
 0xa29   : > { %3027 = vmatmul.mubr.f32.vlgmr.msra.gmra.mxu0 %v2878_v39 }
 0xa2a   : > { %v3768_v52 = vpop.eup %3767  ;;  %v2881_v60 = vmul.f32 %v2873_v41, %v2817_v37  ;;  %3428 = vmatpush3.msra.mxu0 %v4778_v44 }
 0xa2b   : > { %3429 = vmatprep.subr.mxu0 %v4780_v46  ;;  %v2874_v14 = vadd.f32 1.0, %v3768_v52 }
 0xa2c   : > { %v3770_v27 = vpop.eup %3769  ;;  %3032 = vmatprep.mubr.f32.mxu0 %v2881_v60  ;;  %3430 = vmatpush3.msra.mxu0 %v4783_v53  ;;  %v2821_v53 = vmul.f32 0.5, %v2812_v31 }
 0xa2d   : > { %3033 = vmatmul.mubr.f32.gmra.mxu0 %v2880_v1  ;;  %v2875_v18 = vadd.f32 1.0, %v3770_v27  ;;  %3431 = vmatprep.subr.mxu0 %v4786_v11  ;;  %v2882_v16 = vmul.f32 %v2874_v14, %v2818_v49  ;;  %v2820_v11 = vmul.f32 0.5, %v4873_v30 }
 0xa2e   : > { %v3772_v7 = vpop.eup %3771  ;;  %3432 = vmatpush3.msra.mxu0 %v4789_v26 }
 0xa2f   : > { %v2883_v44 = vmul.f32 %v2875_v18, %v2819_v2  ;;  %3433 = vmatprep.subr.mxu0 %v4792_v33  ;;  %v2876_v10 = vadd.f32 1.0, %v3772_v7  ;;  %v3078_v33 = vld [vmem:[#allocation16 + $0x98] sm:$0xff] }
 0xa30   : > { %v3774_v46 = vpop.eup %3773  ;;  %3434 = vmatpush3.msra.mxu0 %v4795_v28  ;;  %v3062_v28 = vld [vmem:[#allocation16 + $0x18] sm:$0xff]  ;;  %3539 = vmatprep.subr.mxu1 %v3078_v33 }
 0xa31   : > { %3038 = vmatprep.mubr.f32.mxu0 %v2883_v44  ;;  %v2877_v54 = vadd.f32 1.0, %v3774_v46  ;;  %3435 = vmatprep.subr.mxu0 %v4798_v12  ;;  %v2884_v26 = vmul.f32 %v2876_v10, %v2820_v11  ;;  %v3077_v12 = vld [vmem:[#allocation16 + $0x90] sm:$0xff] }
 0xa32   : > { %3039 = vmatmul.mubr.f32.gmra.mxu0 %v2882_v16  ;;  %3555 = vmatpush3.msra.mxu1 %v3062_v28 }
 0xa33   : > { %v2885_v3 = vmul.f32 %v2877_v54, %v2821_v53  ;;  %3436 = vmatpush3.msra.mxu0 %v4801_v19  ;;  %v3061_v19 = vld [vmem:[#allocation16 + $0x10] sm:$0xff]  ;;  %3540 = vmatprep.subr.mxu1 %v3077_v12 }
 0xa34   : > { %3437 = vmatprep.subr.mxu0 %v4804_v61  ;;  %v3076_v61 = vld [vmem:[#allocation16 + $0x88] sm:$0xff]  ;;  %3556 = vmatpush3.msra.mxu1 %v3061_v19 }
 0xa35   : > { %3044 = vmatprep.mubr.f32.mxu0 %v2885_v3  ;;  %3438 = vmatpush3.msra.mxu0 %v4807_v58  ;;  %v3060_v58 = vld [vmem:[#allocation16 + $0x8] sm:$0xff] }
 0xa36   : > { %3045 = vmatmul.mubr.f32.gmra.mxu0 %v2884_v26  ;;  %3439 = vmatprep.subr.mxu0 %v4810_v13  ;;  %v3075_v13 = vld [vmem:[#allocation16 + $0x80] sm:$0xff] }
 0xa37   : > { %3440 = vmatpush3.msra.mxu0 %v4813_v24  ;;  %3541 = vmatprep.subr.mxu1 %v3076_v61  ;;  %v3059_v24 = vld [vmem:[#allocation16] sm:$0xff] }
 0xa38   : > { %3441 = vmatprep.subr.mxu0 %v4816_v57  ;;  %3557 = vmatpush3.msra.mxu1 %v3060_v58  ;;  %v2950_v57 = vld [vmem:[%s5047_s24] sm:$0x3]  ;;  %s4017_s24 = scalar_lea.vmem %s4016_s26, 1024 }
 0xa39   : > { %3442 = vmatpush3.msra.mxu0 %v4819_v22  ;;  %3542 = vmatprep.subr.mxu1 %v3075_v13  ;;  %v2955_v22 = vrot.slane %v2950_v57, %v4448_v23  ;;  %p4019_p3 = scmp.lt.s32.totalorder %s4017_s24, %s4011_s20 }
 0xa3a   : > { %3443 = vmatprep.subr.mxu0 %v4822_v35  ;;  %3558 = vmatpush3.msra.mxu1 %v3059_v24  ;;  %v2959_v35 = vrot.slane %v2950_v57, %v4453_v25 }
 0xa3b   : > { %3444 = vmatpush3.msra.mxu0 %v4825_v40  ;;  %p4020_p4 = por %p4019_p3, %p4018_p1 }
 0xa3c   : > { %3445 = vmatprep.subr.mxu0 %v4828_v55 }
 0xa3d   : > { %3446 = vmatpush3.msra.mxu0 %v4831_v21  ;;  %p4021_p6 = pnand %p4020_p4, %p4014_p12 }
 0xa3e   : > { %3447 = vmatprep.subr.mxu0 %v4834_v38 }
 0xa3f   : > { %3448 = vmatpush3.msra.mxu0 %v4837_v59 }
 0xa40   : > { %3449 = vmatprep.subr.mxu0 %v4840_v15 }
 0xa41   : > { %3450 = vmatpush3.msra.mxu0 %v4843_v9 }
 0xa42   : > { %3451 = vmatprep.subr.mxu0 %v3078_v33 }
 0xa43   : > { %3452 = vmatpush3.msra.mxu0 %v3062_v28 }
 0xa44   : > { %3453 = vmatprep.subr.mxu0 %v3077_v12 }
 0xa45   : > { %3454 = vmatpush3.msra.mxu0 %v3061_v19 }
 0xa46   : > { %3455 = vmatprep.subr.mxu0 %v3076_v61 }
 0xa47   : > { %3456 = vmatpush3.msra.mxu0 %v3060_v58 }
 0xa48   : > { %3457 = vmatprep.subr.mxu0 %v3075_v13 }
 0xa49   : > { %3458 = vmatpush3.msra.mxu0 %v3059_v24 }
 0xae9   : > { %v3028_v40 = vpop.f32.mrf.mxu0 }
 0xaea   : > { %v3029_v55 = vadd.f32 %v3028_v40, %v2955_v22 }
 0xaeb   : > { %v3030_v21 = vpop.f32.mrf.mxu0 }
 0xaec   : > { %v3031_v38 = vadd.f32 %v3030_v21, %v2959_v35  ;;  %v3051_v9 = vadd.f32 %v3029_v55, %v4656_v63 }
 0xaed   : > { %v3034_v59 = vpop.f32.mrf.mxu0 }
 0xaee   : > { %v3052_v15 = vadd.f32 %v3031_v38, %v4659_v0  ;;  %v3035_v42 = vadd.f32 %v3034_v59, %v2955_v22 }
 0xaef   : > { %v3036_v30 = vpop.f32.mrf.mxu0 }
 0xaf0   : > { %v3037_v31 = vadd.f32 %v3036_v30, %v2959_v35  ;;  %3162 = vmatprep.mubr.f32.mxu0 %v3052_v15  ;;  %v3053_v23 = vadd.f32 %v3035_v42, %v4664_v4 }
 0xaf1   : > { %3163 = vmatmul.mubr.f32.vlgmr.msra.gmra.mxu0 %v3051_v9 }
 0xaf2   : > { %v3054_v43 = vadd.f32 %v3037_v31, %v4667_v5  ;;  %v3040_v48 = vpop.f32.mrf.mxu0 }
 0xaf3   : > { %v3041_v25 = vadd.f32 %v3040_v48, %v2955_v22 }
 0xaf4   : > { %v3042_v62 = vpop.f32.mrf.mxu0  ;;  %3167 = vmatprep.mubr.f32.mxu1 %v3054_v43 }
 0xaf5   : > { %v3043_v47 = vadd.f32 %v3042_v62, %v2959_v35  ;;  %3168 = vmatmul.mubr.f32.vlgmr.msra.gmra.mxu1 %v3053_v23  ;;  %v3055_v63 = vadd.f32 %v3041_v25, %v4672_v36 }
 0xaf6   : > { %v3046_v51 = vpop.f32.mrf.mxu0 }
 0xaf7   : > { %v3056_v0 = vadd.f32 %v3043_v47, %v4675_v8  ;;  %v3047_v17 = vadd.f32 %v3046_v51, %v2955_v22 }
 0xaf8   : > { %v3048_v6 = vpop.f32.mrf.mxu0 }
 0xaf9   : > { %v3049_v56 = vadd.f32 %v3048_v6, %v2959_v35  ;;  %3172 = vmatprep.mubr.f32.mxu1 %v3056_v0  ;;  %v3057_v4 = vadd.f32 %v3047_v17, %v4680_v45 }
 0xafa   : > { %3173 = vmatmul.mubr.f32.gmra.mxu1 %v3055_v63 }
 0xafb   : > { %v3058_v5 = vadd.f32 %v3049_v56, %v4683_v32 }
 0xafd   : > { %3177 = vmatprep.mubr.f32.mxu1 %v3058_v5 }
 0xafe   : > { %3178 = vmatmul.mubr.f32.gmra.mxu1 %v3057_v4 }
 0xbb1   : > { %v3459_v20 = vpop.f32.mrf.mxu0 }
 0xbb3   : > { %v3460_v8 = vpop.f32.mrf.mxu0 }
 0xbb4   : > { %v3461_v36 = vadd.f32 %v3460_v8, %v3459_v20 }
 0xbb5   : > { %v3462_v39 = vpop.f32.mrf.mxu1 }
 0xbb6   : > { %v3165_v29 = vadd.f32 %v3461_v36, %v3387_v34 }
 0xbb7   : > { %v3463_v37 = vpop.f32.mrf.mxu1 }
 0xbb8   : > { %3183 = vst [vmem:[%s709_s12] sm:$0xff] %v3165_v29  ;;  %v3464_v41 = vadd.f32 %v3463_v37, %v3462_v39 }
 0xbba   : > { %v3170_v32 = vadd.f32 %v3464_v41, %v3387_v34  ;;  %v3465_v45 = vpop.f32.mrf.mxu1 }
 0xbbc   : > { %3184 = vst [vmem:[%s709_s12 + $0x8] sm:$0xff] %v3170_v32  ;;  %v3466_v50 = vpop.f32.mrf.mxu1 }
 0xbbd   : > { %v3467_v52 = vadd.f32 %v3466_v50, %v3465_v45 }
 0xbbe   : > { %v3468_v60 = vpop.f32.mrf.mxu1 }
 0xbbf   : > { %v3175_v1 = vadd.f32 %v3467_v52, %v3387_v34 }
 0xbc0   : > { %v3469_v27 = vpop.f32.mrf.mxu1 }
 0xbc1   : > { %3185 = vst [vmem:[%s709_s12 + $0x10] sm:$0xff] %v3175_v1  ;;  %v3470_v14 = vadd.f32 %v3469_v27, %v3468_v60 }
 0xbc3   : > { %v3180_v2 = vadd.f32 %v3470_v14, %v3387_v34 }
 0xbc5   : > { %3186 = vst [vmem:[%s709_s12 + $0x18] sm:$0xff] %v3180_v2 }
 0xbc6   : > { %4024 = shalt.err (!%p4021_p6)
}
 0xbc7   : > { %s4025_s22 = scalar_lea.hbm %s4934_s6, 512  ;;  %s4029_s12 = scalar_lea.hbm %s5049_s3, 1024 }
 0xbc8   : > { %p4026_p8 = scmp.ne.s32.totalorder %s4934_s6, %s4025_s22  ;;  %p4030_p11 = scmp.lt.s32.totalorder %s4934_s6, %s5049_s3 }
 0xbc9   : > { %p4031_p13 = scmp.lt.s32.totalorder %s4029_s12, %s4025_s22 }
 0xbca   : > { %p4027_p10 = pnand %p4026_p8, %p5050_p5 }
 0xbcb   : > { %p4032_p0 = por %p4031_p13, %p4030_p11 }
 0xbcc   : > { %p4028_p7 = pneg %p4027_p10 }
 0xbce   : > { %p4033_p2 = pnand %p4032_p0, %p4028_p7 }
 0xbd0   : > { %4036 = shalt.err (!%p4033_p2)
}
 0xbd1   : > { %s4110_s7 = smov 128   ;;  %s4111_s20 = smov 8  }
 0xbd2   : > { %3593 = dma.vmem_to_hbm [thread:$0]  (%p5050_p5), %s4929_s23, 512, %s4934_s6, %s3188_s10, %s4110_s7, %s4110_s7, %s4111_s20  }
 0xbd3 PF: > { %s3216_s1 = sand.u32 1, %s4079_s27   ;;  %p5051_p9 = scmp.ne.s32.totalorder %s5030_s0, 0 }
 0xbd4   : > { %p5052_p12 = scmp.ge.s32.totalorder %s4091_s30, 2  ;;  %s3217_s26 = scalar_lea.sflag [#allocation4], %s3216_s1 }
 0xbd6   : > { %p3625_p1 = pnand %p5052_p12, %p5051_p9 }
 0xbd8   : > { %p3626_p3 = pneg %p3625_p1 }
 0xbda   : > { %4074 = dma.done.wait (%p3626_p3), %s3217_s26, 512  }
 0xbdb   : > { %4076 = vsyncadd (%p3626_p3), %s3217_s26, 4294966784  ;;  %p35_p4 = scmp.ge.s32.totalorder %s4341_s15, 4   ;;  %s5053_s27 = smov %s4083_s28 }
 0xbdc   : > { %s5054_s28 = smov %s4087_s29  ;;  %s5055_s29 = smov %s4352_s2 }
 0xbdd   : > { %s5056_s30 = smov %s4341_s15  ;;  %37 = sbr.rel (!%p35_p4) target bundleno = 23 (0x17), region = 169 }
 0xbe2   :  { %3222 = vsyncpa [#allocation3], 1 }
 0xbe3   :  { %3224 = vsyncpa [#allocation3 + $0x1], 1 }
 0xbe4   :  { %3225 = vsyncpa [#allocation6], 1 }
 0xbe5   :  { %3226 = vsyncpa [#allocation9], 1 }
 0xbe6   :  { %3227 = vsyncpa [#allocation12], 1 }
 0xbe7   :  { %3228 = vsyncpa [#allocation15], 1 }
 0xbe8   :  { %3229 = vsyncpa [#allocation4], 1 }
 0xbe9   :  { %3231 = vsyncpa [#allocation4 + $0x1], 1 }

</bundles_post_ra>
